<compile_context>
chip_gen: v7x
topology: tpu7x:2x2x1
jax: 0.10.0
libtpu: 0.0.40
codegen_flags: <defaults>
</compile_context>

<pallas_src>
import jax
import jax.numpy as jnp
from jax.experimental import pallas as pl
from jax.experimental.pallas import tpu as pltpu


LATENT_DIM = 2
LATENT_PAD = 128                      # lane-dense padding of the latent (in-kernel only)
IN_DIM = 28 * 28
ENC_DIMS = [IN_DIM, 128, 64, 12, LATENT_DIM]
DEC_DIMS = [LATENT_DIM, 12, 64, 128, IN_DIM]


# --------------------------------------------------------------------------- #
# Kernel
# --------------------------------------------------------------------------- #
def vae_kernel(x_ref,
               ew1, eb1, ew2, eb2, ew3, eb3, ew4, eb4,
               dw1, db1, dw2, db2, dw3, db3, dw4, db4,
               out_ref, z_ref):
    """One (TILE_B, 784) f32 activation tile through encoder + decoder.

    Weights are bf16 (MXU operands), biases f32.  Activations stay in f32
    between layers and are cast to bf16 only at each matmul input.  The
    reconstruction is stored as bf16; the latent is stored as (TILE_B, 2) f32.
    """
    def linear(h, w_ref, b_ref, relu=True):
        y = jnp.dot(h.astype(jnp.bfloat16), w_ref[...],
                    preferred_element_type=jnp.float32) + b_ref[...]
        return jnp.maximum(y, 0.0) if relu else y

    # ---- encoder ----
    h = linear(x_ref[...], ew1, eb1)
    h = linear(h, ew2, eb2)
    h = linear(h, ew3, eb3)
    z = linear(h, ew4, eb4, relu=False)       # (TILE_B, 128); cols >= 2 are exactly 0
    z_ref[...] = z[:, :LATENT_DIM]            # narrow (TILE_B, 2) f32 store

    # ---- decoder ----
    d = linear(z, dw1, db1)                   # dw1 rows >= 2 are 0 -> exact
    d = linear(d, dw2, db2)
    d = linear(d, dw3, db3)
    out_ref[...] = linear(d, dw4, db4, relu=False).astype(out_ref.dtype)


# --------------------------------------------------------------------------- #
# Parameter init (mirrors torch.nn.Linear default init, stored as (in, out))
# --------------------------------------------------------------------------- #
def init_linear(key, fan_in, fan_out):
    kw, kb = jax.random.split(key)
    bound = 1.0 / jnp.sqrt(jnp.float32(fan_in))
    w = jax.random.uniform(kw, (fan_in, fan_out), jnp.float32, -bound, bound)
    b = jax.random.uniform(kb, (1, fan_out), jnp.float32, -bound, bound)
    return w, b


def init_params(key):
    params = []
    dims = list(zip(ENC_DIMS[:-1], ENC_DIMS[1:])) + list(zip(DEC_DIMS[:-1], DEC_DIMS[1:]))
    keys = jax.random.split(key, len(dims))
    for k, (fi, fo) in zip(keys, dims):
        w, b = init_linear(k, fi, fo)
        params.extend([w, b])
    return params  # [ew1, eb1, ..., ew4, eb4, dw1, db1, ..., dw4, db4]


def prepare_params(params):
    """Cast weights to bf16 and zero-pad the 2-wide latent layer to 128 lanes."""
    (ew1, eb1, ew2, eb2, ew3, eb3, ew4, eb4,
     dw1, db1, dw2, db2, dw3, db3, dw4, db4) = params
    ew4p = jnp.zeros((ew4.shape[0], LATENT_PAD), ew4.dtype).at[:, :LATENT_DIM].set(ew4)
    eb4p = jnp.zeros((1, LATENT_PAD), eb4.dtype).at[:, :LATENT_DIM].set(eb4)
    dw1p = jnp.zeros((LATENT_PAD, dw1.shape[1]), dw1.dtype).at[:LATENT_DIM, :].set(dw1)

    weights = [ew1, ew2, ew3, ew4p, dw1p, dw2, dw3, dw4]
    biases = [eb1, eb2, eb3, eb4p, db1, db2, db3, db4]
    flat = []
    for w, b in zip(weights, biases):
        flat.append(w.astype(jnp.bfloat16))   # MXU operand, half DMA bytes
        flat.append(b)                        # f32 bias (added post-accum)
    return flat


# --------------------------------------------------------------------------- #
# Host wrapper
# --------------------------------------------------------------------------- #
def vae_forward(x, params, tile_b=1024):
    """Returns (output, latent_rep), matching the PyTorch ForwardOutput.

    tile_b: batch tile.  1024 is a good default on all gens (fits v7x's
    64 MiB VMEM with the bf16 output); 2048 is viable on v5e/v6e.  For best
    v7x occupancy choose batch/tile so the grid has >= 2 (even) steps.
    """
    B = x.shape[0]
    flat = prepare_params(params)

    # Clamp the tile to the (8-aligned) batch so small batches don't over-pad,
    # then pad the batch to a multiple of the tile so every step is full.
    tile = min(tile_b, max(8, ((B + 7) // 8) * 8))
    n_tiles = pl.cdiv(B, tile)
    Bp = n_tiles * tile
    if Bp != B:
        x = jnp.pad(x, ((0, Bp - B), (0, 0)))
    x = x.astype(jnp.float32)                 # kernel casts to bf16 internally

    # Activation tiles stream over the grid; weights/biases are pinned in VMEM
    # via constant index_maps (DMA'd once, revisited every step).
    x_spec = pl.BlockSpec((tile, IN_DIM), lambda i: (i, 0))
    param_specs = [pl.BlockSpec(p.shape, lambda i: (0, 0)) for p in flat]
    out_spec = pl.BlockSpec((tile, IN_DIM), lambda i: (i, 0))
    z_spec = pl.BlockSpec((tile, LATENT_DIM), lambda i: (i, 0))

    mm_dims = [(IN_DIM, 128), (128, 64), (64, 12), (12, LATENT_PAD),
               (LATENT_PAD, 12), (12, 64), (64, 128), (128, IN_DIM)]
    flops = 2 * Bp * sum(k * n for k, n in mm_dims)
    param_bytes = sum(int(p.size) * p.dtype.itemsize for p in flat)
    bytes_accessed = (Bp * IN_DIM * 4            # x in (f32)
                      + Bp * IN_DIM * 2          # out (bf16)
                      + Bp * LATENT_DIM * 4      # z (f32)
                      + param_bytes)

    out, z = pl.pallas_call(
        vae_kernel,
        grid=(n_tiles,),
        in_specs=[x_spec] + param_specs,
        out_specs=(out_spec, z_spec),
        out_shape=(
            jax.ShapeDtypeStruct((Bp, IN_DIM), jnp.bfloat16),
            jax.ShapeDtypeStruct((Bp, LATENT_DIM), jnp.float32),
        ),
        compiler_params=pltpu.CompilerParams(
            dimension_semantics=("parallel",),
            vmem_limit_bytes=64 * 1024 * 1024,
        ),
        cost_estimate=pl.CostEstimate(
            flops=flops, transcendentals=0, bytes_accessed=bytes_accessed),
    )(x, *flat)

    return out[:B], z[:B]


# --------------------------------------------------------------------------- #
# Pure-JAX reference (mirrors the kernel's bf16-operand / f32-accum casting)
# --------------------------------------------------------------------------- #
def vae_reference(x, params):
    (ew1, eb1, ew2, eb2, ew3, eb3, ew4, eb4,
     dw1, db1, dw2, db2, dw3, db3, dw4, db4) = params

    def lin(h, w, b, relu=True):
        y = jnp.dot(h.astype(jnp.bfloat16), w.astype(jnp.bfloat16),
                    preferred_element_type=jnp.float32) + b
        return jnp.maximum(y, 0.0) if relu else y

    h = lin(x, ew1, eb1)
    h = lin(h, ew2, eb2)
    h = lin(h, ew3, eb3)
    z = lin(h, ew4, eb4, relu=False)
    d = lin(z, dw1, db1)
    d = lin(d, dw2, db2)
    d = lin(d, dw3, db3)
    y = lin(d, dw4, db4, relu=False)
    return y, z


if __name__ == "__main__":
    key = jax.random.PRNGKey(0)
    k_params, k_x = jax.random.split(key)

    B = 256          # small test batch (tile clamps to 256 -> 1 grid step)
    params = init_params(k_params)
    x = jax.random.normal(k_x, (B, IN_DIM), jnp.float32)

    out, z = vae_forward(x, params)
    out = jax.block_until_ready(out)
    z = jax.block_until_ready(z)

    ref_out, ref_z = vae_reference(x, params)
    assert out.shape == (B, IN_DIM) and z.shape == (B, LATENT_DIM)
    assert jnp.allclose(out.astype(jnp.float32), ref_out, atol=2e-2, rtol=2e-2)
    assert jnp.allclose(z, ref_z, atol=1e-2, rtol=1e-2)

    print("KERNEL_OK")
</pallas_src>

<mosaic_0001>
module attributes {stable_mosaic.version = 11 : i64} {
  func.func @vae_kernel(%arg0: i32, %arg1: memref<256x784xf32, #tpu.memory_space<vmem>>, %arg2: memref<784x128xbf16, #tpu.memory_space<vmem>>, %arg3: memref<1x128xf32, #tpu.memory_space<vmem>>, %arg4: memref<128x64xbf16, #tpu.memory_space<vmem>>, %arg5: memref<1x64xf32, #tpu.memory_space<vmem>>, %arg6: memref<64x12xbf16, #tpu.memory_space<vmem>>, %arg7: memref<1x12xf32, #tpu.memory_space<vmem>>, %arg8: memref<12x128xbf16, #tpu.memory_space<vmem>>, %arg9: memref<1x128xf32, #tpu.memory_space<vmem>>, %arg10: memref<128x12xbf16, #tpu.memory_space<vmem>>, %arg11: memref<1x12xf32, #tpu.memory_space<vmem>>, %arg12: memref<12x64xbf16, #tpu.memory_space<vmem>>, %arg13: memref<1x64xf32, #tpu.memory_space<vmem>>, %arg14: memref<64x128xbf16, #tpu.memory_space<vmem>>, %arg15: memref<1x128xf32, #tpu.memory_space<vmem>>, %arg16: memref<128x784xbf16, #tpu.memory_space<vmem>>, %arg17: memref<1x784xf32, #tpu.memory_space<vmem>>, %arg18: memref<256x784xbf16, #tpu.memory_space<vmem>>, %arg19: memref<256x2xf32, #tpu.memory_space<vmem>>) attributes {dimension_semantics = [#tpu.dimension_semantics<parallel>], iteration_bounds = array<i64: 1>, scalar_prefetch = 0 : i64, scratch_operands = 0 : i64, tpu.core_type = #tpu.core_type<tc>, window_params = [{transform_indices = @transform_0, window_bounds = array<i64: 256, 784>}, {pipeline_mode = #tpu.pipeline_mode<synchronous>, transform_indices = @transform_1, window_bounds = array<i64: 784, 128>}, {pipeline_mode = #tpu.pipeline_mode<synchronous>, transform_indices = @transform_2, window_bounds = array<i64: 1, 128>}, {pipeline_mode = #tpu.pipeline_mode<synchronous>, transform_indices = @transform_3, window_bounds = array<i64: 128, 64>}, {pipeline_mode = #tpu.pipeline_mode<synchronous>, transform_indices = @transform_4, window_bounds = array<i64: 1, 64>}, {pipeline_mode = #tpu.pipeline_mode<synchronous>, transform_indices = @transform_5, window_bounds = array<i64: 64, 12>}, {pipeline_mode = #tpu.pipeline_mode<synchronous>, transform_indices = @transform_6, window_bounds = array<i64: 1, 12>}, {pipeline_mode = #tpu.pipeline_mode<synchronous>, transform_indices = @transform_7, window_bounds = array<i64: 12, 128>}, {pipeline_mode = #tpu.pipeline_mode<synchronous>, transform_indices = @transform_8, window_bounds = array<i64: 1, 128>}, {pipeline_mode = #tpu.pipeline_mode<synchronous>, transform_indices = @transform_9, window_bounds = array<i64: 128, 12>}, {pipeline_mode = #tpu.pipeline_mode<synchronous>, transform_indices = @transform_10, window_bounds = array<i64: 1, 12>}, {pipeline_mode = #tpu.pipeline_mode<synchronous>, transform_indices = @transform_11, window_bounds = array<i64: 12, 64>}, {pipeline_mode = #tpu.pipeline_mode<synchronous>, transform_indices = @transform_12, window_bounds = array<i64: 1, 64>}, {pipeline_mode = #tpu.pipeline_mode<synchronous>, transform_indices = @transform_13, window_bounds = array<i64: 64, 128>}, {pipeline_mode = #tpu.pipeline_mode<synchronous>, transform_indices = @transform_14, window_bounds = array<i64: 1, 128>}, {pipeline_mode = #tpu.pipeline_mode<synchronous>, transform_indices = @transform_15, window_bounds = array<i64: 128, 784>}, {pipeline_mode = #tpu.pipeline_mode<synchronous>, transform_indices = @transform_16, window_bounds = array<i64: 1, 784>}, {transform_indices = @transform_17, window_bounds = array<i64: 256, 784>}, {transform_indices = @transform_18, window_bounds = array<i64: 256, 2>}]} {
    %c0 = arith.constant 0 : index
    %c0_0 = arith.constant 0 : index
    %0 = vector.load %arg1[%c0, %c0_0] : memref<256x784xf32, #tpu.memory_space<vmem>>, vector<256x784xf32>
    %1 = arith.truncf %0 : vector<256x784xf32> to vector<256x784xbf16>
    %c0_1 = arith.constant 0 : index
    %c0_2 = arith.constant 0 : index
    %2 = vector.load %arg2[%c0_1, %c0_2] : memref<784x128xbf16, #tpu.memory_space<vmem>>, vector<784x128xbf16>
    %cst = arith.constant dense<0.000000e+00> : vector<256x128xf32>
    %3 = tpu.matmul %1, %2, %cst {dimension_numbers = #tpu.dot_dimension_numbers<[1], [0], [0], [1], [0, 0, 1, 1], [], []>} : vector<256x784xbf16>, vector<784x128xbf16>, vector<256x128xf32> -> vector<256x128xf32>
    %c0_3 = arith.constant 0 : index
    %c0_4 = arith.constant 0 : index
    %4 = vector.load %arg3[%c0_3, %c0_4] : memref<1x128xf32, #tpu.memory_space<vmem>>, vector<1x128xf32>
    %5 = vector.broadcast %4 : vector<1x128xf32> to vector<256x128xf32>
    %6 = arith.addf %3, %5 : vector<256x128xf32>
    %cst_5 = arith.constant 0.000000e+00 : f32
    %7 = vector.broadcast %cst_5 : f32 to vector<256x128xf32>
    %8 = arith.maximumf %6, %7 : vector<256x128xf32>
    %9 = arith.truncf %8 : vector<256x128xf32> to vector<256x128xbf16>
    %c0_6 = arith.constant 0 : index
    %c0_7 = arith.constant 0 : index
    %10 = vector.load %arg4[%c0_6, %c0_7] : memref<128x64xbf16, #tpu.memory_space<vmem>>, vector<128x64xbf16>
    %cst_8 = arith.constant dense<0.000000e+00> : vector<256x64xf32>
    %11 = tpu.matmul %9, %10, %cst_8 {dimension_numbers = #tpu.dot_dimension_numbers<[1], [0], [0], [1], [0, 0, 1, 1], [], []>} : vector<256x128xbf16>, vector<128x64xbf16>, vector<256x64xf32> -> vector<256x64xf32>
    %c0_9 = arith.constant 0 : index
    %c0_10 = arith.constant 0 : index
    %12 = vector.load %arg5[%c0_9, %c0_10] : memref<1x64xf32, #tpu.memory_space<vmem>>, vector<1x64xf32>
    %13 = vector.broadcast %12 : vector<1x64xf32> to vector<256x64xf32>
    %14 = arith.addf %11, %13 : vector<256x64xf32>
    %cst_11 = arith.constant 0.000000e+00 : f32
    %15 = vector.broadcast %cst_11 : f32 to vector<256x64xf32>
    %16 = arith.maximumf %14, %15 : vector<256x64xf32>
    %17 = arith.truncf %16 : vector<256x64xf32> to vector<256x64xbf16>
    %c0_12 = arith.constant 0 : index
    %c0_13 = arith.constant 0 : index
    %18 = vector.load %arg6[%c0_12, %c0_13] : memref<64x12xbf16, #tpu.memory_space<vmem>>, vector<64x12xbf16>
    %cst_14 = arith.constant dense<0.000000e+00> : vector<256x12xf32>
    %19 = tpu.matmul %17, %18, %cst_14 {dimension_numbers = #tpu.dot_dimension_numbers<[1], [0], [0], [1], [0, 0, 1, 1], [], []>} : vector<256x64xbf16>, vector<64x12xbf16>, vector<256x12xf32> -> vector<256x12xf32>
    %c0_15 = arith.constant 0 : index
    %c0_16 = arith.constant 0 : index
    %20 = vector.load %arg7[%c0_15, %c0_16] : memref<1x12xf32, #tpu.memory_space<vmem>>, vector<1x12xf32>
    %21 = vector.broadcast %20 : vector<1x12xf32> to vector<256x12xf32>
    %22 = arith.addf %19, %21 : vector<256x12xf32>
    %cst_17 = arith.constant 0.000000e+00 : f32
    %23 = vector.broadcast %cst_17 : f32 to vector<256x12xf32>
    %24 = arith.maximumf %22, %23 : vector<256x12xf32>
    %25 = arith.truncf %24 : vector<256x12xf32> to vector<256x12xbf16>
    %c0_18 = arith.constant 0 : index
    %c0_19 = arith.constant 0 : index
    %26 = vector.load %arg8[%c0_18, %c0_19] : memref<12x128xbf16, #tpu.memory_space<vmem>>, vector<12x128xbf16>
    %cst_20 = arith.constant dense<0.000000e+00> : vector<256x128xf32>
    %27 = tpu.matmul %25, %26, %cst_20 {dimension_numbers = #tpu.dot_dimension_numbers<[1], [0], [0], [1], [0, 0, 1, 1], [], []>} : vector<256x12xbf16>, vector<12x128xbf16>, vector<256x128xf32> -> vector<256x128xf32>
    %c0_21 = arith.constant 0 : index
    %c0_22 = arith.constant 0 : index
    %28 = vector.load %arg9[%c0_21, %c0_22] : memref<1x128xf32, #tpu.memory_space<vmem>>, vector<1x128xf32>
    %29 = vector.broadcast %28 : vector<1x128xf32> to vector<256x128xf32>
    %30 = arith.addf %27, %29 : vector<256x128xf32>
    %31 = vector.extract_strided_slice %30 {offsets = [0, 0], sizes = [256, 2], strides = [1, 1]} : vector<256x128xf32> to vector<256x2xf32>
    %c0_23 = arith.constant 0 : index
    %c0_24 = arith.constant 0 : index
    %32 = vector.load %arg19[%c0_23, %c0_24] : memref<256x2xf32, #tpu.memory_space<vmem>>, vector<256x2xf32>
    tpu.vector_store %arg19[%c0_23, %c0_24], %31 {strides = array<i32>} : memref<256x2xf32, #tpu.memory_space<vmem>>, vector<256x2xf32>,
    %33 = arith.truncf %30 : vector<256x128xf32> to vector<256x128xbf16>
    %c0_25 = arith.constant 0 : index
    %c0_26 = arith.constant 0 : index
    %34 = vector.load %arg10[%c0_25, %c0_26] : memref<128x12xbf16, #tpu.memory_space<vmem>>, vector<128x12xbf16>
    %cst_27 = arith.constant dense<0.000000e+00> : vector<256x12xf32>
    %35 = tpu.matmul %33, %34, %cst_27 {dimension_numbers = #tpu.dot_dimension_numbers<[1], [0], [0], [1], [0, 0, 1, 1], [], []>} : vector<256x128xbf16>, vector<128x12xbf16>, vector<256x12xf32> -> vector<256x12xf32>
    %c0_28 = arith.constant 0 : index
    %c0_29 = arith.constant 0 : index
    %36 = vector.load %arg11[%c0_28, %c0_29] : memref<1x12xf32, #tpu.memory_space<vmem>>, vector<1x12xf32>
    %37 = vector.broadcast %36 : vector<1x12xf32> to vector<256x12xf32>
    %38 = arith.addf %35, %37 : vector<256x12xf32>
    %cst_30 = arith.constant 0.000000e+00 : f32
    %39 = vector.broadcast %cst_30 : f32 to vector<256x12xf32>
    %40 = arith.maximumf %38, %39 : vector<256x12xf32>
    %41 = arith.truncf %40 : vector<256x12xf32> to vector<256x12xbf16>
    %c0_31 = arith.constant 0 : index
    %c0_32 = arith.constant 0 : index
    %42 = vector.load %arg12[%c0_31, %c0_32] : memref<12x64xbf16, #tpu.memory_space<vmem>>, vector<12x64xbf16>
    %cst_33 = arith.constant dense<0.000000e+00> : vector<256x64xf32>
    %43 = tpu.matmul %41, %42, %cst_33 {dimension_numbers = #tpu.dot_dimension_numbers<[1], [0], [0], [1], [0, 0, 1, 1], [], []>} : vector<256x12xbf16>, vector<12x64xbf16>, vector<256x64xf32> -> vector<256x64xf32>
    %c0_34 = arith.constant 0 : index
    %c0_35 = arith.constant 0 : index
    %44 = vector.load %arg13[%c0_34, %c0_35] : memref<1x64xf32, #tpu.memory_space<vmem>>, vector<1x64xf32>
    %45 = vector.broadcast %44 : vector<1x64xf32> to vector<256x64xf32>
    %46 = arith.addf %43, %45 : vector<256x64xf32>
    %cst_36 = arith.constant 0.000000e+00 : f32
    %47 = vector.broadcast %cst_36 : f32 to vector<256x64xf32>
    %48 = arith.maximumf %46, %47 : vector<256x64xf32>
    %49 = arith.truncf %48 : vector<256x64xf32> to vector<256x64xbf16>
    %c0_37 = arith.constant 0 : index
    %c0_38 = arith.constant 0 : index
    %50 = vector.load %arg14[%c0_37, %c0_38] : memref<64x128xbf16, #tpu.memory_space<vmem>>, vector<64x128xbf16>
    %cst_39 = arith.constant dense<0.000000e+00> : vector<256x128xf32>
    %51 = tpu.matmul %49, %50, %cst_39 {dimension_numbers = #tpu.dot_dimension_numbers<[1], [0], [0], [1], [0, 0, 1, 1], [], []>} : vector<256x64xbf16>, vector<64x128xbf16>, vector<256x128xf32> -> vector<256x128xf32>
    %c0_40 = arith.constant 0 : index
    %c0_41 = arith.constant 0 : index
    %52 = vector.load %arg15[%c0_40, %c0_41] : memref<1x128xf32, #tpu.memory_space<vmem>>, vector<1x128xf32>
    %53 = vector.broadcast %52 : vector<1x128xf32> to vector<256x128xf32>
    %54 = arith.addf %51, %53 : vector<256x128xf32>
    %cst_42 = arith.constant 0.000000e+00 : f32
    %55 = vector.broadcast %cst_42 : f32 to vector<256x128xf32>
    %56 = arith.maximumf %54, %55 : vector<256x128xf32>
    %57 = arith.truncf %56 : vector<256x128xf32> to vector<256x128xbf16>
    %c0_43 = arith.constant 0 : index
    %c0_44 = arith.constant 0 : index
    %58 = vector.load %arg16[%c0_43, %c0_44] : memref<128x784xbf16, #tpu.memory_space<vmem>>, vector<128x784xbf16>
    %cst_45 = arith.constant dense<0.000000e+00> : vector<256x784xf32>
    %59 = tpu.matmul %57, %58, %cst_45 {dimension_numbers = #tpu.dot_dimension_numbers<[1], [0], [0], [1], [0, 0, 1, 1], [], []>} : vector<256x128xbf16>, vector<128x784xbf16>, vector<256x784xf32> -> vector<256x784xf32>
    %c0_46 = arith.constant 0 : index
    %c0_47 = arith.constant 0 : index
    %60 = vector.load %arg17[%c0_46, %c0_47] : memref<1x784xf32, #tpu.memory_space<vmem>>, vector<1x784xf32>
    %61 = vector.broadcast %60 : vector<1x784xf32> to vector<256x784xf32>
    %62 = arith.addf %59, %61 : vector<256x784xf32>
    %63 = arith.truncf %62 : vector<256x784xf32> to vector<256x784xbf16>
    %c0_48 = arith.constant 0 : index
    %c0_49 = arith.constant 0 : index
    %64 = vector.load %arg18[%c0_48, %c0_49] : memref<256x784xbf16, #tpu.memory_space<vmem>>, vector<256x784xbf16>
    tpu.vector_store %arg18[%c0_48, %c0_49], %63 {strides = array<i32>} : memref<256x784xbf16, #tpu.memory_space<vmem>>, vector<256x784xbf16>,
    return
  }
  func.func @transform_0(%arg0: i32) -> (i32, i32) {
    %c0_i32 = arith.constant 0 : i32
    %c0_i32_0 = arith.constant 0 : i32
    return %arg0, %c0_i32 : i32, i32
  }
  func.func @transform_1(%arg0: i32) -> (i32, i32) {
    %c0_i32 = arith.constant 0 : i32
    %c0_i32_0 = arith.constant 0 : i32
    %c0_i32_1 = arith.constant 0 : i32
    return %c0_i32, %c0_i32_0 : i32, i32
  }
  func.func @transform_2(%arg0: i32) -> (i32, i32) {
    %c0_i32 = arith.constant 0 : i32
    %c0_i32_0 = arith.constant 0 : i32
    %c0_i32_1 = arith.constant 0 : i32
    return %c0_i32, %c0_i32_0 : i32, i32
  }
  func.func @transform_3(%arg0: i32) -> (i32, i32) {
    %c0_i32 = arith.constant 0 : i32
    %c0_i32_0 = arith.constant 0 : i32
    %c0_i32_1 = arith.constant 0 : i32
    return %c0_i32, %c0_i32_0 : i32, i32
  }
  func.func @transform_4(%arg0: i32) -> (i32, i32) {
    %c0_i32 = arith.constant 0 : i32
    %c0_i32_0 = arith.constant 0 : i32
    %c0_i32_1 = arith.constant 0 : i32
    return %c0_i32, %c0_i32_0 : i32, i32
  }
  func.func @transform_5(%arg0: i32) -> (i32, i32) {
    %c0_i32 = arith.constant 0 : i32
    %c0_i32_0 = arith.constant 0 : i32
    %c0_i32_1 = arith.constant 0 : i32
    return %c0_i32, %c0_i32_0 : i32, i32
  }
  func.func @transform_6(%arg0: i32) -> (i32, i32) {
    %c0_i32 = arith.constant 0 : i32
    %c0_i32_0 = arith.constant 0 : i32
    %c0_i32_1 = arith.constant 0 : i32
    return %c0_i32, %c0_i32_0 : i32, i32
  }
  func.func @transform_7(%arg0: i32) -> (i32, i32) {
    %c0_i32 = arith.constant 0 : i32
    %c0_i32_0 = arith.constant 0 : i32
    %c0_i32_1 = arith.constant 0 : i32
    return %c0_i32, %c0_i32_0 : i32, i32
  }
  func.func @transform_8(%arg0: i32) -> (i32, i32) {
    %c0_i32 = arith.constant 0 : i32
    %c0_i32_0 = arith.constant 0 : i32
    %c0_i32_1 = arith.constant 0 : i32
    return %c0_i32, %c0_i32_0 : i32, i32
  }
  func.func @transform_9(%arg0: i32) -> (i32, i32) {
    %c0_i32 = arith.constant 0 : i32
    %c0_i32_0 = arith.constant 0 : i32
    %c0_i32_1 = arith.constant 0 : i32
    return %c0_i32, %c0_i32_0 : i32, i32
  }
  func.func @transform_10(%arg0: i32) -> (i32, i32) {
    %c0_i32 = arith.constant 0 : i32
    %c0_i32_0 = arith.constant 0 : i32
    %c0_i32_1 = arith.constant 0 : i32
    return %c0_i32, %c0_i32_0 : i32, i32
  }
  func.func @transform_11(%arg0: i32) -> (i32, i32) {
    %c0_i32 = arith.constant 0 : i32
    %c0_i32_0 = arith.constant 0 : i32
    %c0_i32_1 = arith.constant 0 : i32
    return %c0_i32, %c0_i32_0 : i32, i32
  }
  func.func @transform_12(%arg0: i32) -> (i32, i32) {
    %c0_i32 = arith.constant 0 : i32
    %c0_i32_0 = arith.constant 0 : i32
    %c0_i32_1 = arith.constant 0 : i32
    return %c0_i32, %c0_i32_0 : i32, i32
  }
  func.func @transform_13(%arg0: i32) -> (i32, i32) {
    %c0_i32 = arith.constant 0 : i32
    %c0_i32_0 = arith.constant 0 : i32
    %c0_i32_1 = arith.constant 0 : i32
    return %c0_i32, %c0_i32_0 : i32, i32
  }
  func.func @transform_14(%arg0: i32) -> (i32, i32) {
    %c0_i32 = arith.constant 0 : i32
    %c0_i32_0 = arith.constant 0 : i32
    %c0_i32_1 = arith.constant 0 : i32
    return %c0_i32, %c0_i32_0 : i32, i32
  }
  func.func @transform_15(%arg0: i32) -> (i32, i32) {
    %c0_i32 = arith.constant 0 : i32
    %c0_i32_0 = arith.constant 0 : i32
    %c0_i32_1 = arith.constant 0 : i32
    return %c0_i32, %c0_i32_0 : i32, i32
  }
  func.func @transform_16(%arg0: i32) -> (i32, i32) {
    %c0_i32 = arith.constant 0 : i32
    %c0_i32_0 = arith.constant 0 : i32
    %c0_i32_1 = arith.constant 0 : i32
    return %c0_i32, %c0_i32_0 : i32, i32
  }
  func.func @transform_17(%arg0: i32) -> (i32, i32) {
    %c0_i32 = arith.constant 0 : i32
    %c0_i32_0 = arith.constant 0 : i32
    return %arg0, %c0_i32 : i32, i32
  }
  func.func @transform_18(%arg0: i32) -> (i32, i32) {
    %c0_i32 = arith.constant 0 : i32
    %c0_i32_0 = arith.constant 0 : i32
    return %arg0, %c0_i32 : i32, i32
  }
}

</mosaic_0001>

<bundles_post_ra>
// kernel: tpu_custom_call.1
= control target key start
LH: loop header
LB: loop body
LE: loop exit
PB: predicated region body
PF: predicated region fallthrough
CT: control target
= control target key end

     0   :  { %s8696_s0 = inlined_call_operand.hbm [shape: f32[256,784], index: 0, kind: input, shape index: {}]   ;;  %s8697_s1 = inlined_call_operand.hbm [shape: bf16[784,128], index: 1, kind: input, shape index: {}]   ;;  %s8698_s2 = inlined_call_operand.hbm [shape: f32[1,128], index: 2, kind: input, shape index: {}]   ;;  %s8699_s3 = inlined_call_operand.hbm [shape: bf16[128,64], index: 3, kind: input, shape index: {}]   ;;  %s8700_s4 = inlined_call_operand.hbm [shape: f32[1,64], index: 4, kind: input, shape index: {}]   ;;  %s8701_s5 = inlined_call_operand.hbm [shape: bf16[64,12], index: 5, kind: input, shape index: {}]   ;;  %s8702_s6 = inlined_call_operand.hbm [shape: f32[1,12], index: 6, kind: input, shape index: {}]   ;;  %s8703_s7 = inlined_call_operand.hbm [shape: bf16[12,128], index: 7, kind: input, shape index: {}]   ;;  %s8704_s8 = inlined_call_operand.hbm [shape: f32[1,128], index: 8, kind: input, shape index: {}]   ;;  %s8705_s9 = inlined_call_operand.hbm [shape: bf16[128,12], index: 9, kind: input, shape index: {}]   ;;  %s8706_s10 = inlined_call_operand.hbm [shape: f32[1,12], index: 10, kind: input, shape index: {}]   ;;  %s8707_s11 = inlined_call_operand.hbm [shape: bf16[12,64], index: 11, kind: input, shape index: {}]   ;;  %s8708_s12 = inlined_call_operand.hbm [shape: f32[1,64], index: 12, kind: input, shape index: {}]   ;;  %s8709_s13 = inlined_call_operand.hbm [shape: bf16[64,128], index: 13, kind: input, shape index: {}]   ;;  %s8710_s14 = inlined_call_operand.hbm [shape: f32[1,128], index: 14, kind: input, shape index: {}]   ;;  %s8711_s15 = inlined_call_operand.hbm [shape: bf16[128,784], index: 15, kind: input, shape index: {}]   ;;  %s8712_s16 = inlined_call_operand.hbm [shape: f32[1,784], index: 16, kind: input, shape index: {}]   ;;  %s8713_s17 = inlined_call_operand.hbm [shape: bf16[256,784], index: 17, kind: output, shape index: {0}]   ;;  %s8714_s18 = inlined_call_operand.hbm [shape: f32[256,2], index: 18, kind: output, shape index: {1}]  }
   0x1   :  { %8720 = sst [smem:[#allocation43_spill]] %s8696_s0 }
   0x2   :  { %8721 = sst [smem:[#allocation44_spill]] %s8697_s1 }
   0x3   :  { %8722 = sst [smem:[#allocation45_spill]] %s8698_s2 }
   0x4   :  { %8723 = sst [smem:[#allocation46_spill]] %s8713_s17 }
   0x5   :  { %8724 = sst [smem:[#allocation47_spill]] %s8714_s18 }
   0x6   :  { %24 = vsyncpa [#allocation3], 0 }
   0x7   :  { %25 = vsyncpa [#allocation6], 0 }
   0x8   :  { %26 = vsyncpa [#allocation9], 0 }
   0x9   :  { %27 = vsyncpa [#allocation12], 0 }
   0xa   :  { %28 = vsyncpa [#allocation15], 0 }
   0xb   :  { %29 = vsyncpa [#allocation18], 0 }
   0xc   :  { %30 = vsyncpa [#allocation21], 0 }
   0xd   :  { %31 = vsyncpa [#allocation24], 0 }
   0xe   :  { %32 = vsyncpa [#allocation27], 0 }
   0xf   :  { %33 = vsyncpa [#allocation4], 0 }
  0x10   :  { %34 = vsyncpa [#allocation31], 0  ;;  %s7382_s27 = smov [#allocation5]   ;;  %s8725_s0 = sld [smem:[#allocation44_spill]] }
  0x11   :  { %s52_s28 = sshll.u32 %s7382_s27, 4  ;;  %s53_s28 = int_to_ptr.vmem [resolvable:$true] %s52_s28 }
  0x16   :  { %s6942_s19 = scalar_lea.hbm %s8725_s0, 6272 }
  0x17   :  { %p6943_p0 = scmp.ne.s32.totalorder %s8725_s0, %s6942_s19  ;;  %p6946_p1 = scmp.lt.u32.totalorder %s6942_s19, %s8725_s0 }
  0x19   :  { %p6948_p2 = pnand %p6946_p1, %p6943_p0 }
  0x1b   :  { %6951 = shalt.err (!%p6948_p2)
}
  0x1c   :  { %s6952_s2 = scalar_lea.vmem %s53_s28, 6272  ;;  %p6957_p4 = scmp.lt.s32.totalorder %s53_s28, %s53_s28 }
  0x1d   :  { %p6953_p3 = scmp.ne.s32.totalorder %s53_s28, %s6952_s2  ;;  %p6958_p5 = scmp.lt.s32.totalorder %s6952_s2, %s6952_s2 }
  0x1f   :  { %p6959_p6 = por %p6958_p5, %p6957_p4 }
  0x21   :  { %p6960_p7 = pnand %p6959_p6, %p6953_p3 }
  0x23   :  { %6963 = shalt.err (!%p6960_p7)
}
  0x24   :  { %s7383_s23 = smov 64   ;;  %s7384_s24 = smov 4  }
  0x25   :  { %58 = dma.hbm_to_vmem [thread:$0]  %s8725_s0, 6272, %s53_s28, [#allocation6], %s7383_s23, %s7383_s23, %s7384_s24  }
  0x26   :  { %s7385_s27 = smov [#allocation8]   ;;  %s7386_s30 = smov [#allocation11]  }
  0x27   :  { %s74_s29 = sshll.u32 %s7385_s27, 4  ;;  %s96_s19 = sshll.u32 %s7386_s30, 4  ;;  %s75_s29 = int_to_ptr.vmem [resolvable:$true] %s74_s29  ;;  %s97_s19 = int_to_ptr.vmem [resolvable:$true] %s96_s19 }
  0x28   :  { %s6964_s21 = scalar_lea.hbm %s8699_s3, 1024 }
  0x29   :  { %p6965_p8 = scmp.ne.s32.totalorder %s8699_s3, %s6964_s21  ;;  %p6968_p9 = scmp.lt.u32.totalorder %s6964_s21, %s8699_s3 }
  0x2b   :  { %p6970_p10 = pnand %p6968_p9, %p6965_p8 }
  0x2d   :  { %6973 = shalt.err (!%p6970_p10)
}
  0x2e   :  { %s6974_s28 = scalar_lea.vmem %s75_s29, 1024  ;;  %p6979_p12 = scmp.lt.s32.totalorder %s75_s29, %s75_s29 }
  0x2f   :  { %p6975_p11 = scmp.ne.s32.totalorder %s75_s29, %s6974_s28  ;;  %p6980_p13 = scmp.lt.s32.totalorder %s6974_s28, %s6974_s28 }
  0x31   :  { %p6981_p0 = por %p6980_p13, %p6979_p12 }
  0x33   :  { %p6982_p1 = pnand %p6981_p0, %p6975_p11 }
  0x35   :  { %6985 = shalt.err (!%p6982_p1)
}
  0x36   :  { %80 = dma.hbm_to_vmem [thread:$0]  %s8699_s3, 1024, %s75_s29, [#allocation9], %s7383_s23, %s7383_s23, %s7384_s24  }
  0x37   :  { %s6986_s18 = scalar_lea.hbm %s8701_s5, 512 }
  0x38   :  { %p6987_p2 = scmp.ne.s32.totalorder %s8701_s5, %s6986_s18  ;;  %p6990_p3 = scmp.lt.u32.totalorder %s6986_s18, %s8701_s5 }
  0x3a   :  { %p6992_p4 = pnand %p6990_p3, %p6987_p2 }
  0x3c   :  { %6995 = shalt.err (!%p6992_p4)
}
  0x3d   :  { %s6996_s21 = scalar_lea.vmem %s97_s19, 512  ;;  %p7001_p6 = scmp.lt.s32.totalorder %s97_s19, %s97_s19 }
  0x3e   :  { %p6997_p5 = scmp.ne.s32.totalorder %s97_s19, %s6996_s21  ;;  %p7002_p7 = scmp.lt.s32.totalorder %s6996_s21, %s6996_s21 }
  0x40   :  { %p7003_p8 = por %p7002_p7, %p7001_p6 }
  0x42   :  { %p7004_p9 = pnand %p7003_p8, %p6997_p5 }
  0x44   :  { %7007 = shalt.err (!%p7004_p9)
}
  0x45   :  { %102 = dma.hbm_to_vmem [thread:$0]  %s8701_s5, 512, %s97_s19, [#allocation12], %s7383_s23, %s7383_s23, %s7384_s24  }
  0x46   :  { %s7387_s22 = smov [#allocation14]   ;;  %s7388_s28 = smov [#allocation17]  }
  0x47   :  { %s118_s2 = sshll.u32 %s7387_s22, 4  ;;  %s140_s0 = sshll.u32 %s7388_s28, 4  ;;  %s119_s2 = int_to_ptr.vmem [resolvable:$true] %s118_s2  ;;  %s141_s0 = int_to_ptr.vmem [resolvable:$true] %s140_s0 }
  0x48   :  { %s7008_s17 = scalar_lea.hbm %s8703_s7, 128 }
  0x49   :  { %p7009_p10 = scmp.ne.s32.totalorder %s8703_s7, %s7008_s17  ;;  %p7012_p11 = scmp.lt.u32.totalorder %s7008_s17, %s8703_s7 }
  0x4b   :  { %p7014_p12 = pnand %p7012_p11, %p7009_p10 }
  0x4d   :  { %7017 = shalt.err (!%p7014_p12)
}
  0x4e   :  { %s7018_s5 = scalar_lea.vmem %s119_s2, 128  ;;  %p7023_p0 = scmp.lt.s32.totalorder %s119_s2, %s119_s2 }
  0x4f   :  { %p7019_p13 = scmp.ne.s32.totalorder %s119_s2, %s7018_s5  ;;  %p7024_p1 = scmp.lt.s32.totalorder %s7018_s5, %s7018_s5 }
  0x51   :  { %p7025_p2 = por %p7024_p1, %p7023_p0 }
  0x53   :  { %p7026_p3 = pnand %p7025_p2, %p7019_p13 }
  0x55   :  { %7029 = shalt.err (!%p7026_p3)
}
  0x56   :  { %124 = dma.hbm_to_vmem [thread:$0]  %s8703_s7, 128, %s119_s2, [#allocation15], %s7383_s23, %s7383_s23, %s7384_s24  }
  0x57   :  { %s7030_s29 = scalar_lea.hbm %s8705_s9, 1024 }
  0x58   :  { %p7031_p4 = scmp.ne.s32.totalorder %s8705_s9, %s7030_s29  ;;  %p7034_p5 = scmp.lt.u32.totalorder %s7030_s29, %s8705_s9 }
  0x5a   :  { %p7036_p6 = pnand %p7034_p5, %p7031_p4 }
  0x5c   :  { %7039 = shalt.err (!%p7036_p6)
}
  0x5d   :  { %s7040_s17 = scalar_lea.vmem %s141_s0, 1024  ;;  %p7045_p8 = scmp.lt.s32.totalorder %s141_s0, %s141_s0 }
  0x5e   :  { %p7041_p7 = scmp.ne.s32.totalorder %s141_s0, %s7040_s17  ;;  %p7046_p9 = scmp.lt.s32.totalorder %s7040_s17, %s7040_s17 }
  0x60   :  { %p7047_p10 = por %p7046_p9, %p7045_p8 }
  0x62   :  { %p7048_p11 = pnand %p7047_p10, %p7041_p7 }
  0x64   :  { %7051 = shalt.err (!%p7048_p11)
}
  0x65   :  { %146 = dma.hbm_to_vmem [thread:$0]  %s8705_s9, 1024, %s141_s0, [#allocation18], %s7383_s23, %s7383_s23, %s7384_s24  }
  0x66   :  { %s7389_s18 = smov [#allocation20]   ;;  %s7390_s30 = smov [#allocation23]  }
  0x67   :  { %s162_s27 = sshll.u32 %s7389_s18, 4  ;;  %s184_s1 = sshll.u32 %s7390_s30, 4  ;;  %s163_s27 = int_to_ptr.vmem [resolvable:$true] %s162_s27  ;;  %s185_s1 = int_to_ptr.vmem [resolvable:$true] %s184_s1 }
  0x68   :  { %s7052_s20 = scalar_lea.hbm %s8707_s11, 128 }
  0x69   :  { %p7053_p12 = scmp.ne.s32.totalorder %s8707_s11, %s7052_s20  ;;  %p7056_p13 = scmp.lt.u32.totalorder %s7052_s20, %s8707_s11 }
  0x6b   :  { %p7058_p0 = pnand %p7056_p13, %p7053_p12 }
  0x6d   :  { %7061 = shalt.err (!%p7058_p0)
}
  0x6e   :  { %s7062_s9 = scalar_lea.vmem %s163_s27, 128  ;;  %p7067_p2 = scmp.lt.s32.totalorder %s163_s27, %s163_s27 }
  0x6f   :  { %p7063_p1 = scmp.ne.s32.totalorder %s163_s27, %s7062_s9  ;;  %p7068_p3 = scmp.lt.s32.totalorder %s7062_s9, %s7062_s9 }
  0x71   :  { %p7069_p4 = por %p7068_p3, %p7067_p2 }
  0x73   :  { %p7070_p5 = pnand %p7069_p4, %p7063_p1 }
  0x75   :  { %7073 = shalt.err (!%p7070_p5)
}
  0x76   :  { %168 = dma.hbm_to_vmem [thread:$0]  %s8707_s11, 128, %s163_s27, [#allocation21], %s7383_s23, %s7383_s23, %s7384_s24  }
  0x77   :  { %s7074_s17 = scalar_lea.hbm %s8709_s13, 512 }
  0x78   :  { %p7075_p6 = scmp.ne.s32.totalorder %s8709_s13, %s7074_s17  ;;  %p7078_p7 = scmp.lt.u32.totalorder %s7074_s17, %s8709_s13 }
  0x7a   :  { %p7080_p8 = pnand %p7078_p7, %p7075_p6 }
  0x7c   :  { %7083 = shalt.err (!%p7080_p8)
}
  0x7d   :  { %s7084_s5 = scalar_lea.vmem %s185_s1, 512  ;;  %p7089_p10 = scmp.lt.s32.totalorder %s185_s1, %s185_s1 }
  0x7e   :  { %p7085_p9 = scmp.ne.s32.totalorder %s185_s1, %s7084_s5  ;;  %p7090_p11 = scmp.lt.s32.totalorder %s7084_s5, %s7084_s5 }
  0x80   :  { %p7091_p12 = por %p7090_p11, %p7089_p10 }
  0x82   :  { %p7092_p13 = pnand %p7091_p12, %p7085_p9 }
  0x84   :  { %7095 = shalt.err (!%p7092_p13)
}
  0x85   :  { %190 = dma.hbm_to_vmem [thread:$0]  %s8709_s13, 512, %s185_s1, [#allocation24], %s7383_s23, %s7383_s23, %s7384_s24  }
  0x86   :  { %s7391_s19 = smov [#allocation26]   ;;  %s7096_s29 = scalar_lea.hbm %s8711_s15, 7168 }
  0x87   :  { %s206_s20 = sshll.u32 %s7391_s19, 4  ;;  %p7097_p0 = scmp.ne.s32.totalorder %s8711_s15, %s7096_s29  ;;  %s207_s20 = int_to_ptr.vmem [resolvable:$true] %s206_s20 }
  0x88   :  { %p7100_p1 = scmp.lt.u32.totalorder %s7096_s29, %s8711_s15 }
  0x8a   :  { %p7102_p2 = pnand %p7100_p1, %p7097_p0 }
  0x8c   :  { %7105 = shalt.err (!%p7102_p2)
}
  0x8d   :  { %s7106_s25 = scalar_lea.vmem %s207_s20, 7168  ;;  %p7111_p4 = scmp.lt.s32.totalorder %s207_s20, %s207_s20 }
  0x8e   :  { %p7107_p3 = scmp.ne.s32.totalorder %s207_s20, %s7106_s25  ;;  %p7112_p5 = scmp.lt.s32.totalorder %s7106_s25, %s7106_s25 }
  0x90   :  { %p7113_p6 = por %p7112_p5, %p7111_p4 }
  0x92   :  { %p7114_p7 = pnand %p7113_p6, %p7107_p3 }
  0x94   :  { %7117 = shalt.err (!%p7114_p7)
}
  0x95   :  { %s7392_s13 = smov 448   ;;  %s7393_s23 = smov 28  }
  0x96   :  { %212 = dma.hbm_to_vmem [thread:$0]  %s8711_s15, 7168, %s207_s20, [#allocation27], %s7392_s13, %s7392_s13, %s7393_s23  }
  0x97   :  { %s7394_s26 = smov [#allocation2]   ;;  %s8726_s18 = sld [smem:[#allocation43_spill]] }
  0x98   :  { %s40_s17 = sshll.u32 %s7394_s26, 4  ;;  %s41_s17 = int_to_ptr.vmem [resolvable:$true] %s40_s17 }
  0x9d   :  { %s7118_s30 = scalar_lea.hbm %s8726_s18, 28672 }
  0x9e   :  { %p7119_p8 = scmp.ne.s32.totalorder %s8726_s18, %s7118_s30  ;;  %p7122_p9 = scmp.lt.u32.totalorder %s7118_s30, %s8726_s18 }
  0xa0   :  { %p7124_p10 = pnand %p7122_p9, %p7119_p8 }
  0xa2   :  { %7127 = shalt.err (!%p7124_p10)
}
  0xa3   :  { %s7128_s21 = scalar_lea.vmem %s41_s17, 28672  ;;  %p7133_p12 = scmp.lt.s32.totalorder %s41_s17, %s41_s17 }
  0xa4   :  { %p7129_p11 = scmp.ne.s32.totalorder %s41_s17, %s7128_s21  ;;  %p7134_p13 = scmp.lt.s32.totalorder %s7128_s21, %s7128_s21 }
  0xa6   :  { %p7135_p0 = por %p7134_p13, %p7133_p12 }
  0xa8   :  { %p7136_p1 = pnand %p7135_p0, %p7129_p11 }
  0xaa   :  { %7139 = shalt.err (!%p7136_p1)
}
  0xab   :  { %s7395_s15 = smov 896   ;;  %s7396_s20 = smov 56  }
  0xac   :  { %46 = dma.hbm_to_vmem [thread:$0]  %s8726_s18, 28672, %s41_s17, [#allocation3], %s7395_s15, %s7395_s15, %s7396_s20  }
  0xad   :  { %s7397_s22 = smov [#allocation7]   ;;  %s7398_s0 = smov [#allocation10]  }
  0xae   :  { %s65_s9 = sshll.u32 %s7397_s22, 4  ;;  %s87_s28 = sshll.u32 %s7398_s0, 4  ;;  %s66_s9 = int_to_ptr.vmem [resolvable:$true] %s65_s9  ;;  %s88_s28 = int_to_ptr.vmem [resolvable:$true] %s87_s28 }
  0xaf   :  { %s8727_s1 = sld [smem:[#allocation45_spill]] }
  0xb5   :  { %s7140_s26 = scalar_lea.hbm %s8727_s1, 16 }
  0xb6   :  { %p7141_p2 = scmp.ne.s32.totalorder %s8727_s1, %s7140_s26  ;;  %p7144_p3 = scmp.lt.u32.totalorder %s7140_s26, %s8727_s1 }
  0xb8   :  { %p7146_p4 = pnand %p7144_p3, %p7141_p2 }
  0xba   :  { %7149 = shalt.err (!%p7146_p4)
}
  0xbb   :  { %s7150_s17 = scalar_lea.vmem %s66_s9, 16  ;;  %s7154_s18 = scalar_lea.vmem %s66_s9, 32 }
  0xbc   :  { %p7151_p5 = scmp.ne.s32.totalorder %s66_s9, %s7150_s17  ;;  %p7155_p6 = scmp.lt.s32.totalorder %s66_s9, %s66_s9 }
  0xbd   :  { %p7156_p7 = scmp.lt.s32.totalorder %s7154_s18, %s7150_s17 }
  0xbf   :  { %p7157_p8 = por %p7156_p7, %p7155_p6 }
  0xc1   :  { %p7158_p9 = pnand %p7157_p8, %p7151_p5 }
  0xc3   :  { %7161 = shalt.err (!%p7158_p9)
}
  0xc4   :  { %68 = dma.hbm_to_vmem [thread:$0]  %s8727_s1, 16, %s66_s9, [#allocation6]  }
  0xc5   :  { %s7162_s15 = scalar_lea.hbm %s8700_s4, 16 }
  0xc6   :  { %p7163_p10 = scmp.ne.s32.totalorder %s8700_s4, %s7162_s15  ;;  %p7166_p11 = scmp.lt.u32.totalorder %s7162_s15, %s8700_s4 }
  0xc8   :  { %p7168_p12 = pnand %p7166_p11, %p7163_p10 }
  0xca   :  { %7171 = shalt.err (!%p7168_p12)
}
  0xcb   :  { %s7172_s0 = scalar_lea.vmem %s88_s28, 16  ;;  %s7176_s25 = scalar_lea.vmem %s88_s28, 32 }
  0xcc   :  { %p7173_p13 = scmp.ne.s32.totalorder %s88_s28, %s7172_s0  ;;  %p7177_p0 = scmp.lt.s32.totalorder %s88_s28, %s88_s28 }
  0xcd   :  { %p7178_p1 = scmp.lt.s32.totalorder %s7176_s25, %s7172_s0 }
  0xcf   :  { %p7179_p2 = por %p7178_p1, %p7177_p0 }
  0xd1   :  { %p7180_p3 = pnand %p7179_p2, %p7173_p13 }
  0xd3   :  { %7183 = shalt.err (!%p7180_p3)
}
  0xd4   :  { %90 = dma.hbm_to_vmem [thread:$0]  %s8700_s4, 16, %s88_s28, [#allocation9]  }
  0xd5   :  { %s7399_s1 = smov [#allocation13]   ;;  %s7400_s7 = smov [#allocation16]  }
  0xd6   :  { %s109_s26 = sshll.u32 %s7399_s1, 4  ;;  %s131_s2 = sshll.u32 %s7400_s7, 4  ;;  %s110_s26 = int_to_ptr.vmem [resolvable:$true] %s109_s26  ;;  %s132_s2 = int_to_ptr.vmem [resolvable:$true] %s131_s2 }
  0xd7   :  { %s7184_s17 = scalar_lea.hbm %s8702_s6, 16 }
  0xd8   :  { %p7185_p4 = scmp.ne.s32.totalorder %s8702_s6, %s7184_s17  ;;  %p7188_p5 = scmp.lt.u32.totalorder %s7184_s17, %s8702_s6 }
  0xda   :  { %p7190_p6 = pnand %p7188_p5, %p7185_p4 }
  0xdc   :  { %7193 = shalt.err (!%p7190_p6)
}
  0xdd   :  { %s7194_s4 = scalar_lea.vmem %s110_s26, 16  ;;  %s7198_s28 = scalar_lea.vmem %s110_s26, 32 }
  0xde   :  { %p7195_p7 = scmp.ne.s32.totalorder %s110_s26, %s7194_s4  ;;  %p7199_p8 = scmp.lt.s32.totalorder %s110_s26, %s110_s26 }
  0xdf   :  { %p7200_p9 = scmp.lt.s32.totalorder %s7198_s28, %s7194_s4 }
  0xe1   :  { %p7201_p10 = por %p7200_p9, %p7199_p8 }
  0xe3   :  { %p7202_p11 = pnand %p7201_p10, %p7195_p7 }
  0xe5   :  { %7205 = shalt.err (!%p7202_p11)
}
  0xe6   :  { %112 = dma.hbm_to_vmem [thread:$0]  %s8702_s6, 16, %s110_s26, [#allocation12]  }
  0xe7   :  { %s7206_s29 = scalar_lea.hbm %s8704_s8, 16 }
  0xe8   :  { %p7207_p12 = scmp.ne.s32.totalorder %s8704_s8, %s7206_s29  ;;  %p7210_p13 = scmp.lt.u32.totalorder %s7206_s29, %s8704_s8 }
  0xea   :  { %p7212_p0 = pnand %p7210_p13, %p7207_p12 }
  0xec   :  { %7215 = shalt.err (!%p7212_p0)
}
  0xed   :  { %s7216_s24 = scalar_lea.vmem %s132_s2, 16  ;;  %s7220_s1 = scalar_lea.vmem %s132_s2, 32 }
  0xee   :  { %p7217_p1 = scmp.ne.s32.totalorder %s132_s2, %s7216_s24  ;;  %p7221_p2 = scmp.lt.s32.totalorder %s132_s2, %s132_s2 }
  0xef   :  { %p7222_p3 = scmp.lt.s32.totalorder %s7220_s1, %s7216_s24 }
  0xf1   :  { %p7223_p4 = por %p7222_p3, %p7221_p2 }
  0xf3   :  { %p7224_p5 = pnand %p7223_p4, %p7217_p1 }
  0xf5   :  { %7227 = shalt.err (!%p7224_p5)
}
  0xf6   :  { %134 = dma.hbm_to_vmem [thread:$0]  %s8704_s8, 16, %s132_s2, [#allocation15]  }
  0xf7   :  { %s7401_s7 = smov [#allocation19]   ;;  %s7402_s5 = smov [#allocation22]  }
  0xf8   :  { %s153_s30 = sshll.u32 %s7401_s7, 4  ;;  %s175_s17 = sshll.u32 %s7402_s5, 4  ;;  %s154_s30 = int_to_ptr.vmem [resolvable:$true] %s153_s30  ;;  %s176_s17 = int_to_ptr.vmem [resolvable:$true] %s175_s17 }
  0xf9   :  { %s7228_s27 = scalar_lea.hbm %s8706_s10, 16 }
  0xfa   :  { %p7229_p6 = scmp.ne.s32.totalorder %s8706_s10, %s7228_s27  ;;  %p7232_p7 = scmp.lt.u32.totalorder %s7228_s27, %s8706_s10 }
  0xfc   :  { %p7234_p8 = pnand %p7232_p7, %p7229_p6 }
  0xfe   :  { %7237 = shalt.err (!%p7234_p8)
}
  0xff   :  { %s7238_s8 = scalar_lea.vmem %s154_s30, 16  ;;  %s7242_s2 = scalar_lea.vmem %s154_s30, 32 }
 0x100   :  { %p7239_p9 = scmp.ne.s32.totalorder %s154_s30, %s7238_s8  ;;  %p7243_p10 = scmp.lt.s32.totalorder %s154_s30, %s154_s30 }
 0x101   :  { %p7244_p11 = scmp.lt.s32.totalorder %s7242_s2, %s7238_s8 }
 0x103   :  { %p7245_p12 = por %p7244_p11, %p7243_p10 }
 0x105   :  { %p7246_p13 = pnand %p7245_p12, %p7239_p9 }
 0x107   :  { %7249 = shalt.err (!%p7246_p13)
}
 0x108   :  { %156 = dma.hbm_to_vmem [thread:$0]  %s8706_s10, 16, %s154_s30, [#allocation18]  }
 0x109   :  { %s7250_s22 = scalar_lea.hbm %s8708_s12, 16 }
 0x10a   :  { %p7251_p0 = scmp.ne.s32.totalorder %s8708_s12, %s7250_s22  ;;  %p7254_p1 = scmp.lt.u32.totalorder %s7250_s22, %s8708_s12 }
 0x10c   :  { %p7256_p2 = pnand %p7254_p1, %p7251_p0 }
 0x10e   :  { %7259 = shalt.err (!%p7256_p2)
}
 0x10f   :  { %s7260_s1 = scalar_lea.vmem %s176_s17, 16  ;;  %s7264_s6 = scalar_lea.vmem %s176_s17, 32 }
 0x110   :  { %p7261_p3 = scmp.ne.s32.totalorder %s176_s17, %s7260_s1  ;;  %p7265_p4 = scmp.lt.s32.totalorder %s176_s17, %s176_s17 }
 0x111   :  { %p7266_p5 = scmp.lt.s32.totalorder %s7264_s6, %s7260_s1 }
 0x113   :  { %p7267_p6 = por %p7266_p5, %p7265_p4 }
 0x115   :  { %p7268_p7 = pnand %p7267_p6, %p7261_p3 }
 0x117   :  { %7271 = shalt.err (!%p7268_p7)
}
 0x118   :  { %178 = dma.hbm_to_vmem [thread:$0]  %s8708_s12, 16, %s176_s17, [#allocation21]  }
 0x119   :  { %s7403_s7 = smov [#allocation25]   ;;  %s7404_s5 = smov [#allocation28]  }
 0x11a   :  { %s197_s30 = sshll.u32 %s7403_s7, 4  ;;  %s219_s18 = sshll.u32 %s7404_s5, 4  ;;  %s198_s30 = int_to_ptr.vmem [resolvable:$true] %s197_s30  ;;  %s220_s18 = int_to_ptr.vmem [resolvable:$true] %s219_s18 }
 0x11b   :  { %s7272_s19 = scalar_lea.hbm %s8710_s14, 16 }
 0x11c   :  { %p7273_p8 = scmp.ne.s32.totalorder %s8710_s14, %s7272_s19  ;;  %p7276_p9 = scmp.lt.u32.totalorder %s7272_s19, %s8710_s14 }
 0x11e   :  { %p7278_p10 = pnand %p7276_p9, %p7273_p8 }
 0x120   :  { %7281 = shalt.err (!%p7278_p10)
}
 0x121   :  { %s7282_s12 = scalar_lea.vmem %s198_s30, 16  ;;  %s7286_s17 = scalar_lea.vmem %s198_s30, 32 }
 0x122   :  { %p7283_p11 = scmp.ne.s32.totalorder %s198_s30, %s7282_s12  ;;  %p7287_p12 = scmp.lt.s32.totalorder %s198_s30, %s198_s30 }
 0x123   :  { %p7288_p13 = scmp.lt.s32.totalorder %s7286_s17, %s7282_s12 }
 0x125   :  { %p7289_p0 = por %p7288_p13, %p7287_p12 }
 0x127   :  { %p7290_p1 = pnand %p7289_p0, %p7283_p11 }
 0x129   :  { %7293 = shalt.err (!%p7290_p1)
}
 0x12a   :  { %200 = dma.hbm_to_vmem [thread:$0]  %s8710_s14, 16, %s198_s30, [#allocation24]  }
 0x12b   :  { %s7294_s29 = scalar_lea.hbm %s8712_s16, 112 }
 0x12c   :  { %p7295_p2 = scmp.ne.s32.totalorder %s8712_s16, %s7294_s29  ;;  %p7298_p3 = scmp.lt.u32.totalorder %s7294_s29, %s8712_s16 }
 0x12e   :  { %p7300_p4 = pnand %p7298_p3, %p7295_p2 }
 0x130   :  { %7303 = shalt.err (!%p7300_p4)
}
 0x131   :  { %s7304_s24 = scalar_lea.vmem %s220_s18, 112  ;;  %s7308_s1 = scalar_lea.vmem %s220_s18, 128 }
 0x132   :  { %p7305_p5 = scmp.ne.s32.totalorder %s220_s18, %s7304_s24  ;;  %p7309_p6 = scmp.lt.s32.totalorder %s220_s18, %s220_s18 }
 0x133   :  { %p7310_p7 = scmp.lt.s32.totalorder %s7308_s1, %s7304_s24 }
 0x135   :  { %p7311_p8 = por %p7310_p7, %p7309_p6 }
 0x137   :  { %p7312_p9 = pnand %p7311_p8, %p7305_p5 }
 0x139   :  { %7315 = shalt.err (!%p7312_p9)
}
 0x13a   :  { %222 = dma.hbm_to_vmem [thread:$0]  %s8712_s16, 112, %s220_s18, [#allocation27]  }
 0x13b   :  { %7360 = dma.done.wait [#allocation3], 28672  }
 0x13c   :  { %7361 = vsyncadd [#allocation3], 4294938624 }
 0x13d   :  { %7362 = dma.done.wait [#allocation6], 6288  }
 0x13e   :  { %7363 = vsyncadd [#allocation6], 4294961008 }
 0x13f   :  { %7364 = dma.done.wait [#allocation9], 1040  }
 0x140   :  { %7365 = vsyncadd [#allocation9], 4294966256 }
 0x141   :  { %7366 = dma.done.wait [#allocation12], 528  }
 0x142   :  { %7367 = vsyncadd [#allocation12], 4294966768 }
 0x143   :  { %7368 = dma.done.wait [#allocation15], 144  }
 0x144   :  { %7369 = vsyncadd [#allocation15], 4294967152 }
 0x145   :  { %7370 = dma.done.wait [#allocation18], 1040  }
 0x146   :  { %7371 = vsyncadd [#allocation18], 4294966256 }
 0x147   :  { %7372 = dma.done.wait [#allocation21], 144  }
 0x148   :  { %7373 = vsyncadd [#allocation21], 4294967152 }
 0x149   :  { %7374 = dma.done.wait [#allocation24], 528  }
 0x14a   :  { %7375 = vsyncadd [#allocation24], 4294966768 }
 0x14b   :  { %7376 = dma.done.wait [#allocation27], 7280  }
 0x14c   :  { %7377 = vsyncadd [#allocation27], 4294960016  ;;  %v6787_v0 = vld [vmem:[#allocation5 + $0x40] sm:$0xff]   ;;  %v6791_v4 = vld [vmem:[#allocation5 + $0x48] sm:$0xff]   ;;  %vm1010_vm0 = vcmask 130048   ;;  %vm2391_vm1 = vcmask 1045504  }
 0x14d   :  { %v6788_v1 = vld [vmem:[#allocation5] sm:$0xff]   ;;  %5932 = vmatprep.subr.bf16.mxu0 %v6787_v0  ;;  %v6792_v5 = vld [vmem:[#allocation5 + $0x8] sm:$0xff]   ;;  %v6795_v8 = vld [vmem:[#allocation5 + $0x50] sm:$0xff]   ;;  %vm2070_vm2 = vcmask 523264   ;;  %vm2342_vm3 = vcmask 97280   ;;  %vm2556_vm4 = vcmask 15360  }
 0x14e   :  { %v6789_v2 = vld [vmem:[#allocation5 + $0xc0] sm:$0xff]   ;;  %5933 = vmatpush3.bf16.msra.mxu0 %v6788_v1  ;;  %v6793_v6 = vld [vmem:[#allocation5 + $0xc8] sm:$0xff]   ;;  %v6796_v9 = vld [vmem:[#allocation5 + $0x10] sm:$0xff]   ;;  %s7406_s16 = smov [#allocation30]   ;;  %vm5291_vm5 = vcmask 125952  }
 0x14f   :  { %v6790_v3 = vld [vmem:[#allocation5 + $0x80] sm:$0xff]   ;;  %6044 = vmatprep.subr.bf16.mxu1 %v6789_v2  ;;  %5934 = vmatprep.subr.bf16.mxu0 %v6791_v4  ;;  %v6794_v7 = vld [vmem:[#allocation5 + $0x88] sm:$0xff]   ;;  %v6797_v10 = vld [vmem:[#allocation5 + $0xd0] sm:$0xff]   ;;  %s5434_s10 = sshll.u32 %s7406_s16, 4  ;;  %s5435_s10 = int_to_ptr.vmem [resolvable:$true] %s5434_s10 }
 0x150   :  { %6045 = vmatpush3.bf16.msra.mxu1 %v6790_v3  ;;  %v6798_v11 = vld [vmem:[#allocation5 + $0x90] sm:$0xff]   ;;  %v6799_v12 = vld [vmem:[#allocation5 + $0x58] sm:$0xff]   ;;  %v6803_v16 = vld [vmem:[#allocation5 + $0x60] sm:$0xff]   ;;  %s7316_s26 = scalar_lea.vmem %s5435_s10, 4096  ;;  %p7321_p11 = scmp.lt.s32.totalorder %s5435_s10, %s5435_s10 }
 0x151   :  { %6046 = vmatprep.subr.bf16.mxu1 %v6793_v6  ;;  %v6800_v13 = vld [vmem:[#allocation5 + $0x18] sm:$0xff]   ;;  %v6804_v17 = vld [vmem:[#allocation5 + $0x20] sm:$0xff]   ;;  %v6807_v20 = vld [vmem:[#allocation5 + $0x68] sm:$0xff]   ;;  %p7317_p10 = scmp.ne.s32.totalorder %s5435_s10, %s7316_s26  ;;  %p7322_p12 = scmp.lt.s32.totalorder %s7316_s26, %s7316_s26 }
 0x152   :  { %5935 = vmatpush3.bf16.msra.mxu0 %v6792_v5  ;;  %v6801_v14 = vld [vmem:[#allocation5 + $0xd8] sm:$0xff]   ;;  %v6805_v18 = vld [vmem:[#allocation5 + $0xe0] sm:$0xff]   ;;  %v6808_v21 = vld [vmem:[#allocation5 + $0x28] sm:$0xff]  }
 0x153   :  { %5936 = vmatprep.subr.bf16.mxu0 %v6795_v8  ;;  %v6802_v15 = vld [vmem:[#allocation5 + $0x98] sm:$0xff]   ;;  %v6806_v19 = vld [vmem:[#allocation5 + $0xa0] sm:$0xff]   ;;  %v6809_v22 = vld [vmem:[#allocation5 + $0xe8] sm:$0xff]   ;;  %p7323_p13 = por %p7322_p12, %p7321_p11 }
 0x154   :  { %6047 = vmatpush3.bf16.msra.mxu1 %v6794_v7  ;;  %v6810_v23 = vld [vmem:[#allocation5 + $0xa8] sm:$0xff]   ;;  %v6811_v24 = vld [vmem:[#allocation5 + $0x70] sm:$0xff]   ;;  %v6815_v28 = vld [vmem:[#allocation5 + $0x78] sm:$0xff]  }
 0x155   :  { %6048 = vmatprep.subr.bf16.mxu1 %v6797_v10  ;;  %v6812_v25 = vld [vmem:[#allocation5 + $0x30] sm:$0xff]   ;;  %v6816_v29 = vld [vmem:[#allocation5 + $0x38] sm:$0xff]   ;;  %v276_v31 = vld [vmem:[#allocation2 + $0x8] sm:$0xff]  ;;  %p7324_p0 = pnand %p7323_p13, %p7317_p10 }
 0x156   :  { %5937 = vmatpush3.bf16.msra.mxu0 %v6796_v9  ;;  %v6813_v26 = vld [vmem:[#allocation5 + $0xf0] sm:$0xff]   ;;  %v6817_v30 = vld [vmem:[#allocation5 + $0xf8] sm:$0xff]   ;;  %v283_v32 = vld [vmem:[#allocation2 + $0x40] sm:$0xff] }
 0x157   :  { %5938 = vmatprep.subr.bf16.mxu0 %v6799_v12  ;;  %v6814_v27 = vld [vmem:[#allocation5 + $0xb0] sm:$0xff]   ;;  %v500_v33 = vpack.c.bf16 %v283_v32, %v276_v31  ;;  %v6818_v34 = vld [vmem:[#allocation5 + $0xb8] sm:$0xff]   ;;  %v275_v35 = vld [vmem:[#allocation2] sm:$0xff] }
 0x158   :  { %6049 = vmatpush3.bf16.msra.mxu1 %v6798_v11  ;;  %v282_v36 = vld [vmem:[#allocation2 + $0x38] sm:$0xff]  ;;  %v6819_v38 = vld [vmem:[#allocation5 + $0x140] sm:$0xff]   ;;  %v285_v40 = vld [vmem:[#allocation2 + $0x50] sm:$0xff] }
 0x159   :  { %6050 = vmatprep.subr.bf16.mxu1 %v6801_v14  ;;  %1091 = vmatprep.mubr.bf16.mxu0 %v500_v33  ;;  %v499_v37 = vpack.c.bf16 %v282_v36, %v275_v35  ;;  %v278_v39 = vld [vmem:[#allocation2 + $0x18] sm:$0xff]  ;;  %v6820_v42 = vld [vmem:[#allocation5 + $0x100] sm:$0xff]   ;;  %v277_v43 = vld [vmem:[#allocation2 + $0x10] sm:$0xff] }
 0x15a   :  { %5939 = vmatpush3.bf16.msra.mxu0 %v6800_v13  ;;  %v502_v41 = vpack.c.bf16 %v285_v40, %v278_v39  ;;  %v284_v44 = vld [vmem:[#allocation2 + $0x48] sm:$0xff]  ;;  %v290_v45 = vld [vmem:[#allocation2 + $0x78] sm:$0xff]  ;;  %v297_v47 = vld [vmem:[#allocation2 + $0xb0] sm:$0xff] }
 0x15b   :  { %5940 = vmatprep.subr.bf16.mxu0 %v6803_v16  ;;  %v501_v46 = vpack.c.bf16 %v284_v44, %v277_v43  ;;  %v289_v48 = vld [vmem:[#allocation2 + $0x70] sm:$0xff]  ;;  %v296_v49 = vld [vmem:[#allocation2 + $0xa8] sm:$0xff]  ;;  %v507_v50 = vpack.c.bf16 %v297_v47, %v290_v45  ;;  %v299_v52 = vld [vmem:[#allocation2 + $0xc0] sm:$0xff] }
 0x15c   :  { %6051 = vmatpush3.bf16.msra.mxu1 %v6802_v15  ;;  %1252 = vmatprep.mubr.bf16.mxu1 %v502_v41  ;;  %v292_v51 = vld [vmem:[#allocation2 + $0x88] sm:$0xff]  ;;  %v291_v53 = vld [vmem:[#allocation2 + $0x80] sm:$0xff]  ;;  %v298_v55 = vld [vmem:[#allocation2 + $0xb8] sm:$0xff]  ;;  %v506_v56 = vpack.c.bf16 %v296_v49, %v289_v48 }
 0x15d   :  { %6052 = vmatprep.subr.bf16.mxu1 %v6805_v18  ;;  %v509_v54 = vpack.c.bf16 %v299_v52, %v292_v51  ;;  %v6821_v57 = vld [vmem:[#allocation5 + $0x180] sm:$0xff]   ;;  %v304_v58 = vld [vmem:[#allocation2 + $0xe8] sm:$0xff]  ;;  %v306_v62 = vld [vmem:[#allocation2 + $0xf8] sm:$0xff]  ;;  %v508_v63 = vpack.c.bf16 %v298_v55, %v291_v53 }
 0x15e   :  { %5941 = vmatpush3.bf16.msra.mxu0 %v6804_v17  ;;  %v311_v59 = vld [vmem:[#allocation2 + $0x120] sm:$0xff]  ;;  %v6822_v61 = vld [vmem:[#allocation5 + $0x148] sm:$0xff]   ;;  %v313_v0 = vld [vmem:[#allocation2 + $0x130] sm:$0xff] }
 0x15f   :  { %5942 = vmatprep.subr.bf16.mxu0 %v6807_v20  ;;  %v514_v60 = vpack.c.bf16 %v311_v59, %v304_v58  ;;  %v516_v1 = vpack.c.bf16 %v313_v0, %v306_v62  ;;  %v6823_v2 = vld [vmem:[#allocation5 + $0x108] sm:$0xff]   ;;  %v303_v3 = vld [vmem:[#allocation2 + $0xe0] sm:$0xff]  ;;  %v310_v4 = vld [vmem:[#allocation2 + $0x118] sm:$0xff] }
 0x160   :  { %6053 = vmatpush3.bf16.msra.mxu1 %v6806_v19  ;;  %v318_v5 = vld [vmem:[#allocation2 + $0x158] sm:$0xff]  ;;  %v325_v6 = vld [vmem:[#allocation2 + $0x190] sm:$0xff]  ;;  %v513_v8 = vpack.c.bf16 %v310_v4, %v303_v3  ;;  %v312_v9 = vld [vmem:[#allocation2 + $0x128] sm:$0xff] }
 0x161   :  { %6054 = vmatprep.subr.bf16.mxu1 %v6809_v22  ;;  %v305_v7 = vld [vmem:[#allocation2 + $0xf0] sm:$0xff]  ;;  %v320_v10 = vld [vmem:[#allocation2 + $0x168] sm:$0xff]  ;;  %v327_v11 = vld [vmem:[#allocation2 + $0x1a0] sm:$0xff]  ;;  %v521_v12 = vpack.c.bf16 %v325_v6, %v318_v5 }
 0x162   :  { %5943 = vmatpush3.bf16.msra.mxu0 %v6808_v21  ;;  %v6824_v13 = vld [vmem:[#allocation5 + $0x150] sm:$0xff]   ;;  %v515_v14 = vpack.c.bf16 %v312_v9, %v305_v7  ;;  %v523_v16 = vpack.c.bf16 %v327_v11, %v320_v10  ;;  %v324_v18 = vld [vmem:[#allocation2 + $0x188] sm:$0xff]  ;;  %v339_v20 = vld [vmem:[#allocation2 + $0x200] sm:$0xff] }
 0x163   :  { %5944 = vmatprep.subr.bf16.mxu0 %v6811_v24  ;;  %v6825_v15 = vld [vmem:[#allocation5 + $0x110] sm:$0xff]   ;;  %v332_v19 = vld [vmem:[#allocation2 + $0x1c8] sm:$0xff]  ;;  %v319_v21 = vld [vmem:[#allocation2 + $0x160] sm:$0xff] }
 0x164   :  { %6055 = vmatpush3.bf16.msra.mxu1 %v6810_v23  ;;  %v317_v17 = vld [vmem:[#allocation2 + $0x150] sm:$0xff]  ;;  %v326_v23 = vld [vmem:[#allocation2 + $0x198] sm:$0xff]  ;;  %v528_v24 = vpack.c.bf16 %v339_v20, %v332_v19  ;;  %v331_v31 = vld [vmem:[#allocation2 + $0x1c0] sm:$0xff] }
 0x165   :  { %6056 = vmatprep.subr.bf16.mxu1 %v6813_v26  ;;  %v520_v22 = vpack.c.bf16 %v324_v18, %v317_v17  ;;  %v341_v26 = vld [vmem:[#allocation2 + $0x210] sm:$0xff]  ;;  %v338_v32 = vld [vmem:[#allocation2 + $0x1f8] sm:$0xff]  ;;  %v340_v36 = vld [vmem:[#allocation2 + $0x208] sm:$0xff] }
 0x166   :  { %5945 = vmatpush3.bf16.msra.mxu0 %v6812_v25  ;;  %v334_v25 = vld [vmem:[#allocation2 + $0x1d8] sm:$0xff]  ;;  %v333_v35 = vld [vmem:[#allocation2 + $0x1d0] sm:$0xff]  ;;  %v6828_v39 = vld [vmem:[#allocation5 + $0x160] sm:$0xff]  }
 0x167   :  { %5946 = vmatprep.subr.bf16.mxu0 %v6815_v28  ;;  %v6827_v28 = vld [vmem:[#allocation5 + $0x118] sm:$0xff]   ;;  %v355_v41 = vld [vmem:[#allocation2 + $0x280] sm:$0xff]  ;;  %v529_v43 = vpack.c.bf16 %v340_v36, %v333_v35  ;;  %v345_v45 = vld [vmem:[#allocation2 + $0x230] sm:$0xff] }
 0x168   :  { %6057 = vmatpush3.bf16.msra.mxu1 %v6814_v27  ;;  %v6826_v27 = vld [vmem:[#allocation5 + $0x158] sm:$0xff]   ;;  %v347_v47 = vld [vmem:[#allocation2 + $0x240] sm:$0xff]  ;;  %v360_v48 = vld [vmem:[#allocation2 + $0x2a8] sm:$0xff] }
 0x169   :  { %6058 = vmatprep.subr.bf16.mxu1 %v6817_v30  ;;  %v530_v30 = vpack.c.bf16 %v341_v26, %v334_v25  ;;  %v346_v33 = vld [vmem:[#allocation2 + $0x238] sm:$0xff]  ;;  %v367_v49 = vld [vmem:[#allocation2 + $0x2e0] sm:$0xff]  ;;  %v369_v55 = vld [vmem:[#allocation2 + $0x2f0] sm:$0xff] }
 0x16a   :  { %5947 = vmatpush3.bf16.msra.mxu0 %v6816_v29  ;;  %v522_v29 = vpack.c.bf16 %v326_v23, %v319_v21  ;;  %v354_v52 = vld [vmem:[#allocation2 + $0x278] sm:$0xff]  ;;  %v359_v59 = vld [vmem:[#allocation2 + $0x2a0] sm:$0xff]  ;;  %v381_v62 = vld [vmem:[#allocation2 + $0x350] sm:$0xff] }
 0x16b   :  { %6156 = vmatprep.subr.bf16.mxu0 %v6819_v38  ;;  %v348_v38 = vld [vmem:[#allocation2 + $0x248] sm:$0xff]  ;;  %v362_v53 = vld [vmem:[#allocation2 + $0x2b8] sm:$0xff]  ;;  %v6833_v3 = vld [vmem:[#allocation5 + $0x130] sm:$0xff]  }
 0x16c   :  { %6059 = vmatpush3.bf16.msra.mxu1 %v6818_v34  ;;  %v353_v34 = vld [vmem:[#allocation2 + $0x270] sm:$0xff]  ;;  %v537_v44 = vpack.c.bf16 %v355_v41, %v348_v38  ;;  %v544_v58 = vpack.c.bf16 %v369_v55, %v362_v53  ;;  %v368_v0 = vld [vmem:[#allocation2 + $0x2e8] sm:$0xff]  ;;  %v383_v6 = vld [vmem:[#allocation2 + $0x360] sm:$0xff] }
 0x16d   :  { %1092 = vmatmul.mubr.bf16.vlgmr.msra.gmra.mrb[0].mxu0 %v499_v37  ;;  %6431 = vmatprep.subr.bf16.mxu1 %v6821_v57  ;;  %v527_v37 = vpack.c.bf16 %v338_v32, %v331_v31  ;;  %v535_v40 = vpack.c.bf16 %v353_v34, %v346_v33  ;;  %v376_v5 = vld [vmem:[#allocation2 + $0x328] sm:$0xff]  ;;  %v6835_v17 = vld [vmem:[#allocation5 + $0x138] sm:$0xff]   ;;  %v397_v20 = vld [vmem:[#allocation2 + $0x3d0] sm:$0xff] }
 0x16e   :  { %6157 = vmatpush3.bf16.msra.mxu0 %v6820_v42  ;;  %1099 = vmatprep.mubr.bf16.mxu0 %v507_v50  ;;  %v6829_v42 = vld [vmem:[#allocation5 + $0x120] sm:$0xff]   ;;  %v6830_v50 = vld [vmem:[#allocation5 + $0x168] sm:$0xff]   ;;  %v551_v9 = vpack.c.bf16 %v383_v6, %v376_v5  ;;  %v390_v19 = vld [vmem:[#allocation2 + $0x398] sm:$0xff] }
 0x16f   :  { %1253 = vmatmul.mubr.bf16.vlgmr.msra.gmra.mrb[0].mxu1 %v501_v46  ;;  %6158 = vmatprep.subr.bf16.mxu0 %v6822_v61  ;;  %v352_v46 = vld [vmem:[#allocation2 + $0x268] sm:$0xff]  ;;  %v374_v61 = vld [vmem:[#allocation2 + $0x318] sm:$0xff]  ;;  %v387_v23 = vld [vmem:[#allocation2 + $0x380] sm:$0xff] }
 0x170   :  { %1260 = vmatprep.mubr.bf16.mxu1 %v509_v54  ;;  %6432 = vmatpush3.bf16.msra.mxu1 %v6821_v57  ;;  %v534_v51 = vpack.c.bf16 %v352_v46, %v345_v45  ;;  %v542_v54 = vpack.c.bf16 %v367_v49, %v360_v48  ;;  %v536_v57 = vpack.c.bf16 %v354_v52, %v347_v47  ;;  %v380_v10 = vld [vmem:[#allocation2 + $0x348] sm:$0xff]  ;;  %v402_v25 = vld [vmem:[#allocation2 + $0x3f8] sm:$0xff]  ;;  %v409_v26 = vld [vmem:[#allocation2 + $0x430] sm:$0xff] }
 0x171   :  { %v549_v4 = vpack.c.bf16 %v381_v62, %v374_v61  ;;  %v388_v11 = vld [vmem:[#allocation2 + $0x388] sm:$0xff]  ;;  %v411_v32 = vld [vmem:[#allocation2 + $0x440] sm:$0xff]  ;;  %v401_v35 = vld [vmem:[#allocation2 + $0x3f0] sm:$0xff] }
 0x172   :  { %6159 = vmatpush3.bf16.msra.mxu0 %v6823_v2  ;;  %v404_v31 = vld [vmem:[#allocation2 + $0x408] sm:$0xff]  ;;  %v423_v38 = vld [vmem:[#allocation2 + $0x4a0] sm:$0xff]  ;;  %v410_v41 = vld [vmem:[#allocation2 + $0x438] sm:$0xff] }
 0x173   :  { %6160 = vmatprep.subr.bf16.mxu0 %v6824_v13  ;;  %v6834_v13 = vld [vmem:[#allocation5 + $0x178] sm:$0xff]   ;;  %v565_v34 = vpack.c.bf16 %v411_v32, %v404_v31  ;;  %v408_v36 = vld [vmem:[#allocation2 + $0x428] sm:$0xff]  ;;  %v415_v47 = vld [vmem:[#allocation2 + $0x460] sm:$0xff] }
 0x174   :  { %v422_v48 = vld [vmem:[#allocation2 + $0x498] sm:$0xff]  ;;  %v424_v53 = vld [vmem:[#allocation2 + $0x4a8] sm:$0xff]  ;;  %v439_v55 = vld [vmem:[#allocation2 + $0x520] sm:$0xff] }
 0x175   :  { %1100 = vmatmul.mubr.bf16.gmra.mrb[4].mxu0 %v506_v56  ;;  %v6831_v56 = vld [vmem:[#allocation5 + $0x128] sm:$0xff]   ;;  %v430_v49 = vld [vmem:[#allocation2 + $0x4d8] sm:$0xff]  ;;  %v569_v52 = vpack.c.bf16 %v422_v48, %v415_v47  ;;  %v431_v61 = vld [vmem:[#allocation2 + $0x4e0] sm:$0xff] }
 0x176   :  { %1107 = vmatprep.mubr.bf16.mxu0 %v514_v60  ;;  %6161 = vmatpush3.bf16.msra.mxu0 %v6825_v15  ;;  %v366_v60 = vld [vmem:[#allocation2 + $0x2d8] sm:$0xff]  ;;  %v375_v15 = vld [vmem:[#allocation2 + $0x320] sm:$0xff]  ;;  %v444_v62 = vld [vmem:[#allocation2 + $0x548] sm:$0xff] }
 0x177   :  { %1261 = vmatmul.mubr.bf16.gmra.mrb[4].mxu1 %v508_v63  ;;  %6162 = vmatprep.subr.bf16.mxu0 %v6826_v27  ;;  %v361_v63 = vld [vmem:[#allocation2 + $0x2b0] sm:$0xff]  ;;  %v541_v2 = vpack.c.bf16 %v366_v60, %v359_v59  ;;  %v436_v60 = vld [vmem:[#allocation2 + $0x508] sm:$0xff]  ;;  %v443_v6 = vld [vmem:[#allocation2 + $0x540] sm:$0xff] }
 0x178   :  { %1268 = vmatprep.mubr.bf16.mxu1 %v516_v1  ;;  %v6832_v1 = vld [vmem:[#allocation5 + $0x170] sm:$0xff]   ;;  %v543_v7 = vpack.c.bf16 %v368_v0, %v361_v63  ;;  %v451_v63 = vld [vmem:[#allocation2 + $0x580] sm:$0xff]  ;;  %v438_v0 = vld [vmem:[#allocation2 + $0x518] sm:$0xff] }
 0x179   :  { %v429_v59 = vld [vmem:[#allocation2 + $0x4d0] sm:$0xff]  ;;  %v578_v5 = vpack.c.bf16 %v438_v0, %v431_v61  ;;  %v478_v31 = vld [vmem:[#allocation2 + $0x658] sm:$0xff]  ;;  %v280_v47 = vld [vmem:[#allocation2 + $0x28] sm:$0xff] }
 0x17a   :  { %6163 = vmatpush3.bf16.msra.mxu0 %v6827_v28  ;;  %v389_v28 = vld [vmem:[#allocation2 + $0x390] sm:$0xff]  ;;  %v287_v48 = vld [vmem:[#allocation2 + $0x60] sm:$0xff] }
 0x17b   :  { %6164 = vmatprep.subr.bf16.mxu0 %v6828_v39  ;;  %v562_v39 = vpack.c.bf16 %v408_v36, %v401_v35  ;;  %v473_v35 = vld [vmem:[#allocation2 + $0x630] sm:$0xff]  ;;  %v480_v36 = vld [vmem:[#allocation2 + $0x668] sm:$0xff] }
 0x17c   :  { %v309_v61 = vld [vmem:[#allocation2 + $0x110] sm:$0xff] }
 0x17d   :  { %1108 = vmatmul.mubr.bf16.gmra.mrb[8].mxu0 %v513_v8  ;;  %v373_v8 = vld [vmem:[#allocation2 + $0x310] sm:$0xff] }
 0x17e   :  { %1115 = vmatprep.mubr.bf16.mxu0 %v521_v12  ;;  %6165 = vmatpush3.bf16.msra.mxu0 %v6829_v42  ;;  %v395_v12 = vld [vmem:[#allocation2 + $0x3c0] sm:$0xff] }
 0x17f   :  { %1269 = vmatmul.mubr.bf16.gmra.mrb[8].mxu1 %v515_v14  ;;  %6166 = vmatprep.subr.bf16.mxu0 %v6830_v50  ;;  %v548_v14 = vpack.c.bf16 %v380_v10, %v373_v8  ;;  %v556_v18 = vpack.c.bf16 %v395_v12, %v388_v11  ;;  %v437_v50 = vld [vmem:[#allocation2 + $0x510] sm:$0xff]  ;;  %v452_v12 = vld [vmem:[#allocation2 + $0x588] sm:$0xff] }
 0x180   :  { %1276 = vmatprep.mubr.bf16.mxu1 %v523_v16  ;;  %v382_v16 = vld [vmem:[#allocation2 + $0x358] sm:$0xff]  ;;  %v465_v10 = vld [vmem:[#allocation2 + $0x5f0] sm:$0xff] }
 0x181   :  { %v550_v21 = vpack.c.bf16 %v382_v16, %v375_v15  ;;  %v445_v11 = vld [vmem:[#allocation2 + $0x550] sm:$0xff]  ;;  %v460_v15 = vld [vmem:[#allocation2 + $0x5c8] sm:$0xff]  ;;  %v467_v16 = vld [vmem:[#allocation2 + $0x600] sm:$0xff] }
 0x182   :  { %6167 = vmatpush3.bf16.msra.mxu0 %v6831_v56  ;;  %v577_v56 = vpack.c.bf16 %v437_v50, %v430_v49  ;;  %v504_v50 = vpack.c.bf16 %v287_v48, %v280_v47  ;;  %v421_v47 = vld [vmem:[#allocation2 + $0x490] sm:$0xff]  ;;  %v428_v48 = vld [vmem:[#allocation2 + $0x4c8] sm:$0xff] }
 0x183   :  { %6168 = vmatprep.subr.bf16.mxu0 %v6832_v1  ;;  %v576_v1 = vpack.c.bf16 %v436_v60, %v429_v59  ;;  %v295_v59 = vld [vmem:[#allocation2 + $0xa0] sm:$0xff]  ;;  %v302_v60 = vld [vmem:[#allocation2 + $0xd8] sm:$0xff] }
 0x185   :  { %1116 = vmatmul.mubr.bf16.gmra.mrb[12].mxu0 %v520_v22  ;;  %v558_v22 = vpack.c.bf16 %v397_v20, %v390_v19  ;;  %v457_v19 = vld [vmem:[#allocation2 + $0x5b0] sm:$0xff]  ;;  %v464_v20 = vld [vmem:[#allocation2 + $0x5e8] sm:$0xff] }
 0x186   :  { %1123 = vmatprep.mubr.bf16.mxu0 %v528_v24  ;;  %6169 = vmatpush3.bf16.msra.mxu0 %v6833_v3  ;;  %v394_v24 = vld [vmem:[#allocation2 + $0x3b8] sm:$0xff] }
 0x187   :  { %1277 = vmatmul.mubr.bf16.gmra.mrb[12].mxu1 %v522_v29  ;;  %6170 = vmatprep.subr.bf16.mxu0 %v6834_v13  ;;  %v555_v27 = vpack.c.bf16 %v394_v24, %v387_v23  ;;  %v396_v29 = vld [vmem:[#allocation2 + $0x3c8] sm:$0xff]  ;;  %v446_v3 = vld [vmem:[#allocation2 + $0x558] sm:$0xff]  ;;  %v479_v24 = vld [vmem:[#allocation2 + $0x660] sm:$0xff] }
 0x188   :  { %1284 = vmatprep.mubr.bf16.mxu1 %v530_v30  ;;  %v563_v30 = vpack.c.bf16 %v409_v26, %v402_v25  ;;  %v557_v33 = vpack.c.bf16 %v396_v29, %v389_v28  ;;  %v472_v23 = vld [vmem:[#allocation2 + $0x628] sm:$0xff]  ;;  %v590_v25 = vpack.c.bf16 %v464_v20, %v457_v19  ;;  %v481_v28 = vld [vmem:[#allocation2 + $0x670] sm:$0xff]  ;;  %v351_v20 = vld [vmem:[#allocation2 + $0x260] sm:$0xff] }
 0x189   :  { %v598_v26 = vpack.c.bf16 %v479_v24, %v472_v23  ;;  %v365_v23 = vld [vmem:[#allocation2 + $0x2d0] sm:$0xff]  ;;  %v372_v24 = vld [vmem:[#allocation2 + $0x308] sm:$0xff] }
 0x18a   :  { %6171 = vmatpush3.bf16.msra.mxu0 %v6835_v17  ;;  %v585_v17 = vpack.c.bf16 %v452_v12, %v445_v11  ;;  %v337_v11 = vld [vmem:[#allocation2 + $0x1f0] sm:$0xff]  ;;  %v344_v12 = vld [vmem:[#allocation2 + $0x228] sm:$0xff] }
 0x18d   :  { %1124 = vmatmul.mubr.bf16.gmra.mrb[16].mxu0 %v527_v37  ;;  %v416_v37 = vld [vmem:[#allocation2 + $0x468] sm:$0xff] }
 0x18e   :  { %1131 = vmatprep.mubr.bf16.mxu0 %v535_v40  ;;  %v403_v40 = vld [vmem:[#allocation2 + $0x400] sm:$0xff]  ;;  %v570_v42 = vpack.c.bf16 %v423_v38, %v416_v37 }
 0x18f   :  { %1285 = vmatmul.mubr.bf16.gmra.mrb[16].mxu1 %v529_v43  ;;  %v418_v43 = vld [vmem:[#allocation2 + $0x478] sm:$0xff]  ;;  %v564_v45 = vpack.c.bf16 %v410_v41, %v403_v40  ;;  %v495_v40 = vld [vmem:[#allocation2 + $0x6e0] sm:$0xff]  ;;  %v599_v41 = vpack.c.bf16 %v480_v36, %v473_v35  ;;  %v393_v35 = vld [vmem:[#allocation2 + $0x3b0] sm:$0xff] }
 0x190   :  { %1292 = vmatprep.mubr.bf16.mxu1 %v537_v44  ;;  %v425_v44 = vld [vmem:[#allocation2 + $0x4b0] sm:$0xff]  ;;  %v400_v36 = vld [vmem:[#allocation2 + $0x3e8] sm:$0xff] }
 0x191   :  { %v572_v46 = vpack.c.bf16 %v425_v44, %v418_v43  ;;  %v485_v43 = vld [vmem:[#allocation2 + $0x690] sm:$0xff]  ;;  %v492_v44 = vld [vmem:[#allocation2 + $0x6c8] sm:$0xff] }
 0x192   :  { %v604_v49 = vpack.c.bf16 %v492_v44, %v485_v43  ;;  %v407_v44 = vld [vmem:[#allocation2 + $0x420] sm:$0xff] }
 0x195   :  { %1132 = vmatmul.mubr.bf16.gmra.mrb[20].mxu0 %v534_v51  ;;  %v417_v51 = vld [vmem:[#allocation2 + $0x470] sm:$0xff] }
 0x196   :  { %1139 = vmatprep.mubr.bf16.mxu0 %v542_v54  ;;  %v432_v54 = vld [vmem:[#allocation2 + $0x4e8] sm:$0xff] }
 0x197   :  { %1293 = vmatmul.mubr.bf16.gmra.mrb[20].mxu1 %v536_v57  ;;  %v571_v57 = vpack.c.bf16 %v424_v53, %v417_v51  ;;  %v281_v51 = vld [vmem:[#allocation2 + $0x30] sm:$0xff] }
 0x198   :  { %1300 = vmatprep.mubr.bf16.mxu1 %v544_v58  ;;  %v579_v58 = vpack.c.bf16 %v439_v55, %v432_v54  ;;  %v279_v54 = vld [vmem:[#allocation2 + $0x20] sm:$0xff]  ;;  %v286_v55 = vld [vmem:[#allocation2 + $0x58] sm:$0xff] }
 0x19d   :  { %1140 = vmatmul.mubr.bf16.gmra.mrb[24].mxu0 %v541_v2  ;;  %v584_v2 = vpack.c.bf16 %v451_v63, %v444_v62  ;;  %v316_v62 = vld [vmem:[#allocation2 + $0x148] sm:$0xff]  ;;  %v503_v63 = vpack.c.bf16 %v286_v55, %v279_v54  ;;  %v371_v54 = vld [vmem:[#allocation2 + $0x300] sm:$0xff] }
 0x19e   :  { %1147 = vmatprep.mubr.bf16.mxu0 %v549_v4  ;;  %v453_v4 = vld [vmem:[#allocation2 + $0x590] sm:$0xff] }
 0x19f   :  { %1301 = vmatmul.mubr.bf16.gmra.mrb[24].mxu1 %v543_v7  ;;  %v450_v7 = vld [vmem:[#allocation2 + $0x578] sm:$0xff]  ;;  %v586_v8 = vpack.c.bf16 %v453_v4, %v446_v3  ;;  %v293_v3 = vld [vmem:[#allocation2 + $0x90] sm:$0xff]  ;;  %v300_v4 = vld [vmem:[#allocation2 + $0xc8] sm:$0xff] }
 0x1a0   :  { %1308 = vmatprep.mubr.bf16.mxu1 %v551_v9  ;;  %v458_v9 = vld [vmem:[#allocation2 + $0x5b8] sm:$0xff]  ;;  %v583_v13 = vpack.c.bf16 %v450_v7, %v443_v6  ;;  %v315_v6 = vld [vmem:[#allocation2 + $0x140] sm:$0xff]  ;;  %v510_v7 = vpack.c.bf16 %v300_v4, %v293_v3  ;;  %v6836_v3 = vld [vmem:[#allocation8] sm:$0xff]  }
 0x1a1   :  { %6465 = vmatprep.subr.bf16.mxu1 %v6836_v3 }
 0x1a5   :  { %1148 = vmatmul.mubr.bf16.gmra.mrb[28].mxu0 %v548_v14  ;;  %v591_v14 = vpack.c.bf16 %v465_v10, %v458_v9  ;;  %v330_v9 = vld [vmem:[#allocation2 + $0x1b8] sm:$0xff] }
 0x1a6   :  { %1155 = vmatprep.mubr.bf16.mxu0 %v556_v18  ;;  %v593_v18 = vpack.c.bf16 %v467_v16, %v460_v15  ;;  %v307_v15 = vld [vmem:[#allocation2 + $0x100] sm:$0xff]  ;;  %v314_v16 = vld [vmem:[#allocation2 + $0x138] sm:$0xff] }
 0x1a7   :  { %1309 = vmatmul.mubr.bf16.gmra.mrb[28].mxu1 %v550_v21  ;;  %v459_v21 = vld [vmem:[#allocation2 + $0x5c0] sm:$0xff]  ;;  %v517_v19 = vpack.c.bf16 %v314_v16, %v307_v15  ;;  %v6837_v16 = vld [vmem:[#allocation8 + $0x8] sm:$0xff]  }
 0x1a8   :  { %1316 = vmatprep.mubr.bf16.mxu1 %v558_v22  ;;  %v466_v22 = vld [vmem:[#allocation2 + $0x5f8] sm:$0xff]  ;;  %v399_v15 = vld [vmem:[#allocation2 + $0x3e0] sm:$0xff] }
 0x1a9   :  { %v592_v29 = vpack.c.bf16 %v466_v22, %v459_v21  ;;  %v358_v21 = vld [vmem:[#allocation2 + $0x298] sm:$0xff] }
 0x1ad   :  { %1156 = vmatmul.mubr.bf16.gmra.mrb[32].mxu0 %v555_v27  ;;  %v474_v27 = vld [vmem:[#allocation2 + $0x638] sm:$0xff] }
 0x1ae   :  { %1163 = vmatprep.mubr.bf16.mxu0 %v563_v30  ;;  %v471_v30 = vld [vmem:[#allocation2 + $0x620] sm:$0xff]  ;;  %v600_v32 = vpack.c.bf16 %v481_v28, %v474_v27  ;;  %v321_v27 = vld [vmem:[#allocation2 + $0x170] sm:$0xff]  ;;  %v328_v28 = vld [vmem:[#allocation2 + $0x1a8] sm:$0xff] }
 0x1af   :  { %1317 = vmatmul.mubr.bf16.gmra.mrb[32].mxu1 %v557_v33  ;;  %v486_v33 = vld [vmem:[#allocation2 + $0x698] sm:$0xff]  ;;  %v597_v37 = vpack.c.bf16 %v478_v31, %v471_v30  ;;  %v343_v30 = vld [vmem:[#allocation2 + $0x220] sm:$0xff]  ;;  %v524_v31 = vpack.c.bf16 %v328_v28, %v321_v27 }
 0x1b0   :  { %1324 = vmatprep.mubr.bf16.mxu1 %v565_v34  ;;  %v493_v34 = vld [vmem:[#allocation2 + $0x6d0] sm:$0xff] }
 0x1b1   :  { %v605_v38 = vpack.c.bf16 %v493_v34, %v486_v33  ;;  %v386_v33 = vld [vmem:[#allocation2 + $0x378] sm:$0xff] }
 0x1b5   :  { %1164 = vmatmul.mubr.bf16.gmra.mrb[36].mxu0 %v562_v39  ;;  %v488_v39 = vld [vmem:[#allocation2 + $0x6a8] sm:$0xff] }
 0x1b6   :  { %1171 = vmatprep.mubr.bf16.mxu0 %v570_v42  ;;  %v607_v42 = vpack.c.bf16 %v495_v40, %v488_v39  ;;  %v335_v39 = vld [vmem:[#allocation2 + $0x1e0] sm:$0xff]  ;;  %v342_v40 = vld [vmem:[#allocation2 + $0x218] sm:$0xff] }
 0x1b7   :  { %1325 = vmatmul.mubr.bf16.gmra.mrb[36].mxu1 %v564_v45  ;;  %v487_v45 = vld [vmem:[#allocation2 + $0x6a0] sm:$0xff]  ;;  %v531_v43 = vpack.c.bf16 %v342_v40, %v335_v39  ;;  %v441_v39 = vld [vmem:[#allocation2 + $0x530] sm:$0xff] }
 0x1b8   :  { %1332 = vmatprep.mubr.bf16.mxu1 %v572_v46  ;;  %v494_v46 = vld [vmem:[#allocation2 + $0x6d8] sm:$0xff]  ;;  %v6840_v40 = vld [vmem:[#allocation8 + $0x20] sm:$0xff]  }
 0x1b9   :  { %v606_v53 = vpack.c.bf16 %v494_v46, %v487_v45  ;;  %v414_v45 = vld [vmem:[#allocation2 + $0x458] sm:$0xff] }
 0x1bd   :  { %1172 = vmatmul.mubr.bf16.gmra.mrb[40].mxu0 %v569_v52  ;;  %v288_v52 = vld [vmem:[#allocation2 + $0x68] sm:$0xff] }
 0x1be   :  { %1179 = vmatprep.mubr.bf16.mxu0 %v577_v56  ;;  %v505_v56 = vpack.c.bf16 %v288_v52, %v281_v51  ;;  %v349_v51 = vld [vmem:[#allocation2 + $0x250] sm:$0xff]  ;;  %v356_v52 = vld [vmem:[#allocation2 + $0x288] sm:$0xff] }
 0x1bf   :  { %1333 = vmatmul.mubr.bf16.gmra.mrb[40].mxu1 %v571_v57  ;;  %v294_v57 = vld [vmem:[#allocation2 + $0x98] sm:$0xff]  ;;  %v538_v55 = vpack.c.bf16 %v356_v52, %v349_v51 }
 0x1c0   :  { %1340 = vmatprep.mubr.bf16.mxu1 %v579_v58  ;;  %v301_v58 = vld [vmem:[#allocation2 + $0xd0] sm:$0xff] }
 0x1c1   :  { %v511_v0 = vpack.c.bf16 %v301_v58, %v294_v57  ;;  %v442_v57 = vld [vmem:[#allocation2 + $0x538] sm:$0xff] }
 0x1c5   :  { %1180 = vmatmul.mubr.bf16.gmra.mrb[44].mxu0 %v576_v1  ;;  %v512_v1 = vpack.c.bf16 %v302_v60, %v295_v59  ;;  %v449_v59 = vld [vmem:[#allocation2 + $0x570] sm:$0xff]  ;;  %v456_v60 = vld [vmem:[#allocation2 + $0x5a8] sm:$0xff] }
 0x1c6   :  { %1187 = vmatprep.mubr.bf16.mxu0 %v584_v2  ;;  %v519_v2 = vpack.c.bf16 %v316_v62, %v309_v61  ;;  %v589_v62 = vpack.c.bf16 %v456_v60, %v449_v59 }
 0x1c7   :  { %1341 = vmatmul.mubr.bf16.gmra.mrb[44].mxu1 %v578_v5  ;;  %v308_v5 = vld [vmem:[#allocation2 + $0x108] sm:$0xff] }
 0x1c8   :  { %1348 = vmatprep.mubr.bf16.mxu1 %v586_v8  ;;  %v323_v8 = vld [vmem:[#allocation2 + $0x180] sm:$0xff]  ;;  %v518_v10 = vpack.c.bf16 %v315_v6, %v308_v5  ;;  %v470_v6 = vld [vmem:[#allocation2 + $0x618] sm:$0xff] }
 0x1c9   :  { %v463_v5 = vld [vmem:[#allocation2 + $0x5e0] sm:$0xff] }
 0x1cd   :  { %1188 = vmatmul.mubr.bf16.gmra.mrb[48].mxu0 %v583_v13  ;;  %v526_v13 = vpack.c.bf16 %v330_v9, %v323_v8  ;;  %v477_v8 = vld [vmem:[#allocation2 + $0x650] sm:$0xff]  ;;  %v484_v9 = vld [vmem:[#allocation2 + $0x688] sm:$0xff] }
 0x1ce   :  { %1195 = vmatprep.mubr.bf16.mxu0 %v591_v14  ;;  %v533_v14 = vpack.c.bf16 %v344_v12, %v337_v11  ;;  %v603_v11 = vpack.c.bf16 %v484_v9, %v477_v8  ;;  %v377_v12 = vld [vmem:[#allocation2 + $0x330] sm:$0xff] }
 0x1cf   :  { %1349 = vmatmul.mubr.bf16.gmra.mrb[48].mxu1 %v585_v17  ;;  %v322_v17 = vld [vmem:[#allocation2 + $0x178] sm:$0xff] }
 0x1d0   :  { %1356 = vmatprep.mubr.bf16.mxu1 %v593_v18  ;;  %v329_v18 = vld [vmem:[#allocation2 + $0x1b0] sm:$0xff] }
 0x1d1   :  { %v525_v22 = vpack.c.bf16 %v329_v18, %v322_v17  ;;  %v491_v18 = vld [vmem:[#allocation2 + $0x6c0] sm:$0xff] }
 0x1d5   :  { %1196 = vmatmul.mubr.bf16.gmra.mrb[52].mxu0 %v590_v25  ;;  %v540_v25 = vpack.c.bf16 %v358_v21, %v351_v20 }
 0x1d6   :  { %1203 = vmatprep.mubr.bf16.mxu0 %v598_v26  ;;  %v547_v26 = vpack.c.bf16 %v372_v24, %v365_v23  ;;  %v398_v23 = vld [vmem:[#allocation2 + $0x3d8] sm:$0xff] }
 0x1d7   :  { %1357 = vmatmul.mubr.bf16.gmra.mrb[52].mxu1 %v592_v29  ;;  %v336_v29 = vld [vmem:[#allocation2 + $0x1e8] sm:$0xff]  ;;  %v406_v24 = vld [vmem:[#allocation2 + $0x418] sm:$0xff] }
 0x1d8   :  { %1364 = vmatprep.mubr.bf16.mxu1 %v600_v32  ;;  %v379_v32 = vld [vmem:[#allocation2 + $0x340] sm:$0xff]  ;;  %v532_v34 = vpack.c.bf16 %v343_v30, %v336_v29  ;;  %v405_v29 = vld [vmem:[#allocation2 + $0x410] sm:$0xff]  ;;  %v412_v30 = vld [vmem:[#allocation2 + $0x448] sm:$0xff] }
 0x1dd   :  { %1204 = vmatmul.mubr.bf16.gmra.mrb[56].mxu0 %v597_v37  ;;  %v554_v37 = vpack.c.bf16 %v386_v33, %v379_v32  ;;  %v427_v32 = vld [vmem:[#allocation2 + $0x4c0] sm:$0xff] }
 0x1de   :  { %1211 = vmatprep.mubr.bf16.mxu0 %v605_v38  ;;  %v561_v38 = vpack.c.bf16 %v400_v36, %v393_v35  ;;  %v6839_v33 = vld [vmem:[#allocation8 + $0x18] sm:$0xff]  }
 0x1df   :  { %1365 = vmatmul.mubr.bf16.gmra.mrb[56].mxu1 %v599_v41  ;;  %v350_v41 = vld [vmem:[#allocation2 + $0x258] sm:$0xff]  ;;  %v419_v36 = vld [vmem:[#allocation2 + $0x480] sm:$0xff] }
 0x1e0   :  { %1372 = vmatprep.mubr.bf16.mxu1 %v607_v42  ;;  %v357_v42 = vld [vmem:[#allocation2 + $0x290] sm:$0xff] }
 0x1e1   :  { %v539_v46 = vpack.c.bf16 %v357_v42, %v350_v41 }
 0x1e5   :  { %1212 = vmatmul.mubr.bf16.gmra.mrb[60].mxu0 %v604_v49  ;;  %v568_v49 = vpack.c.bf16 %v414_v45, %v407_v44  ;;  %v440_v44 = vld [vmem:[#allocation2 + $0x528] sm:$0xff] }
 0x1e6   :  { %1413 = vmatprep.mubr.bf16.mxu0 %v504_v50  ;;  %v575_v50 = vpack.c.bf16 %v428_v48, %v421_v47  ;;  %v448_v45 = vld [vmem:[#allocation2 + $0x568] sm:$0xff]  ;;  %v6841_v47 = vld [vmem:[#allocation8 + $0x28] sm:$0xff]  }
 0x1e7   :  { %1373 = vmatmul.mubr.bf16.gmra.mrb[60].mxu1 %v606_v53  ;;  %v364_v53 = vld [vmem:[#allocation2 + $0x2c8] sm:$0xff] }
 0x1e8   :  { %6433 = vmatprep.mubr.msk.bf16.mxu1 %vm1010_vm0, %v505_v56  ;;  %v435_v56 = vld [vmem:[#allocation2 + $0x500] sm:$0xff]  ;;  %v546_v58 = vpack.c.bf16 %v371_v54, %v364_v53 }
 0x1e9   :  { %v582_v61 = vpack.c.bf16 %v442_v57, %v435_v56 }
 0x1ed   :  { %1414 = vmatmul.mubr.bf16.vlgmr.msra.gmra.mrb[64].mxu0 %v503_v63  ;;  %v363_v63 = vld [vmem:[#allocation2 + $0x2c0] sm:$0xff] }
 0x1ee   :  { %1421 = vmatprep.mubr.bf16.mxu0 %v511_v0  ;;  %v370_v0 = vld [vmem:[#allocation2 + $0x2f8] sm:$0xff] }
 0x1ef   :  { %6434 = vmatmul.mubr.msk.bf16.vlgmr.msra.gmra.mrb[64].mxu1 %vm1010_vm0, %v512_v1  ;;  %v378_v1 = vld [vmem:[#allocation2 + $0x338] sm:$0xff]  ;;  %v545_v4 = vpack.c.bf16 %v370_v0, %v363_v63  ;;  %v447_v0 = vld [vmem:[#allocation2 + $0x560] sm:$0xff] }
 0x1f0   :  { %6437 = vmatprep.mubr.msk.bf16.mxu1 %vm1010_vm0, %v519_v2  ;;  %v385_v2 = vld [vmem:[#allocation2 + $0x370] sm:$0xff]  ;;  %6466 = vmatpush3.bf16.msra.mxu1 %v6836_v3  ;;  %v462_v3 = vld [vmem:[#allocation2 + $0x5d8] sm:$0xff] }
 0x1f1   :  { %6467 = vmatprep.subr.bf16.mxu1 %v6837_v16 }
 0x1f4   :  { %6468 = vmatpush3.bf16.msra.mxu1 %v6837_v16 }
 0x1f5   :  { %1422 = vmatmul.mubr.bf16.gmra.mrb[68].mxu0 %v510_v7  ;;  %v553_v7 = vpack.c.bf16 %v385_v2, %v378_v1  ;;  %v454_v1 = vld [vmem:[#allocation2 + $0x598] sm:$0xff] }
 0x1f6   :  { %1429 = vmatprep.mubr.bf16.mxu0 %v518_v10  ;;  %v596_v10 = vpack.c.bf16 %v470_v6, %v463_v5  ;;  %v587_v9 = vpack.c.bf16 %v454_v1, %v447_v0 }
 0x1f7   :  { %6438 = vmatmul.mubr.msk.bf16.gmra.mrb[68].mxu1 %vm1010_vm0, %v526_v13  ;;  %v384_v13 = vld [vmem:[#allocation2 + $0x368] sm:$0xff] }
 0x1f8   :  { %6441 = vmatprep.mubr.msk.bf16.mxu1 %vm1010_vm0, %v533_v14  ;;  %v392_v14 = vld [vmem:[#allocation2 + $0x3a8] sm:$0xff]  ;;  %v552_v17 = vpack.c.bf16 %v384_v13, %v377_v12 }
 0x1f9   :  { %v560_v20 = vpack.c.bf16 %v399_v15, %v392_v14 }
 0x1fd   :  { %1430 = vmatmul.mubr.bf16.gmra.mrb[72].mxu0 %v517_v19  ;;  %v498_v19 = vld [vmem:[#allocation2 + $0x6f8] sm:$0xff] }
 0x1fe   :  { %1437 = vmatprep.mubr.bf16.mxu0 %v525_v22  ;;  %v610_v21 = vpack.c.bf16 %v498_v19, %v491_v18  ;;  %v391_v22 = vld [vmem:[#allocation2 + $0x3a0] sm:$0xff] }
 0x1ff   :  { %6442 = vmatmul.mubr.msk.bf16.gmra.mrb[72].mxu1 %vm1010_vm0, %v540_v25  ;;  %v413_v25 = vld [vmem:[#allocation2 + $0x450] sm:$0xff]  ;;  %v559_v27 = vpack.c.bf16 %v398_v23, %v391_v22 }
 0x200   :  { %6445 = vmatprep.mubr.msk.bf16.mxu1 %vm1010_vm0, %v547_v26  ;;  %v6838_v26 = vld [vmem:[#allocation8 + $0x10] sm:$0xff]   ;;  %v567_v28 = vpack.c.bf16 %v413_v25, %v406_v24  ;;  %v461_v23 = vld [vmem:[#allocation2 + $0x5d0] sm:$0xff]  ;;  %v468_v24 = vld [vmem:[#allocation2 + $0x608] sm:$0xff] }
 0x201   :  { %6469 = vmatprep.subr.bf16.mxu1 %v6838_v26 }
 0x202   :  { %6470 = vmatpush3.bf16.msra.mxu1 %v6838_v26  ;;  %v476_v26 = vld [vmem:[#allocation2 + $0x648] sm:$0xff] }
 0x203   :  { %6471 = vmatprep.subr.bf16.mxu1 %v6839_v33 }
 0x205   :  { %1438 = vmatmul.mubr.bf16.gmra.mrb[76].mxu0 %v524_v31  ;;  %v420_v31 = vld [vmem:[#allocation2 + $0x488] sm:$0xff] }
 0x206   :  { %1445 = vmatprep.mubr.bf16.mxu0 %v532_v34  ;;  %v566_v34 = vpack.c.bf16 %v412_v30, %v405_v29  ;;  %v574_v35 = vpack.c.bf16 %v427_v32, %v420_v31  ;;  %6472 = vmatpush3.bf16.msra.mxu1 %v6839_v33  ;;  %v594_v31 = vpack.c.bf16 %v468_v24, %v461_v23  ;;  %v6843_v33 = vld [vmem:[#allocation8 + $0x38] sm:$0xff]  }
 0x207   :  { %6446 = vmatmul.mubr.msk.bf16.gmra.mrb[76].mxu1 %vm1010_vm0, %v554_v37  ;;  %v426_v37 = vld [vmem:[#allocation2 + $0x4b8] sm:$0xff]  ;;  %6473 = vmatprep.subr.bf16.mxu1 %v6840_v40 }
 0x208   :  { %6449 = vmatprep.mubr.msk.bf16.mxu1 %vm1010_vm0, %v561_v38  ;;  %v434_v38 = vld [vmem:[#allocation2 + $0x4f8] sm:$0xff]  ;;  %v573_v41 = vpack.c.bf16 %v426_v37, %v419_v36 }
 0x209   :  { %v581_v42 = vpack.c.bf16 %v441_v39, %v434_v38 }
 0x20a   :  { %6474 = vmatpush3.bf16.msra.mxu1 %v6840_v40 }
 0x20b   :  { %6475 = vmatprep.subr.bf16.mxu1 %v6841_v47 }
 0x20d   :  { %1446 = vmatmul.mubr.bf16.gmra.mrb[80].mxu0 %v531_v43  ;;  %v433_v43 = vld [vmem:[#allocation2 + $0x4f0] sm:$0xff] }
 0x20e   :  { %1453 = vmatprep.mubr.bf16.mxu0 %v539_v46  ;;  %v455_v46 = vld [vmem:[#allocation2 + $0x5a0] sm:$0xff]  ;;  %v580_v51 = vpack.c.bf16 %v440_v44, %v433_v43  ;;  %6476 = vmatpush3.bf16.msra.mxu1 %v6841_v47  ;;  %v482_v47 = vld [vmem:[#allocation2 + $0x678] sm:$0xff] }
 0x20f   :  { %6450 = vmatmul.mubr.msk.bf16.gmra.mrb[80].mxu1 %vm1010_vm0, %v568_v49  ;;  %v7749_v49 = vld [vmem:[#allocation7] ss:$0 sm:$0xff]  ;;  %v588_v54 = vpack.c.bf16 %v455_v46, %v448_v45  ;;  %v475_v46 = vld [vmem:[#allocation2 + $0x640] sm:$0xff] }
 0x210   :  { %6453 = vmatprep.mubr.msk.bf16.mxu1 %vm1010_vm0, %v575_v50 }
 0x215   :  { %1454 = vmatmul.mubr.bf16.gmra.mrb[84].mxu0 %v538_v55 }
 0x216   :  { %1461 = vmatprep.mubr.bf16.mxu0 %v546_v58 }
 0x217   :  { %6454 = vmatmul.mubr.msk.bf16.gmra.mrb[84].mxu1 %vm1010_vm0, %v582_v61 }
 0x218   :  { %6457 = vmatprep.mubr.msk.bf16.mxu1 %vm1010_vm0, %v589_v62 }
 0x21d   :  { %1462 = vmatmul.mubr.bf16.gmra.mrb[88].mxu0 %v545_v4  ;;  %v469_v4 = vld [vmem:[#allocation2 + $0x610] sm:$0xff] }
 0x21e   :  { %1469 = vmatprep.mubr.bf16.mxu0 %v553_v7  ;;  %v6842_v7 = vld [vmem:[#allocation8 + $0x30] sm:$0xff]   ;;  %v595_v13 = vpack.c.bf16 %v469_v4, %v462_v3 }
 0x21f   :  { %6458 = vmatmul.mubr.msk.bf16.gmra.mrb[88].mxu1 %vm1010_vm0, %v596_v10  ;;  %6477 = vmatprep.subr.bf16.mxu1 %v6842_v7 }
 0x220   :  { %6461 = vmatprep.mubr.msk.bf16.mxu1 %vm1010_vm0, %v603_v11  ;;  %6478 = vmatpush3.bf16.msra.mxu1 %v6842_v7  ;;  %v496_v7 = vld [vmem:[#allocation2 + $0x6e8] sm:$0xff] }
 0x221   :  { %6479 = vmatprep.subr.bf16.mxu1 %v6843_v33 }
 0x224   :  { %6480 = vmatpush3.bf16.msra.mxu1 %v6843_v33 }
 0x225   :  { %1470 = vmatmul.mubr.bf16.gmra.mrb[92].mxu0 %v552_v17 }
 0x226   :  { %1477 = vmatprep.mubr.bf16.mxu0 %v560_v20 }
 0x227   :  { %6462 = vmatmul.mubr.msk.bf16.gmra.mrb[92].mxu1 %vm1010_vm0, %v610_v21 }
 0x22d   :  { %1478 = vmatmul.mubr.bf16.gmra.mrb[96].mxu0 %v559_v27  ;;  %v483_v27 = vld [vmem:[#allocation2 + $0x680] sm:$0xff] }
 0x22e   :  { %1485 = vmatprep.mubr.bf16.mxu0 %v567_v28  ;;  %v602_v36 = vpack.c.bf16 %v483_v27, %v476_v26 }
 0x235   :  { %1486 = vmatmul.mubr.bf16.gmra.mrb[100].mxu0 %v566_v34 }
 0x236   :  { %1493 = vmatprep.mubr.bf16.mxu0 %v574_v35 }
 0x23d   :  { %1494 = vmatmul.mubr.bf16.gmra.mrb[104].mxu0 %v573_v41 }
 0x23e   :  { %1501 = vmatprep.mubr.bf16.mxu0 %v581_v42 }
 0x240   :  { %v5948_v48 = vpop.f32.mrb[0].mxu0 }
 0x241   :  { %v5949_v50 = vpop.f32.mrb[1].mxu0 }
 0x242   :  { %v5950_v52 = vadd.f32 %v5949_v50, %v5948_v48  ;;  %v5951_v53 = vpop.f32.mrb[2].mxu0  ;;  %v6060_v55 = vpop.f32.mrb[0].mxu1  ;;  %v490_v50 = vld [vmem:[#allocation2 + $0x6b8] sm:$0xff] }
 0x243   :  { %v5952_v56 = vpop.f32.mrb[3].mxu0  ;;  %v6061_v59 = vpop.f32.mrb[1].mxu1 }
 0x244   :  { %v1094_v57 = vadd.f32 %v5950_v52, %v7749_v49  ;;  %v5953_v58 = vadd.f32 %v5952_v56, %v5951_v53  ;;  %v6062_v60 = vadd.f32 %v6061_v59, %v6060_v55  ;;  %v6063_v61 = vpop.f32.mrb[2].mxu1  ;;  %v601_v55 = vpack.c.bf16 %v482_v47, %v475_v46 }
 0x245   :  { %1502 = vmatmul.mubr.bf16.gmra.mrb[108].mxu0 %v580_v51  ;;  %v6064_v63 = vpop.f32.mrb[3].mxu1  ;;  %v497_v51 = vld [vmem:[#allocation2 + $0x6f0] sm:$0xff] }
 0x246   :  { %v1097_v62 = vadd.f32 %v5953_v58, %v7749_v49  ;;  %1509 = vmatprep.mubr.bf16.mxu0 %v588_v54  ;;  %v6065_v2 = vadd.f32 %v6064_v63, %v6063_v61  ;;  %v7753_v5 = vadd.f32 %v6062_v60, %v1094_v57  ;;  %v609_v59 = vpack.c.bf16 %v497_v51, %v490_v50 }
 0x248   :  { %v5954_v6 = vpop.f32.mrb[4].mxu0  ;;  %v7755_v10 = vadd.f32 %v6065_v2, %v1097_v62 }
 0x249   :  { %v5955_v8 = vpop.f32.mrb[5].mxu0 }
 0x24a   :  { %v5956_v11 = vadd.f32 %v5955_v8, %v5954_v6  ;;  %v5957_v12 = vpop.f32.mrb[6].mxu0  ;;  %v6066_v14 = vpop.f32.mrb[4].mxu1  ;;  %v489_v6 = vld [vmem:[#allocation2 + $0x6b0] sm:$0xff] }
 0x24b   :  { %v5958_v15 = vpop.f32.mrb[7].mxu0  ;;  %v6067_v18 = vpop.f32.mrb[5].mxu1 }
 0x24c   :  { %v1102_v16 = vadd.f32 %v5956_v11, %v7749_v49  ;;  %v5959_v17 = vadd.f32 %v5958_v15, %v5957_v12  ;;  %v6068_v19 = vadd.f32 %v6067_v18, %v6066_v14  ;;  %v6069_v20 = vpop.f32.mrb[6].mxu1 }
 0x24d   :  { %1510 = vmatmul.mubr.bf16.gmra.mrb[112].mxu0 %v587_v9  ;;  %v6070_v22 = vpop.f32.mrb[7].mxu1 }
 0x24e   :  { %v1105_v21 = vadd.f32 %v5959_v17, %v7749_v49  ;;  %1517 = vmatprep.mubr.bf16.mxu0 %v595_v13  ;;  %v6071_v25 = vadd.f32 %v6070_v22, %v6069_v20  ;;  %v7759_v28 = vadd.f32 %v6068_v19, %v1102_v16  ;;  %v608_v13 = vpack.c.bf16 %v496_v7, %v489_v6 }
 0x250   :  { %v5960_v29 = vpop.f32.mrb[8].mxu0  ;;  %v7761_v32 = vadd.f32 %v6071_v25, %v1105_v21 }
 0x251   :  { %v5961_v30 = vpop.f32.mrb[9].mxu0 }
 0x252   :  { %v5962_v34 = vadd.f32 %v5961_v30, %v5960_v29  ;;  %v5963_v35 = vpop.f32.mrb[10].mxu0  ;;  %v6072_v37 = vpop.f32.mrb[8].mxu1 }
 0x253   :  { %v5964_v38 = vpop.f32.mrb[11].mxu0  ;;  %v6073_v41 = vpop.f32.mrb[9].mxu1 }
 0x254   :  { %v1110_v39 = vadd.f32 %v5962_v34, %v7749_v49  ;;  %v5965_v40 = vadd.f32 %v5964_v38, %v5963_v35  ;;  %v6074_v42 = vadd.f32 %v6073_v41, %v6072_v37  ;;  %v6075_v43 = vpop.f32.mrb[10].mxu1 }
 0x255   :  { %1518 = vmatmul.mubr.bf16.gmra.mrb[116].mxu0 %v594_v31  ;;  %v6076_v45 = vpop.f32.mrb[11].mxu1 }
 0x256   :  { %v1113_v44 = vadd.f32 %v5965_v40, %v7749_v49  ;;  %1525 = vmatprep.mubr.bf16.mxu0 %v602_v36  ;;  %v6077_v48 = vadd.f32 %v6076_v45, %v6075_v43  ;;  %v7765_v52 = vadd.f32 %v6074_v42, %v1110_v39 }
 0x258   :  { %v5966_v53 = vpop.f32.mrb[12].mxu0  ;;  %v7767_v56 = vadd.f32 %v6077_v48, %v1113_v44 }
 0x259   :  { %v5967_v54 = vpop.f32.mrb[13].mxu0 }
 0x25a   :  { %v5968_v57 = vadd.f32 %v5967_v54, %v5966_v53  ;;  %v5969_v58 = vpop.f32.mrb[14].mxu0  ;;  %v6078_v60 = vpop.f32.mrb[12].mxu1 }
 0x25b   :  { %v5970_v61 = vpop.f32.mrb[15].mxu0  ;;  %v6079_v0 = vpop.f32.mrb[13].mxu1 }
 0x25c   :  { %v1118_v62 = vadd.f32 %v5968_v57, %v7749_v49  ;;  %v5971_v63 = vadd.f32 %v5970_v61, %v5969_v58  ;;  %v6080_v1 = vadd.f32 %v6079_v0, %v6078_v60  ;;  %v6081_v2 = vpop.f32.mrb[14].mxu1 }
 0x25d   :  { %1526 = vmatmul.mubr.bf16.gmra.mrb[120].mxu0 %v601_v55  ;;  %v6082_v4 = vpop.f32.mrb[15].mxu1 }
 0x25e   :  { %v1121_v3 = vadd.f32 %v5971_v63, %v7749_v49  ;;  %1533 = vmatprep.mubr.bf16.mxu0 %v609_v59  ;;  %v6083_v8 = vadd.f32 %v6082_v4, %v6081_v2  ;;  %v7771_v9 = vadd.f32 %v6080_v1, %v1118_v62 }
 0x260   :  { %v5972_v11 = vpop.f32.mrb[16].mxu0  ;;  %v7773_v14 = vadd.f32 %v6083_v8, %v1121_v3 }
 0x261   :  { %v5973_v12 = vpop.f32.mrb[17].mxu0 }
 0x262   :  { %v5974_v15 = vadd.f32 %v5973_v12, %v5972_v11  ;;  %v5975_v16 = vpop.f32.mrb[18].mxu0  ;;  %v6084_v17 = vpop.f32.mrb[16].mxu1 }
 0x263   :  { %v5976_v18 = vpop.f32.mrb[19].mxu0  ;;  %v6085_v21 = vpop.f32.mrb[17].mxu1 }
 0x264   :  { %v1126_v19 = vadd.f32 %v5974_v15, %v7749_v49  ;;  %v5977_v20 = vadd.f32 %v5976_v18, %v5975_v16  ;;  %v6086_v22 = vadd.f32 %v6085_v21, %v6084_v17  ;;  %v6087_v23 = vpop.f32.mrb[18].mxu1 }
 0x265   :  { %1534 = vmatmul.mubr.bf16.gmra.mrb[124].mxu0 %v608_v13  ;;  %v6088_v25 = vpop.f32.mrb[19].mxu1 }
 0x266   :  { %v1129_v24 = vadd.f32 %v5977_v20, %v7749_v49  ;;  %v6089_v26 = vadd.f32 %v6088_v25, %v6087_v23  ;;  %v7777_v27 = vadd.f32 %v6086_v22, %v1126_v19 }
 0x268   :  { %v5978_v29 = vpop.f32.mrb[20].mxu0  ;;  %v7779_v31 = vadd.f32 %v6089_v26, %v1129_v24 }
 0x269   :  { %v5979_v30 = vpop.f32.mrb[21].mxu0 }
 0x26a   :  { %v5980_v33 = vadd.f32 %v5979_v30, %v5978_v29  ;;  %v5981_v34 = vpop.f32.mrb[22].mxu0  ;;  %v6090_v35 = vpop.f32.mrb[20].mxu1 }
 0x26b   :  { %v5982_v36 = vpop.f32.mrb[23].mxu0  ;;  %v6091_v39 = vpop.f32.mrb[21].mxu1 }
 0x26c   :  { %v1134_v37 = vadd.f32 %v5980_v33, %v7749_v49  ;;  %v5983_v38 = vadd.f32 %v5982_v36, %v5981_v34  ;;  %v6092_v40 = vadd.f32 %v6091_v39, %v6090_v35  ;;  %v6093_v41 = vpop.f32.mrb[22].mxu1 }
 0x26d   :  { %v6094_v43 = vpop.f32.mrb[23].mxu1 }
 0x26e   :  { %v1137_v42 = vadd.f32 %v5983_v38, %v7749_v49  ;;  %v6095_v44 = vadd.f32 %v6094_v43, %v6093_v41  ;;  %v7783_v45 = vadd.f32 %v6092_v40, %v1134_v37 }
 0x270   :  { %v5984_v46 = vpop.f32.mrb[24].mxu0  ;;  %v7785_v48 = vadd.f32 %v6095_v44, %v1137_v42 }
 0x271   :  { %v5985_v47 = vpop.f32.mrb[25].mxu0 }
 0x272   :  { %v5986_v50 = vadd.f32 %v5985_v47, %v5984_v46  ;;  %v5987_v51 = vpop.f32.mrb[26].mxu0  ;;  %v6096_v53 = vpop.f32.mrb[24].mxu1 }
 0x273   :  { %v5988_v54 = vpop.f32.mrb[27].mxu0  ;;  %v6097_v58 = vpop.f32.mrb[25].mxu1 }
 0x274   :  { %v1142_v55 = vadd.f32 %v5986_v50, %v7749_v49  ;;  %v5989_v57 = vadd.f32 %v5988_v54, %v5987_v51  ;;  %v6098_v59 = vadd.f32 %v6097_v58, %v6096_v53  ;;  %v6099_v60 = vpop.f32.mrb[26].mxu1 }
 0x275   :  { %v6100_v62 = vpop.f32.mrb[27].mxu1 }
 0x276   :  { %v1145_v61 = vadd.f32 %v5989_v57, %v7749_v49  ;;  %v6101_v63 = vadd.f32 %v6100_v62, %v6099_v60  ;;  %v7789_v0 = vadd.f32 %v6098_v59, %v1142_v55 }
 0x278   :  { %v5990_v1 = vpop.f32.mrb[28].mxu0  ;;  %v7791_v3 = vadd.f32 %v6101_v63, %v1145_v61 }
 0x279   :  { %v5991_v2 = vpop.f32.mrb[29].mxu0 }
 0x27a   :  { %v5992_v4 = vadd.f32 %v5991_v2, %v5990_v1  ;;  %v5993_v6 = vpop.f32.mrb[30].mxu0  ;;  %v6102_v7 = vpop.f32.mrb[28].mxu1 }
 0x27b   :  { %v5994_v8 = vpop.f32.mrb[31].mxu0  ;;  %v6103_v13 = vpop.f32.mrb[29].mxu1 }
 0x27c   :  { %v1150_v11 = vadd.f32 %v5992_v4, %v7749_v49  ;;  %v5995_v12 = vadd.f32 %v5994_v8, %v5993_v6  ;;  %v6104_v15 = vadd.f32 %v6103_v13, %v6102_v7  ;;  %v6105_v16 = vpop.f32.mrb[30].mxu1 }
 0x27d   :  { %v6106_v18 = vpop.f32.mrb[31].mxu1 }
 0x27e   :  { %v1153_v17 = vadd.f32 %v5995_v12, %v7749_v49  ;;  %v6107_v19 = vadd.f32 %v6106_v18, %v6105_v16  ;;  %v7795_v20 = vadd.f32 %v6104_v15, %v1150_v11 }
 0x280   :  { %v5996_v21 = vpop.f32.mrb[32].mxu0  ;;  %v7797_v23 = vadd.f32 %v6107_v19, %v1153_v17 }
 0x281   :  { %v5997_v22 = vpop.f32.mrb[33].mxu0 }
 0x282   :  { %v5998_v24 = vadd.f32 %v5997_v22, %v5996_v21  ;;  %v5999_v25 = vpop.f32.mrb[34].mxu0  ;;  %v6108_v26 = vpop.f32.mrb[32].mxu1 }
 0x283   :  { %v6000_v29 = vpop.f32.mrb[35].mxu0  ;;  %v6109_v34 = vpop.f32.mrb[33].mxu1 }
 0x284   :  { %v1158_v30 = vadd.f32 %v5998_v24, %v7749_v49  ;;  %v6001_v33 = vadd.f32 %v6000_v29, %v5999_v25  ;;  %v6110_v35 = vadd.f32 %v6109_v34, %v6108_v26  ;;  %v6111_v36 = vpop.f32.mrb[34].mxu1 }
 0x285   :  { %v6112_v38 = vpop.f32.mrb[35].mxu1 }
 0x286   :  { %v1161_v37 = vadd.f32 %v6001_v33, %v7749_v49  ;;  %v6113_v39 = vadd.f32 %v6112_v38, %v6111_v36  ;;  %v7801_v40 = vadd.f32 %v6110_v35, %v1158_v30 }
 0x288   :  { %v6002_v41 = vpop.f32.mrb[36].mxu0  ;;  %v7803_v43 = vadd.f32 %v6113_v39, %v1161_v37 }
 0x289   :  { %v6003_v42 = vpop.f32.mrb[37].mxu0 }
 0x28a   :  { %v6004_v44 = vadd.f32 %v6003_v42, %v6002_v41  ;;  %v6005_v46 = vpop.f32.mrb[38].mxu0  ;;  %v6114_v47 = vpop.f32.mrb[36].mxu1 }
 0x28b   :  { %v6006_v50 = vpop.f32.mrb[39].mxu0  ;;  %v6115_v54 = vpop.f32.mrb[37].mxu1 }
 0x28c   :  { %v1166_v51 = vadd.f32 %v6004_v44, %v7749_v49  ;;  %v6007_v53 = vadd.f32 %v6006_v50, %v6005_v46  ;;  %v6116_v55 = vadd.f32 %v6115_v54, %v6114_v47  ;;  %v6117_v57 = vpop.f32.mrb[38].mxu1 }
 0x28d   :  { %v6118_v59 = vpop.f32.mrb[39].mxu1 }
 0x28e   :  { %v1169_v58 = vadd.f32 %v6007_v53, %v7749_v49  ;;  %v6119_v60 = vadd.f32 %v6118_v59, %v6117_v57  ;;  %v7807_v61 = vadd.f32 %v6116_v55, %v1166_v51 }
 0x290   :  { %v6008_v62 = vpop.f32.mrb[40].mxu0  ;;  %v7809_v1 = vadd.f32 %v6119_v60, %v1169_v58 }
 0x291   :  { %v6009_v63 = vpop.f32.mrb[41].mxu0 }
 0x292   :  { %v6010_v2 = vadd.f32 %v6009_v63, %v6008_v62  ;;  %v6011_v4 = vpop.f32.mrb[42].mxu0  ;;  %v6120_v6 = vpop.f32.mrb[40].mxu1 }
 0x293   :  { %v6012_v7 = vpop.f32.mrb[43].mxu0  ;;  %v6121_v12 = vpop.f32.mrb[41].mxu1 }
 0x294   :  { %v1174_v8 = vadd.f32 %v6010_v2, %v7749_v49  ;;  %v6013_v11 = vadd.f32 %v6012_v7, %v6011_v4  ;;  %v6122_v13 = vadd.f32 %v6121_v12, %v6120_v6  ;;  %v6123_v15 = vpop.f32.mrb[42].mxu1 }
 0x295   :  { %v6124_v17 = vpop.f32.mrb[43].mxu1 }
 0x296   :  { %v1177_v16 = vadd.f32 %v6013_v11, %v7749_v49  ;;  %v6125_v18 = vadd.f32 %v6124_v17, %v6123_v15  ;;  %v7813_v19 = vadd.f32 %v6122_v13, %v1174_v8 }
 0x298   :  { %v6014_v21 = vpop.f32.mrb[44].mxu0  ;;  %v7815_v24 = vadd.f32 %v6125_v18, %v1177_v16 }
 0x299   :  { %v6015_v22 = vpop.f32.mrb[45].mxu0 }
 0x29a   :  { %v6016_v25 = vadd.f32 %v6015_v22, %v6014_v21  ;;  %v6017_v26 = vpop.f32.mrb[46].mxu0  ;;  %v6126_v29 = vpop.f32.mrb[44].mxu1 }
 0x29b   :  { %v6018_v30 = vpop.f32.mrb[47].mxu0  ;;  %v6127_v35 = vpop.f32.mrb[45].mxu1 }
 0x29c   :  { %v1182_v33 = vadd.f32 %v6016_v25, %v7749_v49  ;;  %v6019_v34 = vadd.f32 %v6018_v30, %v6017_v26  ;;  %v6128_v36 = vadd.f32 %v6127_v35, %v6126_v29  ;;  %v6129_v37 = vpop.f32.mrb[46].mxu1 }
 0x29d   :  { %v6130_v39 = vpop.f32.mrb[47].mxu1 }
 0x29e   :  { %v1185_v38 = vadd.f32 %v6019_v34, %v7749_v49  ;;  %v6131_v41 = vadd.f32 %v6130_v39, %v6129_v37  ;;  %v7819_v42 = vadd.f32 %v6128_v36, %v1182_v33 }
 0x2a0   :  { %v6020_v44 = vpop.f32.mrb[48].mxu0  ;;  %v7821_v47 = vadd.f32 %v6131_v41, %v1185_v38 }
 0x2a1   :  { %v6021_v46 = vpop.f32.mrb[49].mxu0 }
 0x2a2   :  { %v6022_v50 = vadd.f32 %v6021_v46, %v6020_v44  ;;  %v6023_v51 = vpop.f32.mrb[50].mxu0  ;;  %v6132_v53 = vpop.f32.mrb[48].mxu1 }
 0x2a3   :  { %v6024_v54 = vpop.f32.mrb[51].mxu0  ;;  %v6133_v58 = vpop.f32.mrb[49].mxu1 }
 0x2a4   :  { %v1190_v55 = vadd.f32 %v6022_v50, %v7749_v49  ;;  %v6025_v57 = vadd.f32 %v6024_v54, %v6023_v51  ;;  %v6134_v59 = vadd.f32 %v6133_v58, %v6132_v53  ;;  %v6135_v60 = vpop.f32.mrb[50].mxu1  ;;  %v6844_v50 = vld [vmem:[#allocation11] sm:$0xff]  }
 0x2a5   :  { %v6136_v63 = vpop.f32.mrb[51].mxu1  ;;  %6513 = vmatprep.subr.bf16.mxu0 %v6844_v50 }
 0x2a6   :  { %v1193_v62 = vadd.f32 %v6025_v57, %v7749_v49  ;;  %v6137_v2 = vadd.f32 %v6136_v63, %v6135_v60  ;;  %v7825_v4 = vadd.f32 %v6134_v59, %v1190_v55  ;;  %6514 = vmatpush3.bf16.msra.mxu0 %v6844_v50 }
 0x2a8   :  { %v6026_v6 = vpop.f32.mrb[52].mxu0  ;;  %v7827_v8 = vadd.f32 %v6137_v2, %v1193_v62 }
 0x2a9   :  { %v6027_v7 = vpop.f32.mrb[53].mxu0 }
 0x2aa   :  { %v6028_v11 = vadd.f32 %v6027_v7, %v6026_v6  ;;  %v6029_v12 = vpop.f32.mrb[54].mxu0  ;;  %v6138_v13 = vpop.f32.mrb[52].mxu1 }
 0x2ab   :  { %v6030_v15 = vpop.f32.mrb[55].mxu0  ;;  %v6139_v18 = vpop.f32.mrb[53].mxu1 }
 0x2ac   :  { %v1198_v16 = vadd.f32 %v6028_v11, %v7749_v49  ;;  %v6031_v17 = vadd.f32 %v6030_v15, %v6029_v12  ;;  %v6140_v21 = vadd.f32 %v6139_v18, %v6138_v13  ;;  %v6141_v22 = vpop.f32.mrb[54].mxu1 }
 0x2ad   :  { %v6142_v26 = vpop.f32.mrb[55].mxu1 }
 0x2ae   :  { %v1201_v25 = vadd.f32 %v6031_v17, %v7749_v49  ;;  %v6143_v29 = vadd.f32 %v6142_v26, %v6141_v22  ;;  %v7831_v30 = vadd.f32 %v6140_v21, %v1198_v16 }
 0x2b0   :  { %v6032_v33 = vpop.f32.mrb[56].mxu0  ;;  %v7833_v35 = vadd.f32 %v6143_v29, %v1201_v25 }
 0x2b1   :  { %v6033_v34 = vpop.f32.mrb[57].mxu0 }
 0x2b2   :  { %v6034_v36 = vadd.f32 %v6033_v34, %v6032_v33  ;;  %v6035_v37 = vpop.f32.mrb[58].mxu0  ;;  %v6144_v38 = vpop.f32.mrb[56].mxu1 }
 0x2b3   :  { %v6036_v39 = vpop.f32.mrb[59].mxu0  ;;  %v6145_v46 = vpop.f32.mrb[57].mxu1 }
 0x2b4   :  { %v1206_v41 = vadd.f32 %v6034_v36, %v7749_v49  ;;  %v6037_v44 = vadd.f32 %v6036_v39, %v6035_v37  ;;  %v6146_v51 = vadd.f32 %v6145_v46, %v6144_v38  ;;  %v6147_v53 = vpop.f32.mrb[58].mxu1 }
 0x2b5   :  { %v6148_v55 = vpop.f32.mrb[59].mxu1 }
 0x2b6   :  { %v1209_v54 = vadd.f32 %v6037_v44, %v7749_v49  ;;  %v6149_v57 = vadd.f32 %v6148_v55, %v6147_v53  ;;  %v7837_v58 = vadd.f32 %v6146_v51, %v1206_v41  ;;  %v6845_v51 = vld [vmem:[#allocation11 + $0x8] sm:$0xff]   ;;  %v6846_v53 = vld [vmem:[#allocation11 + $0x10] sm:$0xff]  }
 0x2b7   :  { %6515 = vmatprep.subr.bf16.mxu0 %v6845_v51 }
 0x2b8   :  { %v6038_v59 = vpop.f32.mrb[60].mxu0  ;;  %v7839_v62 = vadd.f32 %v6149_v57, %v1209_v54  ;;  %6516 = vmatpush3.bf16.msra.mxu0 %v6845_v51 }
 0x2b9   :  { %v6039_v60 = vpop.f32.mrb[61].mxu0  ;;  %6517 = vmatprep.subr.bf16.mxu0 %v6846_v53 }
 0x2ba   :  { %v6040_v63 = vadd.f32 %v6039_v60, %v6038_v59  ;;  %v6041_v2 = vpop.f32.mrb[62].mxu0  ;;  %v6150_v6 = vpop.f32.mrb[60].mxu1 }
 0x2bb   :  { %v6042_v7 = vpop.f32.mrb[63].mxu0  ;;  %v6151_v13 = vpop.f32.mrb[61].mxu1 }
 0x2bc   :  { %v1214_v11 = vadd.f32 %v6040_v63, %v7749_v49  ;;  %v6043_v12 = vadd.f32 %v6042_v7, %v6041_v2  ;;  %v6152_v15 = vadd.f32 %v6151_v13, %v6150_v6  ;;  %v6153_v16 = vpop.f32.mrb[62].mxu1  ;;  %v6847_v6 = vld [vmem:[#allocation11 + $0x18] sm:$0xff]   ;;  %6518 = vmatpush3.bf16.msra.mxu0 %v6846_v53 }
 0x2bd   :  { %v6154_v18 = vpop.f32.mrb[63].mxu1  ;;  %6519 = vmatprep.subr.bf16.mxu0 %v6847_v6 }
 0x2be   :  { %v1217_v17 = vadd.f32 %v6043_v12, %v7749_v49  ;;  %v6155_v21 = vadd.f32 %v6154_v18, %v6153_v16  ;;  %v7843_v22 = vadd.f32 %v6152_v15, %v1214_v11 }
 0x2c0   :  { %v6172_v25 = vpop.f32.mrb[64].mxu0  ;;  %v7845_v29 = vadd.f32 %v6155_v21, %v1217_v17  ;;  %6520 = vmatpush3.bf16.msra.mxu0 %v6847_v6 }
 0x2c1   :  { %v6173_v26 = vpop.f32.mrb[65].mxu0 }
 0x2c2   :  { %v6174_v33 = vadd.f32 %v6173_v26, %v6172_v25  ;;  %v6175_v34 = vpop.f32.mrb[66].mxu0  ;;  %v6435_v37 = vpop.f32.mrb[64].mxu1 }
 0x2c3   :  { %v6176_v36 = vpop.f32.mrb[67].mxu0  ;;  %v1576_v41 = vpop.f32.mrb[65].mxu1 }
 0x2c4   :  { %v6177_v38 = vadd.f32 %v6176_v36, %v6175_v34  ;;  %v1416_v39 = vadd.f32 %v6174_v33, %v7753_v5  ;;  %v6436_v44 = vpop.f32.mrb[66].mxu1 }
 0x2c5   :  { %v1579_v50 = vpop.f32.mrb[67].mxu1 }
 0x2c6   :  { %v1577_v46 = vadd.f32 %v1576_v41, %v1416_v39  ;;  %v1419_v49 = vadd.f32 %v6177_v38, %v7755_v10 }
 0x2c8   :  { %v1580_v54 = vadd.f32 %v1579_v50, %v1419_v49  ;;  %v6178_v55 = vpop.f32.mrb[68].mxu0  ;;  %v1703_v59 = vmax.f32 %v1577_v46, 0.0 }
 0x2c9   :  { %v6179_v57 = vpop.f32.mrb[69].mxu0 }
 0x2ca   :  { %v1704_v60 = vmax.f32 %v1580_v54, 0.0  ;;  %v6180_v63 = vadd.f32 %v6179_v57, %v6178_v55  ;;  %v6181_v2 = vpop.f32.mrb[70].mxu0  ;;  %v6439_v7 = vpop.f32.mrb[68].mxu1 }
 0x2cb   :  { %v6182_v5 = vpop.f32.mrb[71].mxu0  ;;  %v1592_v13 = vpop.f32.mrb[69].mxu1 }
 0x2cc   :  { %v1735_v11 = vpack.c.bf16 %v1704_v60, %v1703_v59  ;;  %v1424_v12 = vadd.f32 %v6180_v63, %v7759_v28  ;;  %v6183_v10 = vadd.f32 %v6182_v5, %v6181_v2  ;;  %v6440_v15 = vpop.f32.mrb[70].mxu1 }
 0x2cd   :  { %v1595_v18 = vpop.f32.mrb[71].mxu1 }
 0x2ce   :  { %v1585_v16 = vadd.f32 %v6435_v37, %v1424_v12  ;;  %v1427_v17 = vadd.f32 %v6183_v10, %v7761_v32  ;;  %6481 = vmatprep.mubr.bf16.mxu1 %v1735_v11 }
 0x2d0   :  { %v1588_v21 = vadd.f32 %v6436_v44, %v1427_v17  ;;  %v6184_v25 = vpop.f32.mrb[72].mxu0  ;;  %v1705_v33 = vmax.f32 %v1585_v16, 0.0 }
 0x2d1   :  { %v6185_v26 = vpop.f32.mrb[73].mxu0 }
 0x2d2   :  { %v1706_v34 = vmax.f32 %v1588_v21, 0.0  ;;  %v6186_v36 = vadd.f32 %v6185_v26, %v6184_v25  ;;  %v6187_v38 = vpop.f32.mrb[74].mxu0  ;;  %v6443_v28 = vpop.f32.mrb[72].mxu1 }
 0x2d3   :  { %v6188_v39 = vpop.f32.mrb[75].mxu0  ;;  %v1608_v37 = vpop.f32.mrb[73].mxu1 }
 0x2d4   :  { %v1736_v41 = vpack.c.bf16 %v1706_v34, %v1705_v33  ;;  %v6189_v46 = vadd.f32 %v6188_v39, %v6187_v38  ;;  %v1432_v49 = vadd.f32 %v6186_v36, %v7765_v52  ;;  %v6444_v50 = vpop.f32.mrb[74].mxu1 }
 0x2d5   :  { %v1611_v44 = vpop.f32.mrb[75].mxu1 }
 0x2d6   :  { %v1593_v32 = vadd.f32 %v1592_v13, %v1432_v49  ;;  %6482 = vmatmul.mubr.bf16.vlgmr.msra.gmra.mrb[96].mxu1 %v1736_v41  ;;  %v1435_v51 = vadd.f32 %v6189_v46, %v7767_v56 }
 0x2d8   :  { %v1596_v53 = vadd.f32 %v1595_v18, %v1435_v51  ;;  %v6190_v54 = vpop.f32.mrb[76].mxu0  ;;  %v1707_v57 = vmax.f32 %v1593_v32, 0.0 }
 0x2d9   :  { %v6191_v55 = vpop.f32.mrb[77].mxu0 }
 0x2da   :  { %v1708_v59 = vmax.f32 %v1596_v53, 0.0  ;;  %v6192_v60 = vadd.f32 %v6191_v55, %v6190_v54  ;;  %v6193_v63 = vpop.f32.mrb[78].mxu0  ;;  %v7853_v6 = vpop.f32.mrb[76].mxu1 }
 0x2db   :  { %v6194_v2 = vpop.f32.mrb[79].mxu0  ;;  %v1624_v12 = vpop.f32.mrb[77].mxu1 }
 0x2dc   :  { %v1737_v5 = vpack.c.bf16 %v1708_v59, %v1707_v57  ;;  %v1440_v52 = vadd.f32 %v6192_v60, %v7771_v9  ;;  %v6195_v11 = vadd.f32 %v6194_v2, %v6193_v63  ;;  %v7856_v10 = vpop.f32.mrb[78].mxu1 }
 0x2dd   :  { %v1627_v16 = vpop.f32.mrb[79].mxu1 }
 0x2de   :  { %v1601_v13 = vadd.f32 %v6439_v7, %v1440_v52  ;;  %v1443_v56 = vadd.f32 %v6195_v11, %v7773_v14  ;;  %6485 = vmatprep.mubr.bf16.mxu1 %v1737_v5 }
 0x2e0   :  { %v1604_v17 = vadd.f32 %v6440_v15, %v1443_v56  ;;  %v6196_v18 = vpop.f32.mrb[80].mxu0  ;;  %v1709_v25 = vmax.f32 %v1601_v13, 0.0 }
 0x2e1   :  { %v6197_v21 = vpop.f32.mrb[81].mxu0 }
 0x2e2   :  { %v1710_v26 = vmax.f32 %v1604_v17, 0.0  ;;  %v6198_v33 = vadd.f32 %v6197_v21, %v6196_v18  ;;  %v6199_v34 = vpop.f32.mrb[82].mxu0  ;;  %v7859_v38 = vpop.f32.mrb[80].mxu1 }
 0x2e3   :  { %v6200_v36 = vpop.f32.mrb[83].mxu0  ;;  %v7862_v46 = vpop.f32.mrb[81].mxu1 }
 0x2e4   :  { %v6201_v9 = vadd.f32 %v6200_v36, %v6199_v34  ;;  %v1448_v39 = vadd.f32 %v6198_v33, %v7777_v27  ;;  %v1738_v41 = vpack.c.bf16 %v1710_v26, %v1709_v25  ;;  %v7864_v7 = vpop.f32.mrb[82].mxu1 }
 0x2e5   :  { %v7867_v49 = vpop.f32.mrb[83].mxu1 }
 0x2e6   :  { %v1609_v14 = vadd.f32 %v1608_v37, %v1448_v39  ;;  %6486 = vmatmul.mubr.bf16.gmra.mrb[100].mxu1 %v1738_v41  ;;  %v1451_v15 = vadd.f32 %v6201_v9, %v7779_v31 }
 0x2e8   :  { %v1612_v32 = vadd.f32 %v1611_v44, %v1451_v15  ;;  %v6202_v51 = vpop.f32.mrb[84].mxu0  ;;  %v1711_v54 = vmax.f32 %v1609_v14, 0.0 }
 0x2e9   :  { %v6203_v53 = vpop.f32.mrb[85].mxu0 }
 0x2ea   :  { %v1712_v55 = vmax.f32 %v1612_v32, 0.0  ;;  %v6204_v57 = vadd.f32 %v6203_v53, %v6202_v51  ;;  %v6205_v59 = vpop.f32.mrb[86].mxu0  ;;  %v7869_v27 = vpop.f32.mrb[84].mxu1 }
 0x2eb   :  { %v6206_v60 = vpop.f32.mrb[87].mxu0  ;;  %v7872_v37 = vpop.f32.mrb[85].mxu1 }
 0x2ec   :  { %v1739_v63 = vpack.c.bf16 %v1712_v55, %v1711_v54  ;;  %v1456_v2 = vadd.f32 %v6204_v57, %v7783_v45  ;;  %v6207_v5 = vadd.f32 %v6206_v60, %v6205_v59  ;;  %v7874_v52 = vpop.f32.mrb[86].mxu1 }
 0x2ed   :  { %v7877_v11 = vpop.f32.mrb[87].mxu1 }
 0x2ee   :  { %v1617_v31 = vadd.f32 %v6443_v28, %v1456_v2  ;;  %v1459_v44 = vadd.f32 %v6207_v5, %v7785_v48  ;;  %6489 = vmatprep.mubr.bf16.mxu1 %v1739_v63 }
 0x2f0   :  { %v1620_v13 = vadd.f32 %v6444_v50, %v1459_v44  ;;  %v6208_v56 = vpop.f32.mrb[88].mxu0  ;;  %v1713_v18 = vmax.f32 %v1617_v31, 0.0 }
 0x2f1   :  { %v6209_v17 = vpop.f32.mrb[89].mxu0 }
 0x2f2   :  { %v1714_v21 = vmax.f32 %v1620_v13, 0.0  ;;  %v6210_v25 = vadd.f32 %v6209_v17, %v6208_v56  ;;  %v6211_v26 = vpop.f32.mrb[90].mxu0  ;;  %v7879_v45 = vpop.f32.mrb[88].mxu1 }
 0x2f3   :  { %v6212_v33 = vpop.f32.mrb[91].mxu0  ;;  %v7882_v28 = vpop.f32.mrb[89].mxu1 }
 0x2f4   :  { %v6213_v34 = vadd.f32 %v6212_v33, %v6211_v26  ;;  %v1464_v36 = vadd.f32 %v6210_v25, %v7789_v0  ;;  %v1740_v9 = vpack.c.bf16 %v1714_v21, %v1713_v18  ;;  %v7884_v48 = vpop.f32.mrb[90].mxu1 }
 0x2f5   :  { %v7887_v41 = vpop.f32.mrb[91].mxu1 }
 0x2f6   :  { %v1625_v39 = vadd.f32 %v1624_v12, %v1464_v36  ;;  %6490 = vmatmul.mubr.bf16.gmra.mrb[104].mxu1 %v1740_v9  ;;  %v1467_v50 = vadd.f32 %v6213_v34, %v7791_v3 }
 0x2f8   :  { %v1628_v14 = vadd.f32 %v1627_v16, %v1467_v50  ;;  %v6214_v15 = vpop.f32.mrb[92].mxu0  ;;  %v1715_v51 = vmax.f32 %v1625_v39, 0.0 }
 0x2f9   :  { %v6215_v32 = vpop.f32.mrb[93].mxu0 }
 0x2fa   :  { %v1716_v53 = vmax.f32 %v1628_v14, 0.0  ;;  %v6216_v54 = vadd.f32 %v6215_v32, %v6214_v15  ;;  %v6217_v55 = vpop.f32.mrb[94].mxu0  ;;  %v7889_v0 = vpop.f32.mrb[92].mxu1 }
 0x2fb   :  { %v6218_v57 = vpop.f32.mrb[95].mxu0  ;;  %v7892_v12 = vpop.f32.mrb[93].mxu1 }
 0x2fc   :  { %v1741_v59 = vpack.c.bf16 %v1716_v53, %v1715_v51  ;;  %v1472_v60 = vadd.f32 %v6216_v54, %v7795_v20  ;;  %v6219_v63 = vadd.f32 %v6218_v57, %v6217_v55  ;;  %v7894_v2 = vpop.f32.mrb[94].mxu1 }
 0x2fd   :  { %v7898_v5 = vpop.f32.mrb[95].mxu1 }
 0x2fe   :  { %v1633_v3 = vadd.f32 %v7853_v6, %v1472_v60  ;;  %v1475_v16 = vadd.f32 %v6219_v63, %v7797_v23  ;;  %6493 = vmatprep.mubr.bf16.mxu1 %v1741_v59 }
 0x300   :  { %v1636_v31 = vadd.f32 %v7856_v10, %v1475_v16  ;;  %v6220_v44 = vpop.f32.mrb[96].mxu0  ;;  %v1717_v56 = vmax.f32 %v1633_v3, 0.0 }
 0x301   :  { %v6221_v13 = vpop.f32.mrb[97].mxu0 }
 0x302   :  { %v1718_v17 = vmax.f32 %v1636_v31, 0.0  ;;  %v6222_v18 = vadd.f32 %v6221_v13, %v6220_v44  ;;  %v6223_v20 = vpop.f32.mrb[98].mxu0 }
 0x303   :  { %v6224_v21 = vpop.f32.mrb[99].mxu0 }
 0x304   :  { %v6225_v25 = vadd.f32 %v6224_v21, %v6223_v20  ;;  %v1480_v26 = vadd.f32 %v6222_v18, %v7801_v40  ;;  %v1742_v33 = vpack.c.bf16 %v1718_v17, %v1717_v56 }
 0x306   :  { %v1641_v6 = vadd.f32 %v7862_v46, %v1480_v26  ;;  %6494 = vmatmul.mubr.bf16.gmra.mrb[108].mxu1 %v1742_v33  ;;  %v1483_v23 = vadd.f32 %v6225_v25, %v7803_v43 }
 0x308   :  { %v1644_v34 = vadd.f32 %v7867_v49, %v1483_v23  ;;  %v6226_v36 = vpop.f32.mrb[100].mxu0  ;;  %v1719_v9 = vmax.f32 %v1641_v6, 0.0 }
 0x309   :  { %v6227_v10 = vpop.f32.mrb[101].mxu0 }
 0x30a   :  { %v1720_v39 = vmax.f32 %v1644_v34, 0.0  ;;  %v6228_v50 = vadd.f32 %v6227_v10, %v6226_v36  ;;  %v6229_v14 = vpop.f32.mrb[102].mxu0 }
 0x30b   :  { %v6230_v15 = vpop.f32.mrb[103].mxu0 }
 0x30c   :  { %v1743_v32 = vpack.c.bf16 %v1720_v39, %v1719_v9  ;;  %v1488_v51 = vadd.f32 %v6228_v50, %v7807_v61  ;;  %v6231_v53 = vadd.f32 %v6230_v15, %v6229_v14 }
 0x30e   :  { %v1649_v40 = vadd.f32 %v7859_v38, %v1488_v51  ;;  %v1491_v46 = vadd.f32 %v6231_v53, %v7809_v1  ;;  %6497 = vmatprep.mubr.bf16.mxu1 %v1743_v32 }
 0x310   :  { %v1652_v43 = vadd.f32 %v7864_v7, %v1491_v46  ;;  %v6232_v54 = vpop.f32.mrb[104].mxu0  ;;  %v1721_v55 = vmax.f32 %v1649_v40, 0.0 }
 0x311   :  { %v6233_v49 = vpop.f32.mrb[105].mxu0 }
 0x312   :  { %v1722_v57 = vmax.f32 %v1652_v43, 0.0  ;;  %v6234_v59 = vadd.f32 %v6233_v49, %v6232_v54  ;;  %v6235_v60 = vpop.f32.mrb[106].mxu0 }
 0x313   :  { %v6236_v63 = vpop.f32.mrb[107].mxu0 }
 0x314   :  { %v6237_v3 = vadd.f32 %v6236_v63, %v6235_v60  ;;  %v1496_v16 = vadd.f32 %v6234_v59, %v7813_v19  ;;  %v1744_v31 = vpack.c.bf16 %v1722_v57, %v1721_v55 }
 0x316   :  { %v1657_v61 = vadd.f32 %v7872_v37, %v1496_v16  ;;  %6498 = vmatmul.mubr.bf16.gmra.mrb[112].mxu1 %v1744_v31  ;;  %v1499_v38 = vadd.f32 %v6237_v3, %v7815_v24 }
 0x318   :  { %v1660_v1 = vadd.f32 %v7877_v11, %v1499_v38  ;;  %v6238_v44 = vpop.f32.mrb[108].mxu0  ;;  %v1723_v13 = vmax.f32 %v1657_v61, 0.0 }
 0x319   :  { %v6239_v7 = vpop.f32.mrb[109].mxu0 }
 0x31a   :  { %v1724_v56 = vmax.f32 %v1660_v1, 0.0  ;;  %v6240_v17 = vadd.f32 %v6239_v7, %v6238_v44  ;;  %v6241_v18 = vpop.f32.mrb[110].mxu0 }
 0x31b   :  { %v6242_v20 = vpop.f32.mrb[111].mxu0 }
 0x31c   :  { %v1745_v21 = vpack.c.bf16 %v1724_v56, %v1723_v13  ;;  %v1504_v25 = vadd.f32 %v6240_v17, %v7819_v42  ;;  %v6243_v26 = vadd.f32 %v6242_v20, %v6241_v18 }
 0x31e   :  { %v1665_v19 = vadd.f32 %v7869_v27, %v1504_v25  ;;  %v1507_v37 = vadd.f32 %v6243_v26, %v7821_v47  ;;  %6501 = vmatprep.mubr.bf16.mxu1 %v1745_v21  ;;  %v6848_v25 = vld [vmem:[#allocation14] sm:$0x3f]  }
 0x31f   :  { %6757 = vmatprep.subr.msk.bf16.mxu1 %vm2391_vm1, %v6848_v25  ;;  %v2393_v26 = vsel %vm2391_vm1, %v6848_v25, 0 }
 0x320   :  { %v1668_v24 = vadd.f32 %v7874_v52, %v1507_v37  ;;  %v6244_v33 = vpop.f32.mrb[112].mxu0  ;;  %v1725_v6 = vmax.f32 %v1665_v19, 0.0  ;;  %v7935_v19 = vld [vmem:[#allocation10] ss:$0 sm:$0xff]  ;;  %6554 = vmatpush3.bf16.msra.mxu1 %v2393_v26 }
 0x321   :  { %v6245_v11 = vpop.f32.mrb[113].mxu0 }
 0x322   :  { %v1726_v23 = vmax.f32 %v1668_v24, 0.0  ;;  %v6246_v34 = vadd.f32 %v6245_v11, %v6244_v33  ;;  %v6247_v36 = vpop.f32.mrb[114].mxu0 }
 0x323   :  { %v6248_v10 = vpop.f32.mrb[115].mxu0 }
 0x324   :  { %v6249_v9 = vadd.f32 %v6248_v10, %v6247_v36  ;;  %v1512_v39 = vadd.f32 %v6246_v34, %v7825_v4  ;;  %v1746_v50 = vpack.c.bf16 %v1726_v23, %v1725_v6 }
 0x326   :  { %v1673_v42 = vadd.f32 %v7882_v28, %v1512_v39  ;;  %6502 = vmatmul.mubr.bf16.gmra.mrb[116].mxu1 %v1746_v50  ;;  %v1515_v27 = vadd.f32 %v6249_v9, %v7827_v8 }
 0x328   :  { %v1676_v47 = vadd.f32 %v7887_v41, %v1515_v27  ;;  %v6250_v14 = vpop.f32.mrb[116].mxu0  ;;  %v1727_v15 = vmax.f32 %v1673_v42, 0.0 }
 0x329   :  { %v6251_v52 = vpop.f32.mrb[117].mxu0 }
 0x32a   :  { %v1728_v32 = vmax.f32 %v1676_v47, 0.0  ;;  %v6252_v51 = vadd.f32 %v6251_v52, %v6250_v14  ;;  %v6253_v53 = vpop.f32.mrb[118].mxu0 }
 0x32b   :  { %v6254_v40 = vpop.f32.mrb[119].mxu0 }
 0x32c   :  { %v1747_v46 = vpack.c.bf16 %v1728_v32, %v1727_v15  ;;  %v1520_v43 = vadd.f32 %v6252_v51, %v7831_v30  ;;  %v6255_v54 = vadd.f32 %v6254_v40, %v6253_v53 }
 0x32e   :  { %v1681_v4 = vadd.f32 %v7879_v45, %v1520_v43  ;;  %v1523_v28 = vadd.f32 %v6255_v54, %v7833_v35  ;;  %6505 = vmatprep.mubr.bf16.mxu1 %v1747_v46 }
 0x330   :  { %v1684_v8 = vadd.f32 %v7884_v48, %v1523_v28  ;;  %v6256_v49 = vpop.f32.mrb[120].mxu0  ;;  %v1729_v55 = vmax.f32 %v1681_v4, 0.0 }
 0x331   :  { %v6257_v41 = vpop.f32.mrb[121].mxu0 }
 0x332   :  { %v1730_v57 = vmax.f32 %v1684_v8, 0.0  ;;  %v6258_v59 = vadd.f32 %v6257_v41, %v6256_v49  ;;  %v6259_v60 = vpop.f32.mrb[122].mxu0 }
 0x333   :  { %v6260_v63 = vpop.f32.mrb[123].mxu0 }
 0x334   :  { %v6261_v3 = vadd.f32 %v6260_v63, %v6259_v60  ;;  %v1528_v16 = vadd.f32 %v6258_v59, %v7837_v58  ;;  %v1748_v31 = vpack.c.bf16 %v1730_v57, %v1729_v55 }
 0x336   :  { %v1689_v30 = vadd.f32 %v7892_v12, %v1528_v16  ;;  %6506 = vmatmul.mubr.bf16.gmra.mrb[120].mxu1 %v1748_v31  ;;  %v1531_v45 = vadd.f32 %v6261_v3, %v7839_v62 }
 0x338   :  { %v1692_v35 = vadd.f32 %v7898_v5, %v1531_v45  ;;  %v6262_v61 = vpop.f32.mrb[124].mxu0  ;;  %v1731_v38 = vmax.f32 %v1689_v30, 0.0 }
 0x339   :  { %v6263_v48 = vpop.f32.mrb[125].mxu0 }
 0x33a   :  { %v1732_v1 = vmax.f32 %v1692_v35, 0.0  ;;  %v6264_v44 = vadd.f32 %v6263_v48, %v6262_v61  ;;  %v6265_v7 = vpop.f32.mrb[126].mxu0 }
 0x33b   :  { %v6266_v13 = vpop.f32.mrb[127].mxu0 }
 0x33c   :  { %v1749_v56 = vpack.c.bf16 %v1732_v1, %v1731_v38  ;;  %v1536_v17 = vadd.f32 %v6264_v44, %v7843_v22  ;;  %v6267_v18 = vadd.f32 %v6266_v13, %v6265_v7 }
 0x33e   :  { %v1697_v58 = vadd.f32 %v7889_v0, %v1536_v17  ;;  %v1539_v12 = vadd.f32 %v6267_v18, %v7845_v29  ;;  %6509 = vmatprep.mubr.bf16.mxu1 %v1749_v56 }
 0x340   :  { %v1700_v62 = vadd.f32 %v7894_v2, %v1539_v12  ;;  %v1733_v20 = vmax.f32 %v1697_v58, 0.0 }
 0x342   :  { %v1734_v5 = vmax.f32 %v1700_v62, 0.0 }
 0x344   :  { %v1750_v21 = vpack.c.bf16 %v1734_v5, %v1733_v20 }
 0x346   :  { %6510 = vmatmul.mubr.bf16.gmra.mrb[124].mxu1 %v1750_v21 }
 0x3a9   :  { %v6483_v22 = vpop.f32.mrb[96].mxu1 }
 0x3aa   :  { %v1865_v0 = vadd.f32 %v6483_v22, %v7935_v19  ;;  %v1856_v29 = vpop.f32.mrb[97].mxu1 }
 0x3ab   :  { %v1857_v37 = vadd.f32 %v7935_v19, %v1856_v29  ;;  %v6484_v2 = vpop.f32.mrb[98].mxu1 }
 0x3ac   :  { %v1868_v24 = vadd.f32 %v6484_v2, %v7935_v19  ;;  %v1859_v33 = vpop.f32.mrb[99].mxu1  ;;  %v1985_v6 = vmax.f32 %v1865_v0, 0.0 }
 0x3ad   :  { %v1860_v11 = vadd.f32 %v7935_v19, %v1859_v33  ;;  %v1983_v34 = vmax.f32 %v1857_v37, 0.0 }
 0x3ae   :  { %v1986_v23 = vmax.f32 %v1868_v24, 0.0 }
 0x3af   :  { %v1984_v36 = vmax.f32 %v1860_v11, 0.0 }
 0x3b0   :  { %v2016_v10 = vpack.c.bf16 %v1986_v23, %v1985_v6 }
 0x3b1   :  { %v2015_v9 = vpack.c.bf16 %v1984_v36, %v1983_v34 }
 0x3b3   :  { %6521 = vmatprep.mubr.msk.bf16.mxu0 %vm2070_vm2, %v2015_v9 }
 0x3b4   :  { %6522 = vmatmul.mubr.msk.bf16.vlgmr.msra.gmra.mrb[128].mxu0 %vm2070_vm2, %v2016_v10 }
 0x3b9   :  { %v6487_v39 = vpop.f32.mrb[100].mxu1 }
 0x3ba   :  { %v1881_v50 = vadd.f32 %v6487_v39, %v7935_v19  ;;  %v1872_v42 = vpop.f32.mrb[101].mxu1 }
 0x3bb   :  { %v1873_v27 = vadd.f32 %v7935_v19, %v1872_v42  ;;  %v6488_v47 = vpop.f32.mrb[102].mxu1 }
 0x3bc   :  { %v1884_v14 = vadd.f32 %v6488_v47, %v7935_v19  ;;  %v1875_v52 = vpop.f32.mrb[103].mxu1  ;;  %v1989_v32 = vmax.f32 %v1881_v50, 0.0 }
 0x3bd   :  { %v1876_v15 = vadd.f32 %v7935_v19, %v1875_v52  ;;  %v1987_v53 = vmax.f32 %v1873_v27, 0.0 }
 0x3be   :  { %v1990_v51 = vmax.f32 %v1884_v14, 0.0 }
 0x3bf   :  { %v1988_v40 = vmax.f32 %v1876_v15, 0.0 }
 0x3c0   :  { %v2018_v46 = vpack.c.bf16 %v1990_v51, %v1989_v32 }
 0x3c1   :  { %v2017_v43 = vpack.c.bf16 %v1988_v40, %v1987_v53 }
 0x3c3   :  { %6525 = vmatprep.mubr.msk.bf16.mxu0 %vm2070_vm2, %v2017_v43 }
 0x3c4   :  { %6526 = vmatmul.mubr.msk.bf16.gmra.mrb[132].mxu0 %vm2070_vm2, %v2018_v46 }
 0x3c9   :  { %v6491_v54 = vpop.f32.mrb[104].mxu1 }
 0x3ca   :  { %v1897_v4 = vadd.f32 %v6491_v54, %v7935_v19  ;;  %v1888_v28 = vpop.f32.mrb[105].mxu1 }
 0x3cb   :  { %v1889_v8 = vadd.f32 %v7935_v19, %v1888_v28  ;;  %v6492_v49 = vpop.f32.mrb[106].mxu1 }
 0x3cc   :  { %v1900_v41 = vadd.f32 %v6492_v49, %v7935_v19  ;;  %v1891_v55 = vpop.f32.mrb[107].mxu1  ;;  %v1993_v59 = vmax.f32 %v1897_v4, 0.0 }
 0x3cd   :  { %v1892_v57 = vadd.f32 %v7935_v19, %v1891_v55  ;;  %v1991_v63 = vmax.f32 %v1889_v8, 0.0 }
 0x3ce   :  { %v1994_v60 = vmax.f32 %v1900_v41, 0.0 }
 0x3cf   :  { %v1992_v3 = vmax.f32 %v1892_v57, 0.0 }
 0x3d0   :  { %v2020_v16 = vpack.c.bf16 %v1994_v60, %v1993_v59 }
 0x3d1   :  { %v2019_v31 = vpack.c.bf16 %v1992_v3, %v1991_v63 }
 0x3d3   :  { %6529 = vmatprep.mubr.msk.bf16.mxu0 %vm2070_vm2, %v2019_v31 }
 0x3d4   :  { %6530 = vmatmul.mubr.msk.bf16.gmra.mrb[136].mxu0 %vm2070_vm2, %v2020_v16 }
 0x3d9   :  { %v6495_v30 = vpop.f32.mrb[108].mxu1 }
 0x3da   :  { %v1913_v45 = vadd.f32 %v6495_v30, %v7935_v19  ;;  %v1904_v35 = vpop.f32.mrb[109].mxu1 }
 0x3db   :  { %v1905_v61 = vadd.f32 %v7935_v19, %v1904_v35  ;;  %v6496_v48 = vpop.f32.mrb[110].mxu1 }
 0x3dc   :  { %v1916_v38 = vadd.f32 %v6496_v48, %v7935_v19  ;;  %v1907_v1 = vpop.f32.mrb[111].mxu1  ;;  %v1997_v7 = vmax.f32 %v1913_v45, 0.0 }
 0x3dd   :  { %v1908_v44 = vadd.f32 %v7935_v19, %v1907_v1  ;;  %v1995_v56 = vmax.f32 %v1905_v61, 0.0 }
 0x3de   :  { %v1998_v13 = vmax.f32 %v1916_v38, 0.0 }
 0x3df   :  { %v1996_v17 = vmax.f32 %v1908_v44, 0.0  ;;  %v6849_v44 = vld [vmem:[#allocation17] sm:$0xff]  }
 0x3e0   :  { %v2022_v18 = vpack.c.bf16 %v1998_v13, %v1997_v7  ;;  %v6850_v7 = vld [vmem:[#allocation17 + $0x8] sm:$0xff]   ;;  %6587 = vmatprep.subr.bf16.mxu0 %v6849_v44  ;;  %v7985_v13 = vld [vmem:[#allocation13] ss:$0 sm:$0xff] }
 0x3e1   :  { %v2021_v58 = vpack.c.bf16 %v1996_v17, %v1995_v56  ;;  %6588 = vmatpush3.bf16.msra.mxu0 %v6849_v44  ;;  %v6851_v56 = vld [vmem:[#allocation17 + $0x10] sm:$0xff]  }
 0x3e2   :  { %6589 = vmatprep.subr.bf16.mxu0 %v6850_v7 }
 0x3e3   :  { %6533 = vmatprep.mubr.msk.bf16.mxu0 %vm2070_vm2, %v2021_v58 }
 0x3e4   :  { %6534 = vmatmul.mubr.msk.bf16.gmra.mrb[140].mxu0 %vm2070_vm2, %v2022_v18 }
 0x3e5   :  { %6590 = vmatpush3.bf16.msra.mxu0 %v6850_v7 }
 0x3e6   :  { %6591 = vmatprep.subr.bf16.mxu0 %v6851_v56 }
 0x3e9   :  { %v6499_v12 = vpop.f32.mrb[112].mxu1  ;;  %6592 = vmatpush3.bf16.msra.mxu0 %v6851_v56 }
 0x3ea   :  { %v1929_v62 = vadd.f32 %v6499_v12, %v7935_v19  ;;  %v1920_v20 = vpop.f32.mrb[113].mxu1 }
 0x3eb   :  { %v1921_v5 = vadd.f32 %v7935_v19, %v1920_v20  ;;  %v6500_v21 = vpop.f32.mrb[114].mxu1 }
 0x3ec   :  { %v1932_v25 = vadd.f32 %v6500_v21, %v7935_v19  ;;  %v1923_v26 = vpop.f32.mrb[115].mxu1  ;;  %v2001_v0 = vmax.f32 %v1929_v62, 0.0 }
 0x3ed   :  { %v1924_v22 = vadd.f32 %v7935_v19, %v1923_v26  ;;  %v1999_v37 = vmax.f32 %v1921_v5, 0.0  ;;  %v6852_v5 = vld [vmem:[#allocation17 + $0x18] sm:$0xff]  }
 0x3ee   :  { %v2002_v29 = vmax.f32 %v1932_v25, 0.0  ;;  %6593 = vmatprep.subr.bf16.mxu0 %v6852_v5 }
 0x3ef   :  { %v2000_v2 = vmax.f32 %v1924_v22, 0.0  ;;  %6594 = vmatpush3.bf16.msra.mxu0 %v6852_v5 }
 0x3f0   :  { %v2024_v24 = vpack.c.bf16 %v2002_v29, %v2001_v0 }
 0x3f1   :  { %v2023_v33 = vpack.c.bf16 %v2000_v2, %v1999_v37  ;;  %v6853_v37 = vld [vmem:[#allocation17 + $0x20] sm:$0xff]  }
 0x3f2   :  { %6595 = vmatprep.subr.bf16.mxu0 %v6853_v37 }
 0x3f3   :  { %6537 = vmatprep.mubr.msk.bf16.mxu0 %vm2070_vm2, %v2023_v33  ;;  %6596 = vmatpush3.bf16.msra.mxu0 %v6853_v37  ;;  %v6855_v33 = vld [vmem:[#allocation17 + $0x30] sm:$0xff]  }
 0x3f4   :  { %6538 = vmatmul.mubr.msk.bf16.gmra.mrb[144].mxu0 %vm2070_vm2, %v2024_v24  ;;  %v6854_v24 = vld [vmem:[#allocation17 + $0x28] sm:$0xff]  }
 0x3f5   :  { %6597 = vmatprep.subr.bf16.mxu0 %v6854_v24 }
 0x3f7   :  { %6598 = vmatpush3.bf16.msra.mxu0 %v6854_v24 }
 0x3f8   :  { %6599 = vmatprep.subr.bf16.mxu0 %v6855_v33 }
 0x3f9   :  { %v6503_v11 = vpop.f32.mrb[116].mxu1 }
 0x3fa   :  { %v1945_v6 = vadd.f32 %v6503_v11, %v7935_v19  ;;  %v1936_v23 = vpop.f32.mrb[117].mxu1 }
 0x3fb   :  { %v1937_v34 = vadd.f32 %v7935_v19, %v1936_v23  ;;  %v6504_v36 = vpop.f32.mrb[118].mxu1  ;;  %6600 = vmatpush3.bf16.msra.mxu0 %v6855_v33 }
 0x3fc   :  { %v1948_v10 = vadd.f32 %v6504_v36, %v7935_v19  ;;  %v1939_v9 = vpop.f32.mrb[119].mxu1  ;;  %v2005_v50 = vmax.f32 %v1945_v6, 0.0 }
 0x3fd   :  { %v1940_v39 = vadd.f32 %v7935_v19, %v1939_v9  ;;  %v2003_v27 = vmax.f32 %v1937_v34, 0.0 }
 0x3fe   :  { %v2006_v42 = vmax.f32 %v1948_v10, 0.0 }
 0x3ff   :  { %v2004_v47 = vmax.f32 %v1940_v39, 0.0 }
 0x400   :  { %v2026_v14 = vpack.c.bf16 %v2006_v42, %v2005_v50 }
 0x401   :  { %v2025_v52 = vpack.c.bf16 %v2004_v47, %v2003_v27 }
 0x403   :  { %6541 = vmatprep.mubr.msk.bf16.mxu0 %vm2070_vm2, %v2025_v52 }
 0x404   :  { %6542 = vmatmul.mubr.msk.bf16.gmra.mrb[148].mxu0 %vm2070_vm2, %v2026_v14 }
 0x409   :  { %v6507_v15 = vpop.f32.mrb[120].mxu1 }
 0x40a   :  { %v1961_v32 = vadd.f32 %v6507_v15, %v7935_v19  ;;  %v1952_v51 = vpop.f32.mrb[121].mxu1 }
 0x40b   :  { %v1953_v53 = vadd.f32 %v7935_v19, %v1952_v51  ;;  %v6508_v40 = vpop.f32.mrb[122].mxu1 }
 0x40c   :  { %v1964_v46 = vadd.f32 %v6508_v40, %v7935_v19  ;;  %v1955_v43 = vpop.f32.mrb[123].mxu1  ;;  %v2009_v4 = vmax.f32 %v1961_v32, 0.0 }
 0x40d   :  { %v1956_v54 = vadd.f32 %v7935_v19, %v1955_v43  ;;  %v2007_v8 = vmax.f32 %v1953_v53, 0.0 }
 0x40e   :  { %v2010_v28 = vmax.f32 %v1964_v46, 0.0 }
 0x40f   :  { %v2008_v49 = vmax.f32 %v1956_v54, 0.0 }
 0x410   :  { %v2028_v41 = vpack.c.bf16 %v2010_v28, %v2009_v4 }
 0x411   :  { %v2027_v55 = vpack.c.bf16 %v2008_v49, %v2007_v8 }
 0x413   :  { %6545 = vmatprep.mubr.msk.bf16.mxu0 %vm2070_vm2, %v2027_v55 }
 0x414   :  { %6546 = vmatmul.mubr.msk.bf16.gmra.mrb[152].mxu0 %vm2070_vm2, %v2028_v41 }
 0x419   :  { %v6511_v57 = vpop.f32.mrb[124].mxu1 }
 0x41a   :  { %v1977_v59 = vadd.f32 %v6511_v57, %v7935_v19  ;;  %v1968_v60 = vpop.f32.mrb[125].mxu1 }
 0x41b   :  { %v1969_v63 = vadd.f32 %v7935_v19, %v1968_v60  ;;  %v6512_v3 = vpop.f32.mrb[126].mxu1 }
 0x41c   :  { %v1980_v16 = vadd.f32 %v6512_v3, %v7935_v19  ;;  %v1971_v31 = vpop.f32.mrb[127].mxu1  ;;  %v2013_v45 = vmax.f32 %v1977_v59, 0.0 }
 0x41d   :  { %v1972_v30 = vadd.f32 %v7935_v19, %v1971_v31  ;;  %v2011_v61 = vmax.f32 %v1969_v63, 0.0 }
 0x41e   :  { %v2014_v35 = vmax.f32 %v1980_v16, 0.0 }
 0x41f   :  { %v2012_v48 = vmax.f32 %v1972_v30, 0.0 }
 0x420   :  { %v2030_v38 = vpack.c.bf16 %v2014_v35, %v2013_v45 }
 0x421   :  { %v2029_v1 = vpack.c.bf16 %v2012_v48, %v2011_v61 }
 0x423   :  { %6549 = vmatprep.mubr.msk.bf16.mxu0 %vm2070_vm2, %v2029_v1 }
 0x424   :  { %6550 = vmatmul.mubr.msk.bf16.gmra.mrb[156].mxu0 %vm2070_vm2, %v2030_v38 }
 0x487   :  { %v6523_v17 = vpop.f32.mrb[128].mxu0 }
 0x488   :  { %v2162_v19 = vadd.f32 %v6523_v17, %v7985_v13  ;;  %v2153_v18 = vpop.f32.mrb[129].mxu0 }
 0x489   :  { %v2154_v58 = vadd.f32 %v7985_v13, %v2153_v18  ;;  %v6524_v12 = vpop.f32.mrb[130].mxu0 }
 0x48a   :  { %v2165_v62 = vadd.f32 %v6524_v12, %v7985_v13  ;;  %v2156_v20 = vpop.f32.mrb[131].mxu0  ;;  %v2282_v25 = vmax.f32 %v2162_v19, 0.0 }
 0x48b   :  { %v2157_v21 = vadd.f32 %v7985_v13, %v2156_v20  ;;  %v2280_v22 = vmax.f32 %v2154_v58, 0.0 }
 0x48c   :  { %v2283_v26 = vmax.f32 %v2165_v62, 0.0 }
 0x48d   :  { %v2281_v0 = vmax.f32 %v2157_v21, 0.0 }
 0x48e   :  { %v2313_v29 = vpack.c.bf16 %v2283_v26, %v2282_v25 }
 0x48f   :  { %v2312_v2 = vpack.c.bf16 %v2281_v0, %v2280_v22 }
 0x491   :  { %6555 = vmatprep.mubr.msk.bf16.mxu1 %vm2342_vm3, %v2312_v2 }
 0x492   :  { %6556 = vmatmul.mubr.msk.bf16.vlgmr.msra.gmra.mrb[128].mxu1 %vm2342_vm3, %v2313_v29 }
 0x497   :  { %v6527_v11 = vpop.f32.mrb[132].mxu0 }
 0x498   :  { %v2178_v6 = vadd.f32 %v6527_v11, %v7985_v13  ;;  %v2169_v23 = vpop.f32.mrb[133].mxu0 }
 0x499   :  { %v2170_v34 = vadd.f32 %v7985_v13, %v2169_v23  ;;  %v6528_v36 = vpop.f32.mrb[134].mxu0 }
 0x49a   :  { %v2181_v10 = vadd.f32 %v6528_v36, %v7985_v13  ;;  %v2172_v9 = vpop.f32.mrb[135].mxu0  ;;  %v2286_v50 = vmax.f32 %v2178_v6, 0.0 }
 0x49b   :  { %v2173_v39 = vadd.f32 %v7985_v13, %v2172_v9  ;;  %v2284_v27 = vmax.f32 %v2170_v34, 0.0 }
 0x49c   :  { %v2287_v42 = vmax.f32 %v2181_v10, 0.0 }
 0x49d   :  { %v2285_v47 = vmax.f32 %v2173_v39, 0.0 }
 0x49e   :  { %v2315_v14 = vpack.c.bf16 %v2287_v42, %v2286_v50 }
 0x49f   :  { %v2314_v52 = vpack.c.bf16 %v2285_v47, %v2284_v27 }
 0x4a1   :  { %6559 = vmatprep.mubr.msk.bf16.mxu1 %vm2342_vm3, %v2314_v52 }
 0x4a2   :  { %6560 = vmatmul.mubr.msk.bf16.gmra.mrb[132].mxu1 %vm2342_vm3, %v2315_v14  ;;  %v6856_v14 = vld [vmem:[#allocation17 + $0x38] sm:$0xff]  }
 0x4a3   :  { %6601 = vmatprep.subr.bf16.mxu0 %v6856_v14 }
 0x4a4   :  { %6602 = vmatpush3.bf16.msra.mxu0 %v6856_v14 }
 0x4a7   :  { %v6531_v15 = vpop.f32.mrb[136].mxu0 }
 0x4a8   :  { %v2194_v32 = vadd.f32 %v6531_v15, %v7985_v13  ;;  %v2185_v51 = vpop.f32.mrb[137].mxu0 }
 0x4a9   :  { %v2186_v53 = vadd.f32 %v7985_v13, %v2185_v51  ;;  %v6532_v40 = vpop.f32.mrb[138].mxu0 }
 0x4aa   :  { %v2197_v46 = vadd.f32 %v6532_v40, %v7985_v13  ;;  %v2188_v43 = vpop.f32.mrb[139].mxu0  ;;  %v2290_v4 = vmax.f32 %v2194_v32, 0.0 }
 0x4ab   :  { %v2189_v54 = vadd.f32 %v7985_v13, %v2188_v43  ;;  %v2288_v8 = vmax.f32 %v2186_v53, 0.0 }
 0x4ac   :  { %v2291_v28 = vmax.f32 %v2197_v46, 0.0 }
 0x4ad   :  { %v2289_v49 = vmax.f32 %v2189_v54, 0.0 }
 0x4ae   :  { %v2317_v41 = vpack.c.bf16 %v2291_v28, %v2290_v4 }
 0x4af   :  { %v2316_v55 = vpack.c.bf16 %v2289_v49, %v2288_v8 }
 0x4b1   :  { %6563 = vmatprep.mubr.msk.bf16.mxu1 %vm2342_vm3, %v2316_v55 }
 0x4b2   :  { %6564 = vmatmul.mubr.msk.bf16.gmra.mrb[136].mxu1 %vm2342_vm3, %v2317_v41 }
 0x4b7   :  { %v6535_v57 = vpop.f32.mrb[140].mxu0 }
 0x4b8   :  { %v2210_v59 = vadd.f32 %v6535_v57, %v7985_v13  ;;  %v2201_v60 = vpop.f32.mrb[141].mxu0 }
 0x4b9   :  { %v2202_v63 = vadd.f32 %v7985_v13, %v2201_v60  ;;  %v6536_v3 = vpop.f32.mrb[142].mxu0 }
 0x4ba   :  { %v2213_v16 = vadd.f32 %v6536_v3, %v7985_v13  ;;  %v2204_v31 = vpop.f32.mrb[143].mxu0  ;;  %v2294_v45 = vmax.f32 %v2210_v59, 0.0 }
 0x4bb   :  { %v2205_v30 = vadd.f32 %v7985_v13, %v2204_v31  ;;  %v2292_v61 = vmax.f32 %v2202_v63, 0.0 }
 0x4bc   :  { %v2295_v35 = vmax.f32 %v2213_v16, 0.0 }
 0x4bd   :  { %v2293_v48 = vmax.f32 %v2205_v30, 0.0 }
 0x4be   :  { %v2319_v38 = vpack.c.bf16 %v2295_v35, %v2294_v45  ;;  %v6857_v45 = vld [vmem:[#allocation20] sm:$0x3f]  }
 0x4bf   :  { %v2318_v1 = vpack.c.bf16 %v2293_v48, %v2292_v61  ;;  %6758 = vmatprep.subr.msk.bf16.mxu1 %vm2391_vm1, %v6857_v45  ;;  %v2948_v35 = vsel %vm2391_vm1, %v6857_v45, 0  ;;  %v8037_v61 = vld [vmem:[#allocation16] ss:$0 sm:$0xff] }
 0x4c0   :  { %6636 = vmatpush3.bf16.msra.mxu1 %v2948_v35 }
 0x4c1   :  { %6567 = vmatprep.mubr.msk.bf16.mxu1 %vm2342_vm3, %v2318_v1 }
 0x4c2   :  { %6568 = vmatmul.mubr.msk.bf16.gmra.mrb[140].mxu1 %vm2342_vm3, %v2319_v38 }
 0x4c7   :  { %v6539_v44 = vpop.f32.mrb[144].mxu0 }
 0x4c8   :  { %v2226_v7 = vadd.f32 %v6539_v44, %v7985_v13  ;;  %v2217_v56 = vpop.f32.mrb[145].mxu0 }
 0x4c9   :  { %v2218_v17 = vadd.f32 %v7985_v13, %v2217_v56  ;;  %v6540_v19 = vpop.f32.mrb[146].mxu0 }
 0x4ca   :  { %v2229_v18 = vadd.f32 %v6540_v19, %v7985_v13  ;;  %v2220_v58 = vpop.f32.mrb[147].mxu0  ;;  %v2298_v62 = vmax.f32 %v2226_v7, 0.0 }
 0x4cb   :  { %v2221_v12 = vadd.f32 %v7985_v13, %v2220_v58  ;;  %v2296_v5 = vmax.f32 %v2218_v17, 0.0 }
 0x4cc   :  { %v2299_v20 = vmax.f32 %v2229_v18, 0.0 }
 0x4cd   :  { %v2297_v21 = vmax.f32 %v2221_v12, 0.0 }
 0x4ce   :  { %v2321_v25 = vpack.c.bf16 %v2299_v20, %v2298_v62 }
 0x4cf   :  { %v2320_v26 = vpack.c.bf16 %v2297_v21, %v2296_v5 }
 0x4d1   :  { %6571 = vmatprep.mubr.msk.bf16.mxu1 %vm2342_vm3, %v2320_v26 }
 0x4d2   :  { %6572 = vmatmul.mubr.msk.bf16.gmra.mrb[144].mxu1 %vm2342_vm3, %v2321_v25 }
 0x4d7   :  { %v6543_v22 = vpop.f32.mrb[148].mxu0 }
 0x4d8   :  { %v2242_v0 = vadd.f32 %v6543_v22, %v7985_v13  ;;  %v2233_v29 = vpop.f32.mrb[149].mxu0 }
 0x4d9   :  { %v2234_v37 = vadd.f32 %v7985_v13, %v2233_v29  ;;  %v6544_v2 = vpop.f32.mrb[150].mxu0 }
 0x4da   :  { %v2245_v24 = vadd.f32 %v6544_v2, %v7985_v13  ;;  %v2236_v33 = vpop.f32.mrb[151].mxu0  ;;  %v2302_v6 = vmax.f32 %v2242_v0, 0.0 }
 0x4db   :  { %v2237_v11 = vadd.f32 %v7985_v13, %v2236_v33  ;;  %v2300_v34 = vmax.f32 %v2234_v37, 0.0 }
 0x4dc   :  { %v2303_v23 = vmax.f32 %v2245_v24, 0.0 }
 0x4dd   :  { %v2301_v36 = vmax.f32 %v2237_v11, 0.0 }
 0x4de   :  { %v2323_v10 = vpack.c.bf16 %v2303_v23, %v2302_v6 }
 0x4df   :  { %v2322_v9 = vpack.c.bf16 %v2301_v36, %v2300_v34 }
 0x4e1   :  { %6575 = vmatprep.mubr.msk.bf16.mxu1 %vm2342_vm3, %v2322_v9 }
 0x4e2   :  { %6576 = vmatmul.mubr.msk.bf16.gmra.mrb[148].mxu1 %vm2342_vm3, %v2323_v10 }
 0x4e7   :  { %v6547_v39 = vpop.f32.mrb[152].mxu0 }
 0x4e8   :  { %v2258_v50 = vadd.f32 %v6547_v39, %v7985_v13  ;;  %v2249_v42 = vpop.f32.mrb[153].mxu0 }
 0x4e9   :  { %v2250_v27 = vadd.f32 %v7985_v13, %v2249_v42  ;;  %v6548_v47 = vpop.f32.mrb[154].mxu0 }
 0x4ea   :  { %v2261_v52 = vadd.f32 %v6548_v47, %v7985_v13  ;;  %v2252_v15 = vpop.f32.mrb[155].mxu0  ;;  %v2306_v51 = vmax.f32 %v2258_v50, 0.0 }
 0x4eb   :  { %v2253_v32 = vadd.f32 %v7985_v13, %v2252_v15  ;;  %v2304_v40 = vmax.f32 %v2250_v27, 0.0 }
 0x4ec   :  { %v2307_v53 = vmax.f32 %v2261_v52, 0.0 }
 0x4ed   :  { %v2305_v46 = vmax.f32 %v2253_v32, 0.0 }
 0x4ee   :  { %v2325_v43 = vpack.c.bf16 %v2307_v53, %v2306_v51 }
 0x4ef   :  { %v2324_v54 = vpack.c.bf16 %v2305_v46, %v2304_v40 }
 0x4f1   :  { %6579 = vmatprep.mubr.msk.bf16.mxu1 %vm2342_vm3, %v2324_v54 }
 0x4f2   :  { %6580 = vmatmul.mubr.msk.bf16.gmra.mrb[152].mxu1 %vm2342_vm3, %v2325_v43 }
 0x4f7   :  { %v6551_v4 = vpop.f32.mrb[156].mxu0 }
 0x4f8   :  { %v2274_v28 = vadd.f32 %v6551_v4, %v7985_v13  ;;  %v2265_v8 = vpop.f32.mrb[157].mxu0 }
 0x4f9   :  { %v2266_v49 = vadd.f32 %v7985_v13, %v2265_v8  ;;  %v6552_v41 = vpop.f32.mrb[158].mxu0 }
 0x4fa   :  { %v2277_v55 = vadd.f32 %v6552_v41, %v7985_v13  ;;  %v2268_v57 = vpop.f32.mrb[159].mxu0  ;;  %v2310_v60 = vmax.f32 %v2274_v28, 0.0 }
 0x4fb   :  { %v2269_v59 = vadd.f32 %v7985_v13, %v2268_v57  ;;  %v2308_v3 = vmax.f32 %v2266_v49, 0.0 }
 0x4fc   :  { %v2311_v63 = vmax.f32 %v2277_v55, 0.0 }
 0x4fd   :  { %v2309_v16 = vmax.f32 %v2269_v59, 0.0 }
 0x4fe   :  { %v2327_v31 = vpack.c.bf16 %v2311_v63, %v2310_v60 }
 0x4ff   :  { %v2326_v30 = vpack.c.bf16 %v2309_v16, %v2308_v3 }
 0x501   :  { %6583 = vmatprep.mubr.msk.bf16.mxu1 %vm2342_vm3, %v2326_v30 }
 0x502   :  { %6584 = vmatmul.mubr.msk.bf16.gmra.mrb[156].mxu1 %vm2342_vm3, %v2327_v31 }
 0x565   :  { %v6557_v48 = vpop.f32.mrb[128].mxu1 }
 0x566   :  { %v2438_v13 = vadd.f32 %v6557_v48, %v8037_v61  ;;  %v2429_v38 = vpop.f32.mrb[129].mxu1 }
 0x567   :  { %v2430_v1 = vadd.f32 %v8037_v61, %v2429_v38  ;;  %v6558_v44 = vpop.f32.mrb[130].mxu1 }
 0x568   :  { %2559 = vst.msk [vmem:[#allocation30 + $0x10] sm:$0xff] %vm2556_vm4, %v2438_v13  ;;  %v2441_v7 = vadd.f32 %v6558_v44, %v8037_v61  ;;  %v2432_v56 = vpop.f32.mrb[131].mxu1 }
 0x569   :  { %2557 = vst.msk [vmem:[#allocation30] sm:$0xff] %vm2556_vm4, %v2430_v1  ;;  %v2433_v17 = vadd.f32 %v8037_v61, %v2432_v56 }
 0x56a   :  { %2560 = vst.msk [vmem:[#allocation30 + $0x18] sm:$0xff] %vm2556_vm4, %v2441_v7  ;;  %v2590_v19 = vpack.c.bf16 %v2441_v7, %v2438_v13 }
 0x56b   :  { %2558 = vst.msk [vmem:[#allocation30 + $0x8] sm:$0xff] %vm2556_vm4, %v2433_v17  ;;  %v2589_v18 = vpack.c.bf16 %v2433_v17, %v2430_v1 }
 0x56d   :  { %6603 = vmatprep.mubr.bf16.mxu0 %v2589_v18 }
 0x56e   :  { %6604 = vmatmul.mubr.bf16.vlgmr.msra.gmra.mrb[160].mxu0 %v2590_v19 }
 0x575   :  { %v6561_v58 = vpop.f32.mrb[132].mxu1 }
 0x576   :  { %v2454_v12 = vadd.f32 %v6561_v58, %v8037_v61  ;;  %v2445_v62 = vpop.f32.mrb[133].mxu1 }
 0x577   :  { %v2446_v20 = vadd.f32 %v8037_v61, %v2445_v62  ;;  %v6562_v5 = vpop.f32.mrb[134].mxu1 }
 0x578   :  { %2563 = vst.msk [vmem:[#allocation30 + $0x30] sm:$0xff] %vm2556_vm4, %v2454_v12  ;;  %v2457_v21 = vadd.f32 %v6562_v5, %v8037_v61  ;;  %v2448_v25 = vpop.f32.mrb[135].mxu1 }
 0x579   :  { %2561 = vst.msk [vmem:[#allocation30 + $0x20] sm:$0xff] %vm2556_vm4, %v2446_v20  ;;  %v2449_v26 = vadd.f32 %v8037_v61, %v2448_v25 }
 0x57a   :  { %2564 = vst.msk [vmem:[#allocation30 + $0x38] sm:$0xff] %vm2556_vm4, %v2457_v21  ;;  %v2592_v22 = vpack.c.bf16 %v2457_v21, %v2454_v12 }
 0x57b   :  { %2562 = vst.msk [vmem:[#allocation30 + $0x28] sm:$0xff] %vm2556_vm4, %v2449_v26  ;;  %v2591_v0 = vpack.c.bf16 %v2449_v26, %v2446_v20  ;;  %v6858_v26 = vld [vmem:[#allocation23] sm:$0xff]  }
 0x57c   :  { %6669 = vmatprep.subr.bf16.mxu0 %v6858_v26 }
 0x57d   :  { %6607 = vmatprep.mubr.bf16.mxu0 %v2591_v0  ;;  %v8103_v0 = vld [vmem:[#allocation19] ss:$0 sm:$0xff]  ;;  %6670 = vmatpush3.bf16.msra.mxu0 %v6858_v26 }
 0x57e   :  { %6608 = vmatmul.mubr.bf16.gmra.mrb[164].mxu0 %v2592_v22  ;;  %v6859_v22 = vld [vmem:[#allocation23 + $0x8] sm:$0xff]  }
 0x57f   :  { %6671 = vmatprep.subr.bf16.mxu0 %v6859_v22 }
 0x581   :  { %6672 = vmatpush3.bf16.msra.mxu0 %v6859_v22 }
 0x585   :  { %v6565_v29 = vpop.f32.mrb[136].mxu1 }
 0x586   :  { %v2470_v37 = vadd.f32 %v6565_v29, %v8037_v61  ;;  %v2461_v2 = vpop.f32.mrb[137].mxu1  ;;  %v6860_v29 = vld [vmem:[#allocation23 + $0x10] sm:$0xff]  }
 0x587   :  { %v2462_v24 = vadd.f32 %v8037_v61, %v2461_v2  ;;  %v6566_v33 = vpop.f32.mrb[138].mxu1  ;;  %6673 = vmatprep.subr.bf16.mxu0 %v6860_v29 }
 0x588   :  { %2567 = vst.msk [vmem:[#allocation30 + $0x50] sm:$0xff] %vm2556_vm4, %v2470_v37  ;;  %v2473_v11 = vadd.f32 %v6566_v33, %v8037_v61  ;;  %v2464_v6 = vpop.f32.mrb[139].mxu1  ;;  %6674 = vmatpush3.bf16.msra.mxu0 %v6860_v29 }
 0x589   :  { %2565 = vst.msk [vmem:[#allocation30 + $0x40] sm:$0xff] %vm2556_vm4, %v2462_v24  ;;  %v2465_v23 = vadd.f32 %v8037_v61, %v2464_v6 }
 0x58a   :  { %2568 = vst.msk [vmem:[#allocation30 + $0x58] sm:$0xff] %vm2556_vm4, %v2473_v11  ;;  %v2594_v34 = vpack.c.bf16 %v2473_v11, %v2470_v37 }
 0x58b   :  { %2566 = vst.msk [vmem:[#allocation30 + $0x48] sm:$0xff] %vm2556_vm4, %v2465_v23  ;;  %v2593_v36 = vpack.c.bf16 %v2465_v23, %v2462_v24  ;;  %v6861_v23 = vld [vmem:[#allocation23 + $0x18] sm:$0xff]  }
 0x58c   :  { %6675 = vmatprep.subr.bf16.mxu0 %v6861_v23 }
 0x58d   :  { %6611 = vmatprep.mubr.bf16.mxu0 %v2593_v36  ;;  %6676 = vmatpush3.bf16.msra.mxu0 %v6861_v23 }
 0x58e   :  { %6612 = vmatmul.mubr.bf16.gmra.mrb[168].mxu0 %v2594_v34 }
 0x595   :  { %v6569_v10 = vpop.f32.mrb[140].mxu1 }
 0x596   :  { %v2486_v9 = vadd.f32 %v6569_v10, %v8037_v61  ;;  %v2477_v39 = vpop.f32.mrb[141].mxu1 }
 0x597   :  { %v2478_v50 = vadd.f32 %v8037_v61, %v2477_v39  ;;  %v6570_v42 = vpop.f32.mrb[142].mxu1 }
 0x598   :  { %2571 = vst.msk [vmem:[#allocation30 + $0x70] sm:$0xff] %vm2556_vm4, %v2486_v9  ;;  %v2489_v27 = vadd.f32 %v6570_v42, %v8037_v61  ;;  %v2480_v47 = vpop.f32.mrb[143].mxu1 }
 0x599   :  { %2569 = vst.msk [vmem:[#allocation30 + $0x60] sm:$0xff] %vm2556_vm4, %v2478_v50  ;;  %v2481_v14 = vadd.f32 %v8037_v61, %v2480_v47 }
 0x59a   :  { %2572 = vst.msk [vmem:[#allocation30 + $0x78] sm:$0xff] %vm2556_vm4, %v2489_v27  ;;  %v2596_v52 = vpack.c.bf16 %v2489_v27, %v2486_v9 }
 0x59b   :  { %2570 = vst.msk [vmem:[#allocation30 + $0x68] sm:$0xff] %vm2556_vm4, %v2481_v14  ;;  %v2595_v15 = vpack.c.bf16 %v2481_v14, %v2478_v50 }
 0x59d   :  { %6615 = vmatprep.mubr.bf16.mxu0 %v2595_v15 }
 0x59e   :  { %6616 = vmatmul.mubr.bf16.gmra.mrb[172].mxu0 %v2596_v52 }
 0x5a5   :  { %v6573_v32 = vpop.f32.mrb[144].mxu1 }
 0x5a6   :  { %v2502_v51 = vadd.f32 %v6573_v32, %v8037_v61  ;;  %v2493_v53 = vpop.f32.mrb[145].mxu1 }
 0x5a7   :  { %v2494_v40 = vadd.f32 %v8037_v61, %v2493_v53  ;;  %v6574_v46 = vpop.f32.mrb[146].mxu1 }
 0x5a8   :  { %2575 = vst.msk [vmem:[#allocation30 + $0x90] sm:$0xff] %vm2556_vm4, %v2502_v51  ;;  %v2505_v43 = vadd.f32 %v6574_v46, %v8037_v61  ;;  %v2496_v54 = vpop.f32.mrb[147].mxu1 }
 0x5a9   :  { %2573 = vst.msk [vmem:[#allocation30 + $0x80] sm:$0xff] %vm2556_vm4, %v2494_v40  ;;  %v2497_v4 = vadd.f32 %v8037_v61, %v2496_v54 }
 0x5aa   :  { %2576 = vst.msk [vmem:[#allocation30 + $0x98] sm:$0xff] %vm2556_vm4, %v2505_v43  ;;  %v2598_v28 = vpack.c.bf16 %v2505_v43, %v2502_v51 }
 0x5ab   :  { %2574 = vst.msk [vmem:[#allocation30 + $0x88] sm:$0xff] %vm2556_vm4, %v2497_v4  ;;  %v2597_v8 = vpack.c.bf16 %v2497_v4, %v2494_v40 }
 0x5ad   :  { %6619 = vmatprep.mubr.bf16.mxu0 %v2597_v8 }
 0x5ae   :  { %6620 = vmatmul.mubr.bf16.gmra.mrb[176].mxu0 %v2598_v28 }
 0x5b5   :  { %v6577_v49 = vpop.f32.mrb[148].mxu1 }
 0x5b6   :  { %v2518_v41 = vadd.f32 %v6577_v49, %v8037_v61  ;;  %v2509_v55 = vpop.f32.mrb[149].mxu1 }
 0x5b7   :  { %v2510_v57 = vadd.f32 %v8037_v61, %v2509_v55  ;;  %v6578_v59 = vpop.f32.mrb[150].mxu1 }
 0x5b8   :  { %2579 = vst.msk [vmem:[#allocation30 + $0xb0] sm:$0xff] %vm2556_vm4, %v2518_v41  ;;  %v2521_v60 = vadd.f32 %v6578_v59, %v8037_v61  ;;  %v2512_v63 = vpop.f32.mrb[151].mxu1 }
 0x5b9   :  { %2577 = vst.msk [vmem:[#allocation30 + $0xa0] sm:$0xff] %vm2556_vm4, %v2510_v57  ;;  %v2513_v3 = vadd.f32 %v8037_v61, %v2512_v63 }
 0x5ba   :  { %2580 = vst.msk [vmem:[#allocation30 + $0xb8] sm:$0xff] %vm2556_vm4, %v2521_v60  ;;  %v2600_v16 = vpack.c.bf16 %v2521_v60, %v2518_v41 }
 0x5bb   :  { %2578 = vst.msk [vmem:[#allocation30 + $0xa8] sm:$0xff] %vm2556_vm4, %v2513_v3  ;;  %v2599_v31 = vpack.c.bf16 %v2513_v3, %v2510_v57 }
 0x5bd   :  { %6623 = vmatprep.mubr.bf16.mxu0 %v2599_v31 }
 0x5be   :  { %6624 = vmatmul.mubr.bf16.gmra.mrb[180].mxu0 %v2600_v16 }
 0x5c5   :  { %v6581_v30 = vpop.f32.mrb[152].mxu1 }
 0x5c6   :  { %v2534_v45 = vadd.f32 %v6581_v30, %v8037_v61  ;;  %v2525_v35 = vpop.f32.mrb[153].mxu1 }
 0x5c7   :  { %v2526_v48 = vadd.f32 %v8037_v61, %v2525_v35  ;;  %v6582_v13 = vpop.f32.mrb[154].mxu1 }
 0x5c8   :  { %2583 = vst.msk [vmem:[#allocation30 + $0xd0] sm:$0xff] %vm2556_vm4, %v2534_v45  ;;  %v2537_v38 = vadd.f32 %v6582_v13, %v8037_v61  ;;  %v2528_v1 = vpop.f32.mrb[155].mxu1 }
 0x5c9   :  { %2581 = vst.msk [vmem:[#allocation30 + $0xc0] sm:$0xff] %vm2556_vm4, %v2526_v48  ;;  %v2529_v44 = vadd.f32 %v8037_v61, %v2528_v1 }
 0x5ca   :  { %2584 = vst.msk [vmem:[#allocation30 + $0xd8] sm:$0xff] %vm2556_vm4, %v2537_v38  ;;  %v2602_v7 = vpack.c.bf16 %v2537_v38, %v2534_v45 }
 0x5cb   :  { %2582 = vst.msk [vmem:[#allocation30 + $0xc8] sm:$0xff] %vm2556_vm4, %v2529_v44  ;;  %v2601_v56 = vpack.c.bf16 %v2529_v44, %v2526_v48 }
 0x5cd   :  { %6627 = vmatprep.mubr.bf16.mxu0 %v2601_v56 }
 0x5ce   :  { %6628 = vmatmul.mubr.bf16.gmra.mrb[184].mxu0 %v2602_v7 }
 0x5d5   :  { %v6585_v17 = vpop.f32.mrb[156].mxu1 }
 0x5d6   :  { %v2550_v19 = vadd.f32 %v6585_v17, %v8037_v61  ;;  %v2541_v18 = vpop.f32.mrb[157].mxu1 }
 0x5d7   :  { %v2542_v58 = vadd.f32 %v8037_v61, %v2541_v18  ;;  %v6586_v12 = vpop.f32.mrb[158].mxu1 }
 0x5d8   :  { %2587 = vst.msk [vmem:[#allocation30 + $0xf0] sm:$0xff] %vm2556_vm4, %v2550_v19  ;;  %v2553_v62 = vadd.f32 %v6586_v12, %v8037_v61  ;;  %v2544_v20 = vpop.f32.mrb[159].mxu1 }
 0x5d9   :  { %2585 = vst.msk [vmem:[#allocation30 + $0xe0] sm:$0xff] %vm2556_vm4, %v2542_v58  ;;  %v2545_v5 = vadd.f32 %v8037_v61, %v2544_v20 }
 0x5da   :  { %2588 = vst.msk [vmem:[#allocation30 + $0xf8] sm:$0xff] %vm2556_vm4, %v2553_v62  ;;  %v2604_v21 = vpack.c.bf16 %v2553_v62, %v2550_v19 }
 0x5db   :  { %2586 = vst.msk [vmem:[#allocation30 + $0xe8] sm:$0xff] %vm2556_vm4, %v2545_v5  ;;  %v2603_v25 = vpack.c.bf16 %v2545_v5, %v2542_v58 }
 0x5dd   :  { %6631 = vmatprep.mubr.bf16.mxu0 %v2603_v25 }
 0x5de   :  { %6632 = vmatmul.mubr.bf16.gmra.mrb[188].mxu0 %v2604_v21 }
 0x641   :  { %v6605_v37 = vpop.f32.mrb[160].mxu0 }
 0x642   :  { %v2719_v2 = vadd.f32 %v6605_v37, %v8103_v0  ;;  %v2710_v61 = vpop.f32.mrb[161].mxu0 }
 0x643   :  { %v2711_v24 = vadd.f32 %v8103_v0, %v2710_v61  ;;  %v6606_v33 = vpop.f32.mrb[162].mxu0 }
 0x644   :  { %v2722_v11 = vadd.f32 %v6606_v33, %v8103_v0  ;;  %v2713_v6 = vpop.f32.mrb[163].mxu0  ;;  %v2839_v36 = vmax.f32 %v2719_v2, 0.0 }
 0x645   :  { %v2714_v34 = vadd.f32 %v8103_v0, %v2713_v6  ;;  %v2837_v9 = vmax.f32 %v2711_v24, 0.0 }
 0x646   :  { %v2840_v10 = vmax.f32 %v2722_v11, 0.0 }
 0x647   :  { %v2838_v39 = vmax.f32 %v2714_v34, 0.0 }
 0x648   :  { %v2870_v50 = vpack.c.bf16 %v2840_v10, %v2839_v36 }
 0x649   :  { %v2869_v42 = vpack.c.bf16 %v2838_v39, %v2837_v9 }
 0x64b   :  { %6637 = vmatprep.mubr.msk.bf16.mxu1 %vm2342_vm3, %v2869_v42 }
 0x64c   :  { %6638 = vmatmul.mubr.msk.bf16.vlgmr.msra.gmra.mrb[160].mxu1 %vm2342_vm3, %v2870_v50 }
 0x651   :  { %v6609_v27 = vpop.f32.mrb[164].mxu0 }
 0x652   :  { %v2735_v47 = vadd.f32 %v6609_v27, %v8103_v0  ;;  %v2726_v14 = vpop.f32.mrb[165].mxu0 }
 0x653   :  { %v2727_v52 = vadd.f32 %v8103_v0, %v2726_v14  ;;  %v6610_v15 = vpop.f32.mrb[166].mxu0 }
 0x654   :  { %v2738_v32 = vadd.f32 %v6610_v15, %v8103_v0  ;;  %v2729_v51 = vpop.f32.mrb[167].mxu0  ;;  %v2843_v40 = vmax.f32 %v2735_v47, 0.0 }
 0x655   :  { %v2730_v53 = vadd.f32 %v8103_v0, %v2729_v51  ;;  %v2841_v43 = vmax.f32 %v2727_v52, 0.0 }
 0x656   :  { %v2844_v46 = vmax.f32 %v2738_v32, 0.0 }
 0x657   :  { %v2842_v54 = vmax.f32 %v2730_v53, 0.0 }
 0x658   :  { %v2872_v4 = vpack.c.bf16 %v2844_v46, %v2843_v40 }
 0x659   :  { %v2871_v28 = vpack.c.bf16 %v2842_v54, %v2841_v43 }
 0x65b   :  { %6641 = vmatprep.mubr.msk.bf16.mxu1 %vm2342_vm3, %v2871_v28 }
 0x65c   :  { %6642 = vmatmul.mubr.msk.bf16.gmra.mrb[164].mxu1 %vm2342_vm3, %v2872_v4 }
 0x661   :  { %v6613_v8 = vpop.f32.mrb[168].mxu0 }
 0x662   :  { %v2751_v49 = vadd.f32 %v6613_v8, %v8103_v0  ;;  %v2742_v41 = vpop.f32.mrb[169].mxu0 }
 0x663   :  { %v2743_v55 = vadd.f32 %v8103_v0, %v2742_v41  ;;  %v6614_v57 = vpop.f32.mrb[170].mxu0 }
 0x664   :  { %v2754_v59 = vadd.f32 %v6614_v57, %v8103_v0  ;;  %v2745_v60 = vpop.f32.mrb[171].mxu0  ;;  %v2847_v3 = vmax.f32 %v2751_v49, 0.0 }
 0x665   :  { %v2746_v63 = vadd.f32 %v8103_v0, %v2745_v60  ;;  %v2845_v31 = vmax.f32 %v2743_v55, 0.0 }
 0x666   :  { %v2848_v16 = vmax.f32 %v2754_v59, 0.0 }
 0x667   :  { %v2846_v30 = vmax.f32 %v2746_v63, 0.0 }
 0x668   :  { %v2874_v45 = vpack.c.bf16 %v2848_v16, %v2847_v3 }
 0x669   :  { %v2873_v35 = vpack.c.bf16 %v2846_v30, %v2845_v31 }
 0x66b   :  { %6645 = vmatprep.mubr.msk.bf16.mxu1 %vm2342_vm3, %v2873_v35 }
 0x66c   :  { %6646 = vmatmul.mubr.msk.bf16.gmra.mrb[168].mxu1 %vm2342_vm3, %v2874_v45 }
 0x671   :  { %v6617_v48 = vpop.f32.mrb[172].mxu0 }
 0x672   :  { %v2767_v13 = vadd.f32 %v6617_v48, %v8103_v0  ;;  %v2758_v38 = vpop.f32.mrb[173].mxu0 }
 0x673   :  { %v2759_v1 = vadd.f32 %v8103_v0, %v2758_v38  ;;  %v6618_v44 = vpop.f32.mrb[174].mxu0 }
 0x674   :  { %v2770_v7 = vadd.f32 %v6618_v44, %v8103_v0  ;;  %v2761_v56 = vpop.f32.mrb[175].mxu0  ;;  %v2851_v19 = vmax.f32 %v2767_v13, 0.0 }
 0x675   :  { %v2762_v17 = vadd.f32 %v8103_v0, %v2761_v56  ;;  %v2849_v58 = vmax.f32 %v2759_v1, 0.0 }
 0x676   :  { %v2852_v18 = vmax.f32 %v2770_v7, 0.0 }
 0x677   :  { %v2850_v12 = vmax.f32 %v2762_v17, 0.0  ;;  %v6862_v17 = vld [vmem:[#allocation26] ss:$28 sps:$4 sm:$0xff]  }
 0x678   :  { %v2876_v62 = vpack.c.bf16 %v2852_v18, %v2851_v19  ;;  %v6864_v19 = vld [vmem:[#allocation26 + $0x4] ss:$28 sps:$4 sm:$0xff]   ;;  %v6867_v18 = vld [vmem:[#allocation26 + $0x3c] ss:$28 sps:$4 sm:$0xff]  }
 0x679   :  { %v2875_v20 = vpack.c.bf16 %v2850_v12, %v2849_v58  ;;  %3844 = vmatprep.subr.bf16.mxu1 %v6864_v19  ;;  %v8153_v58 = vld [vmem:[#allocation22] ss:$0 sm:$0xff]  ;;  %v6865_v12 = vld [vmem:[#allocation26 + $0x38] ss:$28 sps:$4 sm:$0xff]  }
 0x67a   :  { %3845 = vmatpush1.bf16.msra.mxu1 %v6862_v17 }
 0x67b   :  { %6649 = vmatprep.mubr.msk.bf16.mxu1 %vm2342_vm3, %v2875_v20  ;;  %3846 = vmatprep.subr.bf16.mxu1 %v6867_v18 }
 0x67c   :  { %6650 = vmatmul.mubr.msk.bf16.gmra.mrb[172].mxu1 %vm2342_vm3, %v2876_v62  ;;  %v6879_v62 = vld [vmem:[#allocation26 + $0xc] ss:$28 sps:$4 sm:$0xff]  }
 0x67d   :  { %4037 = vmatprep.subr.bf16.mxu0 %v6879_v62 }
 0x67e   :  { %3847 = vmatpush1.bf16.msra.mxu1 %v6865_v12 }
 0x681   :  { %v6621_v5 = vpop.f32.mrb[176].mxu0 }
 0x682   :  { %v2783_v21 = vadd.f32 %v6621_v5, %v8103_v0  ;;  %v2774_v25 = vpop.f32.mrb[177].mxu0 }
 0x683   :  { %v2775_v26 = vadd.f32 %v8103_v0, %v2774_v25  ;;  %v6622_v22 = vpop.f32.mrb[178].mxu0 }
 0x684   :  { %v2786_v29 = vadd.f32 %v6622_v22, %v8103_v0  ;;  %v2777_v37 = vpop.f32.mrb[179].mxu0  ;;  %v2855_v61 = vmax.f32 %v2783_v21, 0.0  ;;  %v6868_v22 = vld [vmem:[#allocation26 + $0x70] ss:$28 sps:$4 sm:$0xff]  }
 0x685   :  { %v2778_v2 = vadd.f32 %v8103_v0, %v2777_v37  ;;  %v2853_v33 = vmax.f32 %v2775_v26, 0.0 }
 0x686   :  { %v2856_v24 = vmax.f32 %v2786_v29, 0.0 }
 0x687   :  { %v2854_v11 = vmax.f32 %v2778_v2, 0.0  ;;  %v6873_v2 = vld [vmem:[#allocation26 + $0xac] ss:$28 sps:$4 sm:$0xff]  }
 0x688   :  { %v2878_v6 = vpack.c.bf16 %v2856_v24, %v2855_v61 }
 0x689   :  { %v2877_v23 = vpack.c.bf16 %v2854_v11, %v2853_v33 }
 0x68b   :  { %6653 = vmatprep.mubr.msk.bf16.mxu1 %vm2342_vm3, %v2877_v23  ;;  %v6871_v23 = vld [vmem:[#allocation26 + $0xa8] ss:$28 sps:$4 sm:$0xff]  }
 0x68c   :  { %6654 = vmatmul.mubr.msk.bf16.gmra.mrb[176].mxu1 %vm2342_vm3, %v2878_v6 }
 0x691   :  { %v6625_v34 = vpop.f32.mrb[180].mxu0 }
 0x692   :  { %v2799_v36 = vadd.f32 %v6625_v34, %v8103_v0  ;;  %v2790_v10 = vpop.f32.mrb[181].mxu0 }
 0x693   :  { %v2791_v9 = vadd.f32 %v8103_v0, %v2790_v10  ;;  %v6626_v39 = vpop.f32.mrb[182].mxu0 }
 0x694   :  { %v2802_v50 = vadd.f32 %v6626_v39, %v8103_v0  ;;  %v2793_v42 = vpop.f32.mrb[183].mxu0  ;;  %v2859_v47 = vmax.f32 %v2799_v36, 0.0  ;;  %v6876_v36 = vld [vmem:[#allocation26 + $0xe4] ss:$28 sps:$4 sm:$0xff]  }
 0x695   :  { %v2794_v27 = vadd.f32 %v8103_v0, %v2793_v42  ;;  %v2857_v52 = vmax.f32 %v2791_v9, 0.0  ;;  %v6877_v9 = vld [vmem:[#allocation26 + $0x8] ss:$28 sps:$4 sm:$0xff]   ;;  %v6885_v42 = vld [vmem:[#allocation26 + $0x11c] ss:$28 sps:$4 sm:$0xff]  }
 0x696   :  { %v2860_v14 = vmax.f32 %v2802_v50, 0.0  ;;  %v6882_v39 = vld [vmem:[#allocation26 + $0x44] ss:$28 sps:$4 sm:$0xff]  }
 0x697   :  { %v2858_v15 = vmax.f32 %v2794_v27, 0.0  ;;  %v6874_v50 = vld [vmem:[#allocation26 + $0xe0] ss:$28 sps:$4 sm:$0xff]  }
 0x698   :  { %v2880_v32 = vpack.c.bf16 %v2860_v14, %v2859_v47  ;;  %v6880_v27 = vld [vmem:[#allocation26 + $0x40] ss:$28 sps:$4 sm:$0xff]   ;;  %v6883_v14 = vld [vmem:[#allocation26 + $0x118] ss:$28 sps:$4 sm:$0xff]  }
 0x699   :  { %v2879_v51 = vpack.c.bf16 %v2858_v15, %v2857_v52  ;;  %v6888_v47 = vld [vmem:[#allocation26 + $0x7c] ss:$28 sps:$4 sm:$0xff]   ;;  %v6894_v52 = vld [vmem:[#allocation26 + $0x154] ss:$28 sps:$4 sm:$0xff]  }
 0x69b   :  { %6657 = vmatprep.mubr.msk.bf16.mxu1 %vm2342_vm3, %v2879_v51 }
 0x69c   :  { %6658 = vmatmul.mubr.msk.bf16.gmra.mrb[180].mxu1 %vm2342_vm3, %v2880_v32  ;;  %v6886_v32 = vld [vmem:[#allocation26 + $0x78] ss:$28 sps:$4 sm:$0xff]  }
 0x6a1   :  { %v6629_v53 = vpop.f32.mrb[184].mxu0 }
 0x6a2   :  { %v2815_v40 = vadd.f32 %v6629_v53, %v8103_v0  ;;  %v2806_v46 = vpop.f32.mrb[185].mxu0 }
 0x6a3   :  { %v2807_v43 = vadd.f32 %v8103_v0, %v2806_v46  ;;  %v6630_v54 = vpop.f32.mrb[186].mxu0 }
 0x6a4   :  { %v2818_v4 = vadd.f32 %v6630_v54, %v8103_v0  ;;  %v2809_v28 = vpop.f32.mrb[187].mxu0  ;;  %v2863_v49 = vmax.f32 %v2815_v40, 0.0  ;;  %v6891_v40 = vld [vmem:[#allocation26 + $0xb4] ss:$28 sps:$4 sm:$0xff]  }
 0x6a5   :  { %v2810_v8 = vadd.f32 %v8103_v0, %v2809_v28  ;;  %v2861_v55 = vmax.f32 %v2807_v43, 0.0  ;;  %v6892_v54 = vld [vmem:[#allocation26 + $0x150] ss:$28 sps:$4 sm:$0xff]  }
 0x6a6   :  { %v2864_v41 = vmax.f32 %v2818_v4, 0.0 }
 0x6a7   :  { %v2862_v57 = vmax.f32 %v2810_v8, 0.0 }
 0x6a8   :  { %v2882_v59 = vpack.c.bf16 %v2864_v41, %v2863_v49  ;;  %v6889_v49 = vld [vmem:[#allocation26 + $0xb0] ss:$28 sps:$4 sm:$0xff]  }
 0x6a9   :  { %v2881_v60 = vpack.c.bf16 %v2862_v57, %v2861_v55  ;;  %v6897_v57 = vld [vmem:[#allocation26 + $0xec] ss:$28 sps:$4 sm:$0xff]  }
 0x6ab   :  { %6661 = vmatprep.mubr.msk.bf16.mxu1 %vm2342_vm3, %v2881_v60 }
 0x6ac   :  { %6662 = vmatmul.mubr.msk.bf16.gmra.mrb[184].mxu1 %vm2342_vm3, %v2882_v59 }
 0x6b1   :  { %v6633_v63 = vpop.f32.mrb[188].mxu0 }
 0x6b2   :  { %v2831_v3 = vadd.f32 %v6633_v63, %v8103_v0  ;;  %v2822_v16 = vpop.f32.mrb[189].mxu0 }
 0x6b3   :  { %v2823_v31 = vadd.f32 %v8103_v0, %v2822_v16  ;;  %v6634_v30 = vpop.f32.mrb[190].mxu0  ;;  %v6895_v16 = vld [vmem:[#allocation26 + $0xe8] ss:$28 sps:$4 sm:$0xff]  }
 0x6b4   :  { %v2834_v45 = vadd.f32 %v6634_v30, %v8103_v0  ;;  %v2825_v35 = vpop.f32.mrb[191].mxu0  ;;  %v2867_v13 = vmax.f32 %v2831_v3, 0.0  ;;  %v6898_v30 = vld [vmem:[#allocation26 + $0x120] ss:$28 sps:$4 sm:$0xff]  }
 0x6b5   :  { %v2826_v48 = vadd.f32 %v8103_v0, %v2825_v35  ;;  %v2865_v1 = vmax.f32 %v2823_v31, 0.0  ;;  %v6870_v0 = vld [vmem:[#allocation26 + $0x74] ss:$28 sps:$4 sm:$0xff]   ;;  %v6900_v31 = vld [vmem:[#allocation26 + $0x124] ss:$28 sps:$4 sm:$0xff]  }
 0x6b6   :  { %v2868_v38 = vmax.f32 %v2834_v45, 0.0  ;;  %3848 = vmatprep.subr.bf16.mxu1 %v6870_v0 }
 0x6b7   :  { %v2866_v44 = vmax.f32 %v2826_v48, 0.0  ;;  %3849 = vmatpush1.bf16.msra.mxu1 %v6868_v22 }
 0x6b8   :  { %v2884_v7 = vpack.c.bf16 %v2868_v38, %v2867_v13  ;;  %3850 = vmatprep.subr.bf16.mxu1 %v6873_v2 }
 0x6b9   :  { %v2883_v56 = vpack.c.bf16 %v2866_v44, %v2865_v1 }
 0x6bb   :  { %6665 = vmatprep.mubr.msk.bf16.mxu1 %vm2342_vm3, %v2883_v56  ;;  %3851 = vmatpush1.bf16.msra.mxu1 %v6871_v23 }
 0x6bc   :  { %6666 = vmatmul.mubr.msk.bf16.gmra.mrb[188].mxu1 %vm2342_vm3, %v2884_v7  ;;  %3852 = vmatprep.subr.bf16.mxu1 %v6876_v36 }
 0x6bf   :  { %3853 = vmatpush1.bf16.msra.mxu1 %v6874_v50 }
 0x6c0   :  { %3854 = vmatprep.subr.bf16.mxu1 %v6885_v42 }
 0x6c3   :  { %3855 = vmatpush1.bf16.msra.mxu1 %v6883_v14 }
 0x6c4   :  { %3856 = vmatprep.subr.bf16.mxu1 %v6894_v52 }
 0x6c7   :  { %3857 = vmatpush1.bf16.msra.mxu1 %v6892_v54 }
 0x71f   :  { %v6639_v20 = vpop.f32.mrb[160].mxu1 }
 0x720   :  { %v2993_v5 = vadd.f32 %v6639_v20, %v8153_v58  ;;  %v2984_v21 = vpop.f32.mrb[161].mxu1 }
 0x721   :  { %v2985_v25 = vadd.f32 %v8153_v58, %v2984_v21  ;;  %v6640_v26 = vpop.f32.mrb[162].mxu1 }
 0x722   :  { %v2996_v29 = vadd.f32 %v6640_v26, %v8153_v58  ;;  %v2987_v37 = vpop.f32.mrb[163].mxu1  ;;  %v3113_v24 = vmax.f32 %v2993_v5, 0.0 }
 0x723   :  { %v2988_v61 = vadd.f32 %v8153_v58, %v2987_v37  ;;  %v3111_v11 = vmax.f32 %v2985_v25, 0.0 }
 0x724   :  { %v3114_v33 = vmax.f32 %v2996_v29, 0.0 }
 0x725   :  { %v3112_v6 = vmax.f32 %v2988_v61, 0.0 }
 0x726   :  { %v3144_v34 = vpack.c.bf16 %v3114_v33, %v3113_v24 }
 0x727   :  { %v3143_v10 = vpack.c.bf16 %v3112_v6, %v3111_v11 }
 0x729   :  { %6677 = vmatprep.mubr.msk.bf16.mxu0 %vm2070_vm2, %v3143_v10 }
 0x72a   :  { %6678 = vmatmul.mubr.msk.bf16.vlgmr.msra.gmra.mrb[192].mxu0 %vm2070_vm2, %v3144_v34 }
 0x72b   :  { %4038 = vmatpush1.bf16.msra.mxu0 %v6877_v9 }
 0x72c   :  { %4039 = vmatprep.subr.bf16.mxu0 %v6882_v39 }
 0x72f   :  { %v6643_v15 = vpop.f32.mrb[164].mxu1  ;;  %4040 = vmatpush1.bf16.msra.mxu0 %v6880_v27 }
 0x730   :  { %v3009_v51 = vadd.f32 %v6643_v15, %v8153_v58  ;;  %v3000_v53 = vpop.f32.mrb[165].mxu1  ;;  %4041 = vmatprep.subr.bf16.mxu0 %v6888_v47 }
 0x731   :  { %v3001_v46 = vadd.f32 %v8153_v58, %v3000_v53  ;;  %v6644_v43 = vpop.f32.mrb[166].mxu1 }
 0x732   :  { %v3012_v4 = vadd.f32 %v6644_v43, %v8153_v58  ;;  %v3003_v28 = vpop.f32.mrb[167].mxu1  ;;  %v3117_v41 = vmax.f32 %v3009_v51, 0.0 }
 0x733   :  { %v3004_v8 = vadd.f32 %v8153_v58, %v3003_v28  ;;  %4042 = vmatpush1.bf16.msra.mxu0 %v6886_v32  ;;  %v3115_v59 = vmax.f32 %v3001_v46, 0.0 }
 0x734   :  { %v3118_v55 = vmax.f32 %v3012_v4, 0.0  ;;  %4043 = vmatprep.subr.bf16.mxu0 %v6891_v40 }
 0x735   :  { %v3116_v60 = vmax.f32 %v3004_v8, 0.0 }
 0x736   :  { %v3146_v63 = vpack.c.bf16 %v3118_v55, %v3117_v41 }
 0x737   :  { %v3145_v3 = vpack.c.bf16 %v3116_v60, %v3115_v59  ;;  %4044 = vmatpush1.bf16.msra.mxu0 %v6889_v49  ;;  %v6906_v59 = vld [vmem:[#allocation26 + $0x15c] ss:$28 sps:$4 sm:$0xff]  }
 0x738   :  { %4045 = vmatprep.subr.bf16.mxu0 %v6897_v57 }
 0x739   :  { %6681 = vmatprep.mubr.msk.bf16.mxu0 %vm2070_vm2, %v3145_v3 }
 0x73a   :  { %6682 = vmatmul.mubr.msk.bf16.gmra.mrb[196].mxu0 %vm2070_vm2, %v3146_v63  ;;  %v6904_v63 = vld [vmem:[#allocation26 + $0x158] ss:$28 sps:$4 sm:$0xff]  }
 0x73b   :  { %4046 = vmatpush1.bf16.msra.mxu0 %v6895_v16 }
 0x73c   :  { %4047 = vmatprep.subr.bf16.mxu0 %v6900_v31 }
 0x73f   :  { %v6647_v45 = vpop.f32.mrb[168].mxu1  ;;  %4048 = vmatpush1.bf16.msra.mxu0 %v6898_v30 }
 0x740   :  { %v3025_v35 = vadd.f32 %v6647_v45, %v8153_v58  ;;  %v3016_v48 = vpop.f32.mrb[169].mxu1  ;;  %4049 = vmatprep.subr.bf16.mxu0 %v6906_v59 }
 0x741   :  { %v3017_v13 = vadd.f32 %v8153_v58, %v3016_v48  ;;  %v6648_v38 = vpop.f32.mrb[170].mxu1  ;;  %v6903_v48 = vld [vmem:[#allocation26 + $0x18c] ss:$28 sps:$4 sm:$0xff]  }
 0x742   :  { %v3028_v1 = vadd.f32 %v6648_v38, %v8153_v58  ;;  %v3019_v44 = vpop.f32.mrb[171].mxu1  ;;  %v3121_v56 = vmax.f32 %v3025_v35, 0.0  ;;  %3858 = vmatprep.subr.bf16.mxu1 %v6903_v48 }
 0x743   :  { %v3020_v7 = vadd.f32 %v8153_v58, %v3019_v44  ;;  %v3119_v19 = vmax.f32 %v3017_v13, 0.0  ;;  %4050 = vmatpush1.bf16.msra.mxu0 %v6904_v63  ;;  %v6909_v13 = vld [vmem:[#allocation26 + $0x194] ss:$28 sps:$4 sm:$0xff]  }
 0x744   :  { %v3122_v17 = vmax.f32 %v3028_v1, 0.0  ;;  %v6901_v1 = vld [vmem:[#allocation26 + $0x188] ss:$28 sps:$4 sm:$0xff]   ;;  %v6907_v44 = vld [vmem:[#allocation26 + $0x190] ss:$28 sps:$4 sm:$0xff]   ;;  %4051 = vmatprep.subr.bf16.mxu0 %v6909_v13 }
 0x745   :  { %v3120_v18 = vmax.f32 %v3020_v7, 0.0  ;;  %3859 = vmatpush1.bf16.msra.mxu1 %v6901_v1 }
 0x746   :  { %v3148_v12 = vpack.c.bf16 %v3122_v17, %v3121_v56 }
 0x747   :  { %v3147_v62 = vpack.c.bf16 %v3120_v18, %v3119_v19  ;;  %4052 = vmatpush1.bf16.msra.mxu0 %v6907_v44  ;;  %v6922_v44 = vld [vmem:[#allocation26 + $0xf0] ss:$28 sps:$4 sm:$0xff]  }
 0x749   :  { %6685 = vmatprep.mubr.msk.bf16.mxu0 %vm2070_vm2, %v3147_v62 }
 0x74a   :  { %6686 = vmatmul.mubr.msk.bf16.gmra.mrb[200].mxu0 %vm2070_vm2, %v3148_v12  ;;  %v7405_v12 = vmov 0  }
 0x74b   :  { %3876 = vmatprep.mubr.bf16.mxu1 %v7405_v12 }
 0x74f   :  { %v6651_v0 = vpop.f32.mrb[172].mxu1 }
 0x750   :  { %v3041_v20 = vadd.f32 %v6651_v0, %v8153_v58  ;;  %v3032_v5 = vpop.f32.mrb[173].mxu1  ;;  %v6912_v0 = vld [vmem:[#allocation26 + $0x14] ss:$28 sps:$4 sm:$0xff]  }
 0x751   :  { %v3033_v21 = vadd.f32 %v8153_v58, %v3032_v5  ;;  %v6652_v25 = vpop.f32.mrb[174].mxu1  ;;  %4230 = vmatprep.subr.bf16.mxu1 %v6912_v0  ;;  %v6930_v0 = vld [vmem:[#allocation26 + $0x160] ss:$28 sps:$4 sm:$0xff]  }
 0x752   :  { %v3044_v26 = vadd.f32 %v6652_v25, %v8153_v58  ;;  %v3035_v22 = vpop.f32.mrb[175].mxu1  ;;  %v3125_v37 = vmax.f32 %v3041_v20, 0.0 }
 0x753   :  { %v3036_v29 = vadd.f32 %v8153_v58, %v3035_v22  ;;  %v3123_v61 = vmax.f32 %v3033_v21, 0.0 }
 0x754   :  { %v3126_v2 = vmax.f32 %v3044_v26, 0.0 }
 0x755   :  { %v3124_v24 = vmax.f32 %v3036_v29, 0.0 }
 0x756   :  { %v3150_v33 = vpack.c.bf16 %v3126_v2, %v3125_v37 }
 0x757   :  { %v3149_v11 = vpack.c.bf16 %v3124_v24, %v3123_v61 }
 0x759   :  { %6689 = vmatprep.mubr.msk.bf16.mxu0 %vm2070_vm2, %v3149_v11 }
 0x75a   :  { %6690 = vmatmul.mubr.msk.bf16.gmra.mrb[204].mxu0 %vm2070_vm2, %v3150_v33 }
 0x75f   :  { %v6655_v6 = vpop.f32.mrb[176].mxu1 }
 0x760   :  { %v3057_v23 = vadd.f32 %v6655_v6, %v8153_v58  ;;  %v3048_v34 = vpop.f32.mrb[177].mxu1 }
 0x761   :  { %v3049_v36 = vadd.f32 %v8153_v58, %v3048_v34  ;;  %v6656_v10 = vpop.f32.mrb[178].mxu1  ;;  %v8205_v34 = vld [vmem:[#allocation25] ss:$0 sm:$0xff] }
 0x762   :  { %v3060_v9 = vadd.f32 %v6656_v10, %v8153_v58  ;;  %v3051_v39 = vpop.f32.mrb[179].mxu1  ;;  %v3129_v42 = vmax.f32 %v3057_v23, 0.0  ;;  %v6925_v23 = vld [vmem:[#allocation26 + $0x18] ss:$28 sps:$4 sm:$0xff]  }
 0x763   :  { %v3052_v50 = vadd.f32 %v8153_v58, %v3051_v39  ;;  %v3127_v47 = vmax.f32 %v3049_v36, 0.0  ;;  %6709 = vmatprep.subr.bf16.mxu0 %v6925_v23 }
 0x764   :  { %v3130_v27 = vmax.f32 %v3060_v9, 0.0 }
 0x765   :  { %v3128_v14 = vmax.f32 %v3052_v50, 0.0 }
 0x766   :  { %v3152_v52 = vpack.c.bf16 %v3130_v27, %v3129_v42 }
 0x767   :  { %v3151_v15 = vpack.c.bf16 %v3128_v14, %v3127_v47 }
 0x769   :  { %6693 = vmatprep.mubr.msk.bf16.mxu0 %vm2070_vm2, %v3151_v15 }
 0x76a   :  { %6694 = vmatmul.mubr.msk.bf16.gmra.mrb[208].mxu0 %vm2070_vm2, %v3152_v52 }
 0x76f   :  { %v6659_v32 = vpop.f32.mrb[180].mxu1 }
 0x770   :  { %v3073_v51 = vadd.f32 %v6659_v32, %v8153_v58  ;;  %v3064_v53 = vpop.f32.mrb[181].mxu1 }
 0x771   :  { %v3065_v40 = vadd.f32 %v8153_v58, %v3064_v53  ;;  %v6660_v46 = vpop.f32.mrb[182].mxu1 }
 0x772   :  { %v3076_v43 = vadd.f32 %v6660_v46, %v8153_v58  ;;  %v3067_v54 = vpop.f32.mrb[183].mxu1  ;;  %v3133_v28 = vmax.f32 %v3073_v51, 0.0  ;;  %v6910_v51 = vld [vmem:[#allocation26 + $0x10] ss:$28 sps:$4 sm:$0xff]  }
 0x773   :  { %v3068_v4 = vadd.f32 %v8153_v58, %v3067_v54  ;;  %v3131_v49 = vmax.f32 %v3065_v40, 0.0  ;;  %v6915_v40 = vld [vmem:[#allocation26 + $0x4c] ss:$28 sps:$4 sm:$0xff]   ;;  %v6918_v54 = vld [vmem:[#allocation26 + $0x84] ss:$28 sps:$4 sm:$0xff]  }
 0x774   :  { %v3134_v8 = vmax.f32 %v3076_v43, 0.0  ;;  %v6929_v46 = vld [vmem:[#allocation26 + $0x50] ss:$28 sps:$4 sm:$0xff]   ;;  %v6913_v43 = vld [vmem:[#allocation26 + $0x48] ss:$28 sps:$4 sm:$0xff]  }
 0x775   :  { %v3132_v41 = vmax.f32 %v3068_v4, 0.0 }
 0x776   :  { %v3154_v55 = vpack.c.bf16 %v3134_v8, %v3133_v28  ;;  %v6916_v28 = vld [vmem:[#allocation26 + $0x80] ss:$28 sps:$4 sm:$0xff]   ;;  %v6933_v8 = vld [vmem:[#allocation26 + $0x88] ss:$28 sps:$4 sm:$0xff]  }
 0x777   :  { %v3153_v57 = vpack.c.bf16 %v3132_v41, %v3131_v49 }
 0x779   :  { %6697 = vmatprep.mubr.msk.bf16.mxu0 %vm2070_vm2, %v3153_v57 }
 0x77a   :  { %6698 = vmatmul.mubr.msk.bf16.gmra.mrb[212].mxu0 %vm2070_vm2, %v3154_v55  ;;  %v6921_v55 = vld [vmem:[#allocation26 + $0xbc] ss:$28 sps:$4 sm:$0xff]  }
 0x77f   :  { %v6663_v60 = vpop.f32.mrb[184].mxu1 }
 0x780   :  { %v3089_v3 = vadd.f32 %v6663_v60, %v8153_v58  ;;  %v3080_v16 = vpop.f32.mrb[185].mxu1  ;;  %v6934_v60 = vld [vmem:[#allocation26 + $0xc0] ss:$28 sps:$4 sm:$0xff]  }
 0x781   :  { %v3081_v31 = vadd.f32 %v8153_v58, %v3080_v16  ;;  %v6664_v30 = vpop.f32.mrb[186].mxu1 }
 0x782   :  { %v3092_v45 = vadd.f32 %v6664_v30, %v8153_v58  ;;  %v3083_v35 = vpop.f32.mrb[187].mxu1  ;;  %v3137_v7 = vmax.f32 %v3089_v3, 0.0 }
 0x783   :  { %v3084_v38 = vadd.f32 %v8153_v58, %v3083_v35  ;;  %v3135_v17 = vmax.f32 %v3081_v31, 0.0  ;;  %v6919_v31 = vld [vmem:[#allocation26 + $0xb8] ss:$28 sps:$4 sm:$0xff]  }
 0x784   :  { %v3138_v56 = vmax.f32 %v3092_v45, 0.0  ;;  %v6924_v35 = vld [vmem:[#allocation26 + $0xf4] ss:$28 sps:$4 sm:$0xff]  }
 0x785   :  { %v3136_v19 = vmax.f32 %v3084_v38, 0.0 }
 0x786   :  { %v3156_v18 = vpack.c.bf16 %v3138_v56, %v3137_v7  ;;  %v6938_v7 = vld [vmem:[#allocation26 + $0xf8] ss:$28 sps:$4 sm:$0xff]   ;;  %v6928_v56 = vld [vmem:[#allocation26 + $0x12c] ss:$28 sps:$4 sm:$0xff]  }
 0x787   :  { %v3155_v62 = vpack.c.bf16 %v3136_v19, %v3135_v17  ;;  %v6939_v17 = vld [vmem:[#allocation26 + $0x130] ss:$28 sps:$4 sm:$0xff]   ;;  %v6926_v19 = vld [vmem:[#allocation26 + $0x128] ss:$28 sps:$4 sm:$0xff]  }
 0x789   :  { %6701 = vmatprep.mubr.msk.bf16.mxu0 %vm2070_vm2, %v3155_v62 }
 0x78a   :  { %6702 = vmatmul.mubr.msk.bf16.gmra.mrb[216].mxu0 %vm2070_vm2, %v3156_v18  ;;  %v6932_v18 = vld [vmem:[#allocation26 + $0x164] ss:$28 sps:$4 sm:$0xff]  }
 0x78f   :  { %v6667_v20 = vpop.f32.mrb[188].mxu1 }
 0x790   :  { %v3105_v5 = vadd.f32 %v6667_v20, %v8153_v58  ;;  %v3096_v21 = vpop.f32.mrb[189].mxu1  ;;  %v6940_v20 = vld [vmem:[#allocation26 + $0x168] ss:$28 sps:$4 sm:$0xff]  }
 0x791   :  { %v3097_v25 = vadd.f32 %v8153_v58, %v3096_v21  ;;  %v6668_v26 = vpop.f32.mrb[190].mxu1 }
 0x792   :  { %v3108_v22 = vadd.f32 %v6668_v26, %v8153_v58  ;;  %v3099_v29 = vpop.f32.mrb[191].mxu1  ;;  %v3141_v2 = vmax.f32 %v3105_v5, 0.0 }
 0x793   :  { %v3100_v37 = vadd.f32 %v8153_v58, %v3099_v29  ;;  %v3139_v24 = vmax.f32 %v3097_v25, 0.0  ;;  %v6937_v25 = vld [vmem:[#allocation26 + $0x19c] ss:$28 sps:$4 sm:$0xff]  }
 0x794   :  { %v3142_v61 = vmax.f32 %v3108_v22, 0.0  ;;  %v6941_v29 = vld [vmem:[#allocation26 + $0x1a0] ss:$28 sps:$4 sm:$0xff]  }
 0x795   :  { %v3140_v33 = vmax.f32 %v3100_v37, 0.0 }
 0x796   :  { %v3158_v11 = vpack.c.bf16 %v3142_v61, %v3141_v2 }
 0x797   :  { %v3157_v6 = vpack.c.bf16 %v3140_v33, %v3139_v24  ;;  %v6935_v24 = vld [vmem:[#allocation26 + $0x198] ss:$28 sps:$4 sm:$0xff]  }
 0x799   :  { %6705 = vmatprep.mubr.msk.bf16.mxu0 %vm2070_vm2, %v3157_v6 }
 0x79a   :  { %6706 = vmatmul.mubr.msk.bf16.gmra.mrb[220].mxu0 %vm2070_vm2, %v3158_v11 }
 0x79b   :  { %4069 = vmatprep.mubr.bf16.mxu0 %v7405_v12 }
 0x7fd   :  { %v6679_v36 = vpop.f32.mrb[192].mxu0 }
 0x7fe   :  { %v3289_v10 = vadd.f32 %v6679_v36, %v8205_v34  ;;  %v3280_v58 = vpop.f32.mrb[193].mxu0 }
 0x7ff   :  { %v3281_v9 = vadd.f32 %v8205_v34, %v3280_v58  ;;  %v6680_v39 = vpop.f32.mrb[194].mxu0 }
 0x800   :  { %v3292_v50 = vadd.f32 %v6680_v39, %v8205_v34  ;;  %v3283_v42 = vpop.f32.mrb[195].mxu0  ;;  %v3409_v47 = vmax.f32 %v3289_v10, 0.0 }
 0x801   :  { %v3284_v27 = vadd.f32 %v8205_v34, %v3283_v42  ;;  %v3407_v52 = vmax.f32 %v3281_v9, 0.0 }
 0x802   :  { %v3410_v14 = vmax.f32 %v3292_v50, 0.0 }
 0x803   :  { %v3408_v15 = vmax.f32 %v3284_v27, 0.0 }
 0x804   :  { %v8211_v32 = vpack.c.bf16 %v3410_v14, %v3409_v47 }
 0x805   :  { %v8213_v53 = vpack.c.bf16 %v3408_v15, %v3407_v52 }
 0x807   :  { %3877 = vmatmul.mubr.bf16.vlgmr.msra.gmra.mrb[192].mxu1 %v8213_v53  ;;  %4070 = vmatmul.mubr.bf16.vlgmr.msra.gmra.mrb[224].mxu0 %v8213_v53 }
 0x808   :  { %4231 = vmatpush1.bf16.msra.mxu1 %v6910_v51  ;;  %3886 = vmatprep.mubr.bf16.mxu1 %v7405_v12 }
 0x809   :  { %4079 = vmatprep.mubr.bf16.mxu0 %v7405_v12  ;;  %4232 = vmatprep.subr.bf16.mxu1 %v6915_v40 }
 0x80a   :  { %6710 = vmatpush3.bf16.msra.mxu0 %v6925_v23 }
 0x80b   :  { %6711 = vmatprep.subr.bf16.mxu0 %v6929_v46 }
 0x80c   :  { %4233 = vmatpush1.bf16.msra.mxu1 %v6913_v43 }
 0x80d   :  { %v6683_v4 = vpop.f32.mrb[196].mxu0  ;;  %4234 = vmatprep.subr.bf16.mxu1 %v6918_v54 }
 0x80e   :  { %v3305_v49 = vadd.f32 %v6683_v4, %v8205_v34  ;;  %v3296_v41 = vpop.f32.mrb[197].mxu0  ;;  %6712 = vmatpush3.bf16.msra.mxu0 %v6929_v46 }
 0x80f   :  { %v3297_v57 = vadd.f32 %v8205_v34, %v3296_v41  ;;  %v6684_v59 = vpop.f32.mrb[198].mxu0  ;;  %3887 = vmatmul.mubr.bf16.gmra.mrb[196].mxu1 %v8211_v32  ;;  %4080 = vmatmul.mubr.bf16.gmra.mrb[228].mxu0 %v8211_v32 }
 0x810   :  { %v3308_v63 = vadd.f32 %v6684_v59, %v8205_v34  ;;  %v3299_v3 = vpop.f32.mrb[199].mxu0  ;;  %3896 = vmatprep.mubr.bf16.mxu1 %v7405_v12  ;;  %4089 = vmatprep.mubr.bf16.mxu0 %v7405_v12  ;;  %v3413_v30 = vmax.f32 %v3305_v49, 0.0 }
 0x811   :  { %v3300_v16 = vadd.f32 %v8205_v34, %v3299_v3  ;;  %4235 = vmatpush1.bf16.msra.mxu1 %v6916_v28  ;;  %6713 = vmatprep.subr.bf16.mxu0 %v6933_v8  ;;  %v3411_v48 = vmax.f32 %v3297_v57, 0.0 }
 0x812   :  { %v3414_v45 = vmax.f32 %v3308_v63, 0.0  ;;  %4236 = vmatprep.subr.bf16.mxu1 %v6921_v55  ;;  %6714 = vmatpush3.bf16.msra.mxu0 %v6933_v8 }
 0x813   :  { %v3412_v13 = vmax.f32 %v3300_v16, 0.0  ;;  %6715 = vmatprep.subr.bf16.mxu0 %v6934_v60 }
 0x814   :  { %v8227_v38 = vpack.c.bf16 %v3414_v45, %v3413_v30 }
 0x815   :  { %v8229_v1 = vpack.c.bf16 %v3412_v13, %v3411_v48  ;;  %4237 = vmatpush1.bf16.msra.mxu1 %v6919_v31 }
 0x816   :  { %4238 = vmatprep.subr.bf16.mxu1 %v6924_v35  ;;  %6716 = vmatpush3.bf16.msra.mxu0 %v6934_v60 }
 0x817   :  { %3897 = vmatmul.mubr.bf16.gmra.mrb[200].mxu1 %v8229_v1  ;;  %4090 = vmatmul.mubr.bf16.gmra.mrb[232].mxu0 %v8229_v1 }
 0x818   :  { %3906 = vmatprep.mubr.bf16.mxu1 %v7405_v12  ;;  %4099 = vmatprep.mubr.bf16.mxu0 %v7405_v12 }
 0x819   :  { %4239 = vmatpush1.bf16.msra.mxu1 %v6922_v44  ;;  %6717 = vmatprep.subr.bf16.mxu0 %v6938_v7 }
 0x81a   :  { %4240 = vmatprep.subr.bf16.mxu1 %v6928_v56  ;;  %6718 = vmatpush3.bf16.msra.mxu0 %v6938_v7 }
 0x81b   :  { %6719 = vmatprep.subr.bf16.mxu0 %v6939_v17 }
 0x81d   :  { %v6687_v62 = vpop.f32.mrb[200].mxu0  ;;  %4241 = vmatpush1.bf16.msra.mxu1 %v6926_v19 }
 0x81e   :  { %v3321_v5 = vadd.f32 %v6687_v62, %v8205_v34  ;;  %v3312_v21 = vpop.f32.mrb[201].mxu0  ;;  %4242 = vmatprep.subr.bf16.mxu1 %v6932_v18  ;;  %6720 = vmatpush3.bf16.msra.mxu0 %v6939_v17 }
 0x81f   :  { %v3313_v26 = vadd.f32 %v8205_v34, %v3312_v21  ;;  %v6688_v22 = vpop.f32.mrb[202].mxu0  ;;  %3907 = vmatmul.mubr.bf16.gmra.mrb[204].mxu1 %v8227_v38  ;;  %4100 = vmatmul.mubr.bf16.gmra.mrb[236].mxu0 %v8227_v38 }
 0x820   :  { %v3324_v37 = vadd.f32 %v6688_v22, %v8205_v34  ;;  %v3315_v2 = vpop.f32.mrb[203].mxu0  ;;  %3916 = vmatprep.mubr.bf16.mxu1 %v7405_v12  ;;  %4109 = vmatprep.mubr.bf16.mxu0 %v7405_v12  ;;  %v3417_v33 = vmax.f32 %v3321_v5, 0.0 }
 0x821   :  { %v3316_v61 = vadd.f32 %v8205_v34, %v3315_v2  ;;  %4243 = vmatpush1.bf16.msra.mxu1 %v6930_v0  ;;  %6721 = vmatprep.subr.bf16.mxu0 %v6940_v20  ;;  %v3415_v6 = vmax.f32 %v3313_v26, 0.0 }
 0x822   :  { %v3418_v11 = vmax.f32 %v3324_v37, 0.0  ;;  %4244 = vmatprep.subr.bf16.mxu1 %v6937_v25  ;;  %6722 = vmatpush3.bf16.msra.mxu0 %v6940_v20 }
 0x823   :  { %v3416_v23 = vmax.f32 %v3316_v61, 0.0  ;;  %6723 = vmatprep.subr.bf16.mxu0 %v6941_v29 }
 0x824   :  { %v8243_v36 = vpack.c.bf16 %v3418_v11, %v3417_v33 }
 0x825   :  { %v8245_v10 = vpack.c.bf16 %v3416_v23, %v3415_v6  ;;  %4245 = vmatpush1.bf16.msra.mxu1 %v6935_v24 }
 0x826   :  { %6724 = vmatpush3.bf16.msra.mxu0 %v6941_v29 }
 0x827   :  { %3917 = vmatmul.mubr.bf16.gmra.mrb[208].mxu1 %v8245_v10  ;;  %4110 = vmatmul.mubr.bf16.gmra.mrb[240].mxu0 %v8245_v10 }
 0x828   :  { %3926 = vmatprep.mubr.bf16.mxu1 %v7405_v12  ;;  %4119 = vmatprep.mubr.bf16.mxu0 %v7405_v12 }
 0x82d   :  { %v6691_v58 = vpop.f32.mrb[204].mxu0 }
 0x82e   :  { %v3337_v9 = vadd.f32 %v6691_v58, %v8205_v34  ;;  %v3328_v39 = vpop.f32.mrb[205].mxu0 }
 0x82f   :  { %v3329_v50 = vadd.f32 %v8205_v34, %v3328_v39  ;;  %v6692_v42 = vpop.f32.mrb[206].mxu0  ;;  %3927 = vmatmul.mubr.bf16.gmra.mrb[212].mxu1 %v8243_v36  ;;  %4120 = vmatmul.mubr.bf16.gmra.mrb[244].mxu0 %v8243_v36 }
 0x830   :  { %v3340_v27 = vadd.f32 %v6692_v42, %v8205_v34  ;;  %v3331_v47 = vpop.f32.mrb[207].mxu0  ;;  %3936 = vmatprep.mubr.bf16.mxu1 %v7405_v12  ;;  %4129 = vmatprep.mubr.bf16.mxu0 %v7405_v12  ;;  %v3421_v52 = vmax.f32 %v3337_v9, 0.0 }
 0x831   :  { %v3332_v14 = vadd.f32 %v8205_v34, %v3331_v47  ;;  %v3419_v51 = vmax.f32 %v3329_v50, 0.0 }
 0x832   :  { %v3422_v15 = vmax.f32 %v3340_v27, 0.0 }
 0x833   :  { %v3420_v40 = vmax.f32 %v3332_v14, 0.0 }
 0x834   :  { %v8259_v46 = vpack.c.bf16 %v3422_v15, %v3421_v52 }
 0x835   :  { %v8261_v43 = vpack.c.bf16 %v3420_v40, %v3419_v51 }
 0x837   :  { %3937 = vmatmul.mubr.bf16.gmra.mrb[216].mxu1 %v8261_v43  ;;  %4130 = vmatmul.mubr.bf16.gmra.mrb[248].mxu0 %v8261_v43 }
 0x838   :  { %3946 = vmatprep.mubr.bf16.mxu1 %v7405_v12  ;;  %4139 = vmatprep.mubr.bf16.mxu0 %v7405_v12 }
 0x83d   :  { %v6695_v54 = vpop.f32.mrb[208].mxu0 }
 0x83e   :  { %v3353_v4 = vadd.f32 %v6695_v54, %v8205_v34  ;;  %v3344_v28 = vpop.f32.mrb[209].mxu0 }
 0x83f   :  { %v3345_v8 = vadd.f32 %v8205_v34, %v3344_v28  ;;  %v6696_v49 = vpop.f32.mrb[210].mxu0  ;;  %3947 = vmatmul.mubr.bf16.gmra.mrb[220].mxu1 %v8259_v46  ;;  %4140 = vmatmul.mubr.bf16.gmra.mrb[252].mxu0 %v8259_v46 }
 0x840   :  { %v3356_v41 = vadd.f32 %v6696_v49, %v8205_v34  ;;  %v3347_v55 = vpop.f32.mrb[211].mxu0  ;;  %3956 = vmatprep.mubr.bf16.mxu1 %v7405_v12  ;;  %4149 = vmatprep.mubr.bf16.mxu0 %v7405_v12  ;;  %v3425_v59 = vmax.f32 %v3353_v4, 0.0 }
 0x841   :  { %v3348_v57 = vadd.f32 %v8205_v34, %v3347_v55  ;;  %v3423_v63 = vmax.f32 %v3345_v8, 0.0 }
 0x842   :  { %v3426_v60 = vmax.f32 %v3356_v41, 0.0 }
 0x843   :  { %v3424_v3 = vmax.f32 %v3348_v57, 0.0 }
 0x844   :  { %v8275_v16 = vpack.c.bf16 %v3426_v60, %v3425_v59 }
 0x845   :  { %v8277_v31 = vpack.c.bf16 %v3424_v3, %v3423_v63 }
 0x847   :  { %3957 = vmatmul.mubr.bf16.gmra.mrb[224].mxu1 %v8277_v31  ;;  %4150 = vmatmul.mubr.bf16.gmra.mrb[0].mxu0 %v8277_v31 }
 0x848   :  { %3966 = vmatprep.mubr.bf16.mxu1 %v7405_v12  ;;  %4159 = vmatprep.mubr.bf16.mxu0 %v7405_v12 }
 0x84d   :  { %v6699_v30 = vpop.f32.mrb[212].mxu0 }
 0x84e   :  { %v3369_v45 = vadd.f32 %v6699_v30, %v8205_v34  ;;  %v3360_v35 = vpop.f32.mrb[213].mxu0 }
 0x84f   :  { %v3361_v48 = vadd.f32 %v8205_v34, %v3360_v35  ;;  %v6700_v13 = vpop.f32.mrb[214].mxu0  ;;  %3967 = vmatmul.mubr.bf16.gmra.mrb[228].mxu1 %v8275_v16  ;;  %4160 = vmatmul.mubr.bf16.gmra.mrb[4].mxu0 %v8275_v16 }
 0x850   :  { %v3372_v44 = vadd.f32 %v6700_v13, %v8205_v34  ;;  %v3363_v7 = vpop.f32.mrb[215].mxu0  ;;  %3976 = vmatprep.mubr.bf16.mxu1 %v7405_v12  ;;  %4169 = vmatprep.mubr.bf16.mxu0 %v7405_v12  ;;  %v3429_v17 = vmax.f32 %v3369_v45, 0.0 }
 0x851   :  { %v3364_v56 = vadd.f32 %v8205_v34, %v3363_v7  ;;  %v3427_v18 = vmax.f32 %v3361_v48, 0.0 }
 0x852   :  { %v3430_v19 = vmax.f32 %v3372_v44, 0.0 }
 0x853   :  { %v3428_v62 = vmax.f32 %v3364_v56, 0.0 }
 0x854   :  { %v8291_v0 = vpack.c.bf16 %v3430_v19, %v3429_v17 }
 0x855   :  { %v8293_v20 = vpack.c.bf16 %v3428_v62, %v3427_v18 }
 0x857   :  { %3977 = vmatmul.mubr.bf16.gmra.mrb[232].mxu1 %v8293_v20  ;;  %4170 = vmatmul.mubr.bf16.gmra.mrb[8].mxu0 %v8293_v20 }
 0x858   :  { %3986 = vmatprep.mubr.bf16.mxu1 %v7405_v12  ;;  %4179 = vmatprep.mubr.bf16.mxu0 %v7405_v12 }
 0x85d   :  { %v6703_v5 = vpop.f32.mrb[216].mxu0 }
 0x85e   :  { %v3385_v21 = vadd.f32 %v6703_v5, %v8205_v34  ;;  %v3376_v25 = vpop.f32.mrb[217].mxu0 }
 0x85f   :  { %v3377_v26 = vadd.f32 %v8205_v34, %v3376_v25  ;;  %v6704_v22 = vpop.f32.mrb[218].mxu0  ;;  %3987 = vmatmul.mubr.bf16.gmra.mrb[236].mxu1 %v8291_v0  ;;  %4180 = vmatmul.mubr.bf16.gmra.mrb[12].mxu0 %v8291_v0 }
 0x860   :  { %v3388_v29 = vadd.f32 %v6704_v22, %v8205_v34  ;;  %v3379_v37 = vpop.f32.mrb[219].mxu0  ;;  %3996 = vmatprep.mubr.bf16.mxu1 %v7405_v12  ;;  %4189 = vmatprep.mubr.bf16.mxu0 %v7405_v12  ;;  %v3433_v61 = vmax.f32 %v3385_v21, 0.0 }
 0x861   :  { %v3380_v2 = vadd.f32 %v8205_v34, %v3379_v37  ;;  %v3431_v33 = vmax.f32 %v3377_v26, 0.0 }
 0x862   :  { %v3434_v24 = vmax.f32 %v3388_v29, 0.0 }
 0x863   :  { %v3432_v11 = vmax.f32 %v3380_v2, 0.0 }
 0x864   :  { %v8307_v6 = vpack.c.bf16 %v3434_v24, %v3433_v61 }
 0x865   :  { %v8309_v23 = vpack.c.bf16 %v3432_v11, %v3431_v33 }
 0x867   :  { %3997 = vmatmul.mubr.bf16.gmra.mrb[240].mxu1 %v8309_v23  ;;  %4190 = vmatmul.mubr.bf16.gmra.mrb[16].mxu0 %v8309_v23 }
 0x868   :  { %4006 = vmatprep.mubr.bf16.mxu1 %v7405_v12  ;;  %4199 = vmatprep.mubr.bf16.mxu0 %v7405_v12 }
 0x86d   :  { %v6707_v58 = vpop.f32.mrb[220].mxu0 }
 0x86e   :  { %v3401_v9 = vadd.f32 %v6707_v58, %v8205_v34  ;;  %v3392_v39 = vpop.f32.mrb[221].mxu0 }
 0x86f   :  { %v3393_v50 = vadd.f32 %v8205_v34, %v3392_v39  ;;  %v6708_v42 = vpop.f32.mrb[222].mxu0  ;;  %4007 = vmatmul.mubr.bf16.gmra.mrb[244].mxu1 %v8307_v6  ;;  %4200 = vmatmul.mubr.bf16.gmra.mrb[20].mxu0 %v8307_v6 }
 0x870   :  { %v3404_v27 = vadd.f32 %v6708_v42, %v8205_v34  ;;  %v3395_v47 = vpop.f32.mrb[223].mxu0  ;;  %4016 = vmatprep.mubr.bf16.mxu1 %v7405_v12  ;;  %4209 = vmatprep.mubr.bf16.mxu0 %v7405_v12  ;;  %v3437_v52 = vmax.f32 %v3401_v9, 0.0 }
 0x871   :  { %v3396_v14 = vadd.f32 %v8205_v34, %v3395_v47  ;;  %v3435_v51 = vmax.f32 %v3393_v50, 0.0  ;;  %v3521_v34 = vlaneseq }
 0x872   :  { %v3438_v15 = vmax.f32 %v3404_v27, 0.0 }
 0x873   :  { %v3436_v40 = vmax.f32 %v3396_v14, 0.0 }
 0x874   :  { %v8323_v54 = vpack.c.bf16 %v3438_v15, %v3437_v52 }
 0x875   :  { %v8325_v4 = vpack.c.bf16 %v3436_v40, %v3435_v51 }
 0x877   :  { %4017 = vmatmul.mubr.bf16.gmra.mrb[248].mxu1 %v8325_v4  ;;  %4210 = vmatmul.mubr.bf16.gmra.mrb[24].mxu0 %v8325_v4 }
 0x878   :  { %4026 = vmatprep.mubr.bf16.mxu1 %v7405_v12  ;;  %4219 = vmatprep.mubr.bf16.mxu0 %v7405_v12 }
 0x87f   :  { %4027 = vmatmul.mubr.bf16.gmra.mrb[252].mxu1 %v8323_v54  ;;  %4220 = vmatmul.mubr.bf16.gmra.mrb[28].mxu0 %v8323_v54 }
 0x880   :  { %6725 = vmatprep.mubr.bf16.mxu0 %v8213_v53  ;;  %4262 = vmatprep.mubr.bf16.mxu1 %v7405_v12 }
 0x887   :  { %4263 = vmatmul.mubr.bf16.vlgmr.msra.gmra.mrb[0].mxu1 %v8213_v53  ;;  %6726 = vmatmul.mubr.bf16.vlgmr.msra.gmra.mrb[32].mxu0 %v8211_v32 }
 0x888   :  { %6729 = vmatprep.mubr.bf16.mxu0 %v8229_v1  ;;  %4272 = vmatprep.mubr.bf16.mxu1 %v7405_v12 }
 0x88f   :  { %4273 = vmatmul.mubr.bf16.gmra.mrb[4].mxu1 %v8211_v32  ;;  %6730 = vmatmul.mubr.bf16.gmra.mrb[36].mxu0 %v8227_v38  ;;  %v8369_v32 = vshrl.u32 %v3521_v34, 7 }
 0x890   :  { %6733 = vmatprep.mubr.bf16.mxu0 %v8245_v10  ;;  %4282 = vmatprep.mubr.bf16.mxu1 %v7405_v12 }
 0x891   :  { %v3523_v53 = vsub.s32 0, %v8369_v32 }
 0x897   :  { %4283 = vmatmul.mubr.bf16.gmra.mrb[8].mxu1 %v8229_v1  ;;  %6734 = vmatmul.mubr.bf16.gmra.mrb[40].mxu0 %v8243_v36  ;;  %v8374_v1 = vld [vmem:[#allocation28] sm:$0x7f] }
 0x898   :  { %6737 = vmatprep.mubr.bf16.mxu0 %v8261_v43  ;;  %4292 = vmatprep.mubr.bf16.mxu1 %v7405_v12 }
 0x89f   :  { %4293 = vmatmul.mubr.bf16.gmra.mrb[12].mxu1 %v8227_v38  ;;  %6738 = vmatmul.mubr.bf16.gmra.mrb[44].mxu0 %v8259_v46  ;;  %v3531_v38 = vsub.s32 2, %v8369_v32 }
 0x8a0   :  { %6741 = vmatprep.mubr.bf16.mxu0 %v8277_v31  ;;  %4302 = vmatprep.mubr.bf16.mxu1 %v7405_v12 }
 0x8a7   :  { %4303 = vmatmul.mubr.bf16.gmra.mrb[16].mxu1 %v8245_v10  ;;  %6742 = vmatmul.mubr.bf16.gmra.mrb[48].mxu0 %v8275_v16  ;;  %v3535_v10 = vsub.s32 3, %v8369_v32 }
 0x8a8   :  { %6745 = vmatprep.mubr.bf16.mxu0 %v8293_v20  ;;  %4312 = vmatprep.mubr.bf16.mxu1 %v7405_v12 }
 0x8a9   :  { %v8389_v8 = vrot.slane %v8374_v1, %v3535_v10 }
 0x8af   :  { %4313 = vmatmul.mubr.bf16.gmra.mrb[20].mxu1 %v8243_v36  ;;  %6746 = vmatmul.mubr.bf16.gmra.mrb[52].mxu0 %v8291_v0  ;;  %v3527_v36 = vsub.s32 1, %v8369_v32 }
 0x8b0   :  { %6749 = vmatprep.mubr.bf16.mxu0 %v8309_v23  ;;  %4322 = vmatprep.mubr.bf16.mxu1 %v7405_v12 }
 0x8b1   :  { %v8386_v28 = vrot.slane %v8374_v1, %v3527_v36 }
 0x8b7   :  { %4323 = vmatmul.mubr.bf16.gmra.mrb[24].mxu1 %v8261_v43  ;;  %6750 = vmatmul.mubr.bf16.gmra.mrb[56].mxu0 %v8307_v6  ;;  %v8383_v43 = vrot.slane %v8374_v1, %v3531_v38 }
 0x8b8   :  { %6753 = vmatprep.mubr.bf16.mxu0 %v8325_v4  ;;  %4332 = vmatprep.mubr.bf16.mxu1 %v7405_v12 }
 0x8bf   :  { %4333 = vmatmul.mubr.bf16.gmra.mrb[28].mxu1 %v8259_v46  ;;  %6754 = vmatmul.mubr.bf16.gmra.mrb[60].mxu0 %v8323_v54  ;;  %v8380_v46 = vrot.slane %v8374_v1, %v3523_v53 }
 0x8c0   :  { %4342 = vmatprep.mubr.bf16.mxu1 %v7405_v12 }
 0x8c7   :  { %4343 = vmatmul.mubr.bf16.gmra.mrb[32].mxu1 %v8277_v31 }
 0x8c8   :  { %4352 = vmatprep.mubr.bf16.mxu1 %v7405_v12 }
 0x8cf   :  { %4353 = vmatmul.mubr.bf16.gmra.mrb[36].mxu1 %v8275_v16 }
 0x8d0   :  { %4362 = vmatprep.mubr.bf16.mxu1 %v7405_v12 }
 0x8d7   :  { %4363 = vmatmul.mubr.bf16.gmra.mrb[40].mxu1 %v8293_v20 }
 0x8d8   :  { %4372 = vmatprep.mubr.bf16.mxu1 %v7405_v12 }
 0x8da   :  { %v3878_v49 = vpop.f32.mrb[192].mxu1  ;;  %v4071_v41 = vpop.f32.mrb[224].mxu0 }
 0x8db   :  { %v3879_v55 = vadd.f32 %v3878_v49, %v8380_v46  ;;  %v4072_v57 = vadd.f32 %v4071_v41, %v8383_v43  ;;  %v3880_v59 = vpop.f32.mrb[193].mxu1  ;;  %v4073_v60 = vpop.f32.mrb[225].mxu0 }
 0x8dc   :  { %v3881_v63 = vadd.f32 %v3880_v59, %v8386_v28  ;;  %v4074_v3 = vadd.f32 %v4073_v60, %v8389_v8  ;;  %v3882_v16 = vpop.f32.mrb[194].mxu1  ;;  %v4075_v31 = vpop.f32.mrb[226].mxu0 }
 0x8dd   :  { %v3883_v30 = vadd.f32 %v3882_v16, %v8380_v46  ;;  %v4076_v45 = vadd.f32 %v4075_v31, %v8383_v43  ;;  %v3884_v35 = vpop.f32.mrb[195].mxu1  ;;  %v4077_v48 = vpop.f32.mrb[227].mxu0 }
 0x8de   :  { %v5804_v13 = vpack.c.bf16 %v3881_v63, %v3879_v55  ;;  %v5805_v44 = vpack.c.bf16 %v4074_v3, %v4072_v57  ;;  %v3885_v7 = vadd.f32 %v3884_v35, %v8386_v28  ;;  %v4078_v56 = vadd.f32 %v4077_v48, %v8389_v8 }
 0x8df   :  { %4373 = vmatmul.mubr.bf16.gmra.mrb[44].mxu1 %v8291_v0 }
 0x8e0   :  { %5288 = vst [vmem:[#allocation29] sm:$0xff] %v5804_v13  ;;  %5289 = vst [vmem:[#allocation29 + $0x8] sm:$0xff] %v5805_v44  ;;  %v5808_v17 = vpack.c.bf16 %v3885_v7, %v3883_v30  ;;  %v5809_v19 = vpack.c.bf16 %v4078_v56, %v4076_v45  ;;  %4382 = vmatprep.mubr.bf16.mxu1 %v7405_v12 }
 0x8e2   :  { %5293 = vst [vmem:[#allocation29 + $0x1c] sm:$0xff] %v5808_v17  ;;  %5294 = vst [vmem:[#allocation29 + $0x24] sm:$0xff] %v5809_v19  ;;  %v3888_v18 = vpop.f32.mrb[196].mxu1  ;;  %v4081_v62 = vpop.f32.mrb[228].mxu0 }
 0x8e3   :  { %v3889_v20 = vadd.f32 %v3888_v18, %v8380_v46  ;;  %v4082_v5 = vadd.f32 %v4081_v62, %v8383_v43  ;;  %v3890_v21 = vpop.f32.mrb[197].mxu1  ;;  %v4083_v25 = vpop.f32.mrb[229].mxu0 }
 0x8e4   :  { %v3891_v26 = vadd.f32 %v3890_v21, %v8386_v28  ;;  %v4084_v0 = vadd.f32 %v4083_v25, %v8389_v8  ;;  %v3892_v22 = vpop.f32.mrb[198].mxu1  ;;  %v4085_v29 = vpop.f32.mrb[230].mxu0 }
 0x8e5   :  { %v3893_v37 = vadd.f32 %v3892_v22, %v8380_v46  ;;  %v4086_v2 = vadd.f32 %v4085_v29, %v8383_v43  ;;  %v3894_v61 = vpop.f32.mrb[199].mxu1  ;;  %v4087_v24 = vpop.f32.mrb[231].mxu0 }
 0x8e6   :  { %v5812_v33 = vpack.c.bf16 %v3891_v26, %v3889_v20  ;;  %v5813_v11 = vpack.c.bf16 %v4084_v0, %v4082_v5  ;;  %v3895_v58 = vadd.f32 %v3894_v61, %v8386_v28  ;;  %v4088_v9 = vadd.f32 %v4087_v24, %v8389_v8 }
 0x8e7   :  { %4383 = vmatmul.mubr.bf16.gmra.mrb[48].mxu1 %v8309_v23 }
 0x8e8   :  { %5297 = vst [vmem:[#allocation29 + $0x38] sm:$0xff] %v5812_v33  ;;  %5298 = vst [vmem:[#allocation29 + $0x40] sm:$0xff] %v5813_v11  ;;  %v5816_v39 = vpack.c.bf16 %v3895_v58, %v3893_v37  ;;  %v5817_v50 = vpack.c.bf16 %v4088_v9, %v4086_v2  ;;  %4392 = vmatprep.mubr.bf16.mxu1 %v7405_v12 }
 0x8ea   :  { %5301 = vst [vmem:[#allocation29 + $0x54] sm:$0xff] %v5816_v39  ;;  %5302 = vst [vmem:[#allocation29 + $0x5c] sm:$0xff] %v5817_v50  ;;  %v3898_v42 = vpop.f32.mrb[200].mxu1  ;;  %v4091_v27 = vpop.f32.mrb[232].mxu0 }
 0x8eb   :  { %v3899_v47 = vadd.f32 %v3898_v42, %v8380_v46  ;;  %v4092_v14 = vadd.f32 %v4091_v27, %v8383_v43  ;;  %v3900_v52 = vpop.f32.mrb[201].mxu1  ;;  %v4093_v15 = vpop.f32.mrb[233].mxu0 }
 0x8ec   :  { %v3901_v51 = vadd.f32 %v3900_v52, %v8386_v28  ;;  %v4094_v23 = vadd.f32 %v4093_v15, %v8389_v8  ;;  %v3902_v40 = vpop.f32.mrb[202].mxu1  ;;  %v4095_v34 = vpop.f32.mrb[234].mxu0 }
 0x8ed   :  { %v3903_v53 = vadd.f32 %v3902_v40, %v8380_v46  ;;  %v4096_v38 = vadd.f32 %v4095_v34, %v8383_v43  ;;  %v3904_v36 = vpop.f32.mrb[203].mxu1  ;;  %v4097_v10 = vpop.f32.mrb[235].mxu0 }
 0x8ee   :  { %v5820_v49 = vpack.c.bf16 %v3901_v51, %v3899_v47  ;;  %v5821_v41 = vpack.c.bf16 %v4094_v23, %v4092_v14  ;;  %v3905_v55 = vadd.f32 %v3904_v36, %v8386_v28  ;;  %v4098_v57 = vadd.f32 %v4097_v10, %v8389_v8 }
 0x8ef   :  { %4393 = vmatmul.mubr.bf16.gmra.mrb[52].mxu1 %v8307_v6 }
 0x8f0   :  { %5305 = vst [vmem:[#allocation29 + $0x70] sm:$0xff] %v5820_v49  ;;  %5306 = vst [vmem:[#allocation29 + $0x78] sm:$0xff] %v5821_v41  ;;  %v5824_v59 = vpack.c.bf16 %v3905_v55, %v3903_v53  ;;  %v5825_v60 = vpack.c.bf16 %v4098_v57, %v4096_v38  ;;  %4402 = vmatprep.mubr.bf16.mxu1 %v7405_v12 }
 0x8f2   :  { %5309 = vst [vmem:[#allocation29 + $0x8c] sm:$0xff] %v5824_v59  ;;  %5310 = vst [vmem:[#allocation29 + $0x94] sm:$0xff] %v5825_v60  ;;  %v3908_v63 = vpop.f32.mrb[204].mxu1  ;;  %v4101_v3 = vpop.f32.mrb[236].mxu0 }
 0x8f3   :  { %v3909_v16 = vadd.f32 %v3908_v63, %v8380_v46  ;;  %v4102_v31 = vadd.f32 %v4101_v3, %v8383_v43  ;;  %v3910_v30 = vpop.f32.mrb[205].mxu1  ;;  %v4103_v45 = vpop.f32.mrb[237].mxu0 }
 0x8f4   :  { %v3911_v35 = vadd.f32 %v3910_v30, %v8386_v28  ;;  %v4104_v6 = vadd.f32 %v4103_v45, %v8389_v8  ;;  %v3912_v48 = vpop.f32.mrb[206].mxu1  ;;  %v4105_v13 = vpop.f32.mrb[238].mxu0 }
 0x8f5   :  { %v3913_v44 = vadd.f32 %v3912_v48, %v8380_v46  ;;  %v4106_v7 = vadd.f32 %v4105_v13, %v8383_v43  ;;  %v3914_v56 = vpop.f32.mrb[207].mxu1  ;;  %v4107_v17 = vpop.f32.mrb[239].mxu0 }
 0x8f6   :  { %v5828_v19 = vpack.c.bf16 %v3911_v35, %v3909_v16  ;;  %v5829_v18 = vpack.c.bf16 %v4104_v6, %v4102_v31  ;;  %v3915_v62 = vadd.f32 %v3914_v56, %v8386_v28  ;;  %v4108_v20 = vadd.f32 %v4107_v17, %v8389_v8 }
 0x8f7   :  { %4403 = vmatmul.mubr.bf16.gmra.mrb[56].mxu1 %v8325_v4 }
 0x8f8   :  { %5313 = vst [vmem:[#allocation29 + $0xa8] sm:$0xff] %v5828_v19  ;;  %5314 = vst [vmem:[#allocation29 + $0xb0] sm:$0xff] %v5829_v18  ;;  %v5832_v5 = vpack.c.bf16 %v3915_v62, %v3913_v44  ;;  %v5833_v21 = vpack.c.bf16 %v4108_v20, %v4106_v7  ;;  %4412 = vmatprep.mubr.bf16.mxu1 %v7405_v12 }
 0x8fa   :  { %5317 = vst [vmem:[#allocation29 + $0xc4] sm:$0xff] %v5832_v5  ;;  %5318 = vst [vmem:[#allocation29 + $0xcc] sm:$0xff] %v5833_v21  ;;  %v3918_v25 = vpop.f32.mrb[208].mxu1  ;;  %v4111_v26 = vpop.f32.mrb[240].mxu0 }
 0x8fb   :  { %v3919_v0 = vadd.f32 %v3918_v25, %v8380_v46  ;;  %v4112_v22 = vadd.f32 %v4111_v26, %v8383_v43  ;;  %v3920_v29 = vpop.f32.mrb[209].mxu1  ;;  %v4113_v37 = vpop.f32.mrb[241].mxu0 }
 0x8fc   :  { %v3921_v2 = vadd.f32 %v3920_v29, %v8386_v28  ;;  %v4114_v4 = vadd.f32 %v4113_v37, %v8389_v8  ;;  %v3922_v61 = vpop.f32.mrb[210].mxu1  ;;  %v4115_v24 = vpop.f32.mrb[242].mxu0 }
 0x8fd   :  { %v3923_v33 = vadd.f32 %v3922_v61, %v8380_v46  ;;  %v4116_v12 = vadd.f32 %v4115_v24, %v8383_v43  ;;  %v3924_v11 = vpop.f32.mrb[211].mxu1  ;;  %v4117_v58 = vpop.f32.mrb[243].mxu0 }
 0x8fe   :  { %v5836_v9 = vpack.c.bf16 %v3921_v2, %v3919_v0  ;;  %v5837_v39 = vpack.c.bf16 %v4114_v4, %v4112_v22  ;;  %v3925_v50 = vadd.f32 %v3924_v11, %v8386_v28  ;;  %v4118_v42 = vadd.f32 %v4117_v58, %v8389_v8 }
 0x8ff   :  { %4413 = vmatmul.mubr.bf16.gmra.mrb[60].mxu1 %v8323_v54 }
 0x900   :  { %5321 = vst [vmem:[#allocation29 + $0xe0] sm:$0xff] %v5836_v9  ;;  %5322 = vst [vmem:[#allocation29 + $0xe8] sm:$0xff] %v5837_v39  ;;  %v5840_v27 = vpack.c.bf16 %v3925_v50, %v3923_v33  ;;  %v5841_v47 = vpack.c.bf16 %v4118_v42, %v4116_v12 }
 0x902   :  { %5325 = vst [vmem:[#allocation29 + $0xfc] sm:$0xff] %v5840_v27  ;;  %5326 = vst [vmem:[#allocation29 + $0x104] sm:$0xff] %v5841_v47  ;;  %v3928_v14 = vpop.f32.mrb[212].mxu1  ;;  %v4121_v52 = vpop.f32.mrb[244].mxu0 }
 0x903   :  { %v3929_v15 = vadd.f32 %v3928_v14, %v8380_v46  ;;  %v4122_v51 = vadd.f32 %v4121_v52, %v8383_v43  ;;  %v3930_v23 = vpop.f32.mrb[213].mxu1  ;;  %v4123_v40 = vpop.f32.mrb[245].mxu0 }
 0x904   :  { %v3931_v34 = vadd.f32 %v3930_v23, %v8386_v28  ;;  %v4124_v53 = vadd.f32 %v4123_v40, %v8389_v8  ;;  %v3932_v38 = vpop.f32.mrb[214].mxu1  ;;  %v4125_v54 = vpop.f32.mrb[246].mxu0 }
 0x905   :  { %v3933_v36 = vadd.f32 %v3932_v38, %v8380_v46  ;;  %v4126_v10 = vadd.f32 %v4125_v54, %v8383_v43  ;;  %v3934_v49 = vpop.f32.mrb[215].mxu1  ;;  %v4127_v41 = vpop.f32.mrb[247].mxu0 }
 0x906   :  { %v5844_v55 = vpack.c.bf16 %v3931_v34, %v3929_v15  ;;  %v5845_v57 = vpack.c.bf16 %v4124_v53, %v4122_v51  ;;  %v3935_v59 = vadd.f32 %v3934_v49, %v8386_v28  ;;  %v4128_v60 = vadd.f32 %v4127_v41, %v8389_v8 }
 0x908   :  { %5329 = vst [vmem:[#allocation29 + $0x118] sm:$0xff] %v5844_v55  ;;  %5330 = vst [vmem:[#allocation29 + $0x120] sm:$0xff] %v5845_v57  ;;  %v5848_v63 = vpack.c.bf16 %v3935_v59, %v3933_v36  ;;  %v5849_v3 = vpack.c.bf16 %v4128_v60, %v4126_v10 }
 0x90a   :  { %5333 = vst [vmem:[#allocation29 + $0x134] sm:$0xff] %v5848_v63  ;;  %5334 = vst [vmem:[#allocation29 + $0x13c] sm:$0xff] %v5849_v3  ;;  %v3938_v16 = vpop.f32.mrb[216].mxu1  ;;  %v4131_v31 = vpop.f32.mrb[248].mxu0 }
 0x90b   :  { %v3939_v30 = vadd.f32 %v3938_v16, %v8380_v46  ;;  %v4132_v45 = vadd.f32 %v4131_v31, %v8383_v43  ;;  %v3940_v35 = vpop.f32.mrb[217].mxu1  ;;  %v4133_v6 = vpop.f32.mrb[249].mxu0 }
 0x90c   :  { %v3941_v48 = vadd.f32 %v3940_v35, %v8386_v28  ;;  %v4134_v13 = vadd.f32 %v4133_v6, %v8389_v8  ;;  %v3942_v44 = vpop.f32.mrb[218].mxu1  ;;  %v4135_v7 = vpop.f32.mrb[250].mxu0 }
 0x90d   :  { %v3943_v56 = vadd.f32 %v3942_v44, %v8380_v46  ;;  %v4136_v17 = vadd.f32 %v4135_v7, %v8383_v43  ;;  %v3944_v19 = vpop.f32.mrb[219].mxu1  ;;  %v4137_v18 = vpop.f32.mrb[251].mxu0 }
 0x90e   :  { %v5852_v62 = vpack.c.bf16 %v3941_v48, %v3939_v30  ;;  %v5853_v20 = vpack.c.bf16 %v4134_v13, %v4132_v45  ;;  %v3945_v5 = vadd.f32 %v3944_v19, %v8386_v28  ;;  %v4138_v21 = vadd.f32 %v4137_v18, %v8389_v8 }
 0x910   :  { %5337 = vst [vmem:[#allocation29 + $0x150] sm:$0xff] %v5852_v62  ;;  %5338 = vst [vmem:[#allocation29 + $0x158] sm:$0xff] %v5853_v20  ;;  %v5856_v25 = vpack.c.bf16 %v3945_v5, %v3943_v56  ;;  %v5857_v26 = vpack.c.bf16 %v4138_v21, %v4136_v17 }
 0x912   :  { %5341 = vst [vmem:[#allocation29 + $0x16c] sm:$0xff] %v5856_v25  ;;  %5342 = vst [vmem:[#allocation29 + $0x174] sm:$0xff] %v5857_v26  ;;  %v3948_v0 = vpop.f32.mrb[220].mxu1  ;;  %v4141_v22 = vpop.f32.mrb[252].mxu0 }
 0x913   :  { %v3949_v29 = vadd.f32 %v3948_v0, %v8380_v46  ;;  %v4142_v37 = vadd.f32 %v4141_v22, %v8383_v43  ;;  %v3950_v2 = vpop.f32.mrb[221].mxu1  ;;  %v4143_v4 = vpop.f32.mrb[253].mxu0 }
 0x914   :  { %v3951_v61 = vadd.f32 %v3950_v2, %v8386_v28  ;;  %v4144_v24 = vadd.f32 %v4143_v4, %v8389_v8  ;;  %v3952_v33 = vpop.f32.mrb[222].mxu1  ;;  %v4145_v12 = vpop.f32.mrb[254].mxu0 }
 0x915   :  { %v3953_v11 = vadd.f32 %v3952_v33, %v8380_v46  ;;  %v4146_v58 = vadd.f32 %v4145_v12, %v8383_v43  ;;  %v3954_v9 = vpop.f32.mrb[223].mxu1  ;;  %v4147_v39 = vpop.f32.mrb[255].mxu0 }
 0x916   :  { %v5860_v50 = vpack.c.bf16 %v3951_v61, %v3949_v29  ;;  %v5861_v42 = vpack.c.bf16 %v4144_v24, %v4142_v37  ;;  %v3955_v27 = vadd.f32 %v3954_v9, %v8386_v28  ;;  %v4148_v47 = vadd.f32 %v4147_v39, %v8389_v8 }
 0x918   :  { %5345 = vst [vmem:[#allocation29 + $0x188] sm:$0xff] %v5860_v50  ;;  %5346 = vst [vmem:[#allocation29 + $0x190] sm:$0xff] %v5861_v42  ;;  %v5864_v14 = vpack.c.bf16 %v3955_v27, %v3953_v11  ;;  %v5865_v52 = vpack.c.bf16 %v4148_v47, %v4146_v58 }
 0x91a   :  { %5349 = vst [vmem:[#allocation29 + $0x1a4] sm:$0xff] %v5864_v14  ;;  %5350 = vst [vmem:[#allocation29 + $0x1ac] sm:$0xff] %v5865_v52  ;;  %v3958_v15 = vpop.f32.mrb[224].mxu1  ;;  %v4151_v51 = vpop.f32.mrb[0].mxu0 }
 0x91b   :  { %v3959_v23 = vadd.f32 %v3958_v15, %v8380_v46  ;;  %v4152_v40 = vadd.f32 %v4151_v51, %v8383_v43  ;;  %v3960_v34 = vpop.f32.mrb[225].mxu1  ;;  %v4153_v53 = vpop.f32.mrb[1].mxu0 }
 0x91c   :  { %v3961_v38 = vadd.f32 %v3960_v34, %v8386_v28  ;;  %v4154_v54 = vadd.f32 %v4153_v53, %v8389_v8  ;;  %v3962_v36 = vpop.f32.mrb[226].mxu1  ;;  %v4155_v10 = vpop.f32.mrb[2].mxu0 }
 0x91d   :  { %v3963_v49 = vadd.f32 %v3962_v36, %v8380_v46  ;;  %v4156_v41 = vadd.f32 %v4155_v10, %v8383_v43  ;;  %v3964_v55 = vpop.f32.mrb[227].mxu1  ;;  %v4157_v57 = vpop.f32.mrb[3].mxu0 }
 0x91e   :  { %v5868_v59 = vpack.c.bf16 %v3961_v38, %v3959_v23  ;;  %v5869_v60 = vpack.c.bf16 %v4154_v54, %v4152_v40  ;;  %v3965_v63 = vadd.f32 %v3964_v55, %v8386_v28  ;;  %v4158_v3 = vadd.f32 %v4157_v57, %v8389_v8 }
 0x920   :  { %5353 = vst [vmem:[#allocation29 + $0x1c0] sm:$0xff] %v5868_v59  ;;  %5354 = vst [vmem:[#allocation29 + $0x1c8] sm:$0xff] %v5869_v60  ;;  %v5872_v16 = vpack.c.bf16 %v3965_v63, %v3963_v49  ;;  %v5873_v31 = vpack.c.bf16 %v4158_v3, %v4156_v41 }
 0x922   :  { %5357 = vst [vmem:[#allocation29 + $0x1dc] sm:$0xff] %v5872_v16  ;;  %5358 = vst [vmem:[#allocation29 + $0x1e4] sm:$0xff] %v5873_v31  ;;  %v3968_v30 = vpop.f32.mrb[228].mxu1  ;;  %v4161_v45 = vpop.f32.mrb[4].mxu0 }
 0x923   :  { %v3969_v35 = vadd.f32 %v3968_v30, %v8380_v46  ;;  %v4162_v6 = vadd.f32 %v4161_v45, %v8383_v43  ;;  %v3970_v48 = vpop.f32.mrb[229].mxu1  ;;  %v4163_v13 = vpop.f32.mrb[5].mxu0 }
 0x924   :  { %v3971_v44 = vadd.f32 %v3970_v48, %v8386_v28  ;;  %v4164_v7 = vadd.f32 %v4163_v13, %v8389_v8  ;;  %v3972_v56 = vpop.f32.mrb[230].mxu1  ;;  %v4165_v17 = vpop.f32.mrb[6].mxu0 }
 0x925   :  { %v3973_v19 = vadd.f32 %v3972_v56, %v8380_v46  ;;  %v4166_v18 = vadd.f32 %v4165_v17, %v8383_v43  ;;  %v3974_v62 = vpop.f32.mrb[231].mxu1  ;;  %v4167_v20 = vpop.f32.mrb[7].mxu0 }
 0x926   :  { %v5876_v5 = vpack.c.bf16 %v3971_v44, %v3969_v35  ;;  %v5877_v21 = vpack.c.bf16 %v4164_v7, %v4162_v6  ;;  %v3975_v25 = vadd.f32 %v3974_v62, %v8386_v28  ;;  %v4168_v26 = vadd.f32 %v4167_v20, %v8389_v8 }
 0x928   :  { %5361 = vst [vmem:[#allocation29 + $0x1f8] sm:$0xff] %v5876_v5  ;;  %5362 = vst [vmem:[#allocation29 + $0x200] sm:$0xff] %v5877_v21  ;;  %v5880_v0 = vpack.c.bf16 %v3975_v25, %v3973_v19  ;;  %v5881_v22 = vpack.c.bf16 %v4168_v26, %v4166_v18 }
 0x92a   :  { %5365 = vst [vmem:[#allocation29 + $0x214] sm:$0xff] %v5880_v0  ;;  %5366 = vst [vmem:[#allocation29 + $0x21c] sm:$0xff] %v5881_v22  ;;  %v3978_v29 = vpop.f32.mrb[232].mxu1  ;;  %v4171_v37 = vpop.f32.mrb[8].mxu0 }
 0x92b   :  { %v3979_v2 = vadd.f32 %v3978_v29, %v8380_v46  ;;  %v4172_v4 = vadd.f32 %v4171_v37, %v8383_v43  ;;  %v3980_v61 = vpop.f32.mrb[233].mxu1  ;;  %v4173_v24 = vpop.f32.mrb[9].mxu0 }
 0x92c   :  { %v3981_v33 = vadd.f32 %v3980_v61, %v8386_v28  ;;  %v4174_v12 = vadd.f32 %v4173_v24, %v8389_v8  ;;  %v3982_v11 = vpop.f32.mrb[234].mxu1  ;;  %v4175_v58 = vpop.f32.mrb[10].mxu0 }
 0x92d   :  { %v3983_v9 = vadd.f32 %v3982_v11, %v8380_v46  ;;  %v4176_v39 = vadd.f32 %v4175_v58, %v8383_v43  ;;  %v3984_v50 = vpop.f32.mrb[235].mxu1  ;;  %v4177_v42 = vpop.f32.mrb[11].mxu0 }
 0x92e   :  { %v5884_v27 = vpack.c.bf16 %v3981_v33, %v3979_v2  ;;  %v5885_v47 = vpack.c.bf16 %v4174_v12, %v4172_v4  ;;  %v3985_v14 = vadd.f32 %v3984_v50, %v8386_v28  ;;  %v4178_v52 = vadd.f32 %v4177_v42, %v8389_v8 }
 0x930   :  { %5369 = vst [vmem:[#allocation29 + $0x230] sm:$0xff] %v5884_v27  ;;  %5370 = vst [vmem:[#allocation29 + $0x238] sm:$0xff] %v5885_v47  ;;  %v5888_v15 = vpack.c.bf16 %v3985_v14, %v3983_v9  ;;  %v5889_v51 = vpack.c.bf16 %v4178_v52, %v4176_v39 }
 0x932   :  { %5373 = vst [vmem:[#allocation29 + $0x24c] sm:$0xff] %v5888_v15  ;;  %5374 = vst [vmem:[#allocation29 + $0x254] sm:$0xff] %v5889_v51  ;;  %v3988_v23 = vpop.f32.mrb[236].mxu1  ;;  %v4181_v40 = vpop.f32.mrb[12].mxu0 }
 0x933   :  { %v3989_v34 = vadd.f32 %v3988_v23, %v8380_v46  ;;  %v4182_v53 = vadd.f32 %v4181_v40, %v8383_v43  ;;  %v3990_v38 = vpop.f32.mrb[237].mxu1  ;;  %v4183_v54 = vpop.f32.mrb[13].mxu0 }
 0x934   :  { %v3991_v36 = vadd.f32 %v3990_v38, %v8386_v28  ;;  %v4184_v10 = vadd.f32 %v4183_v54, %v8389_v8  ;;  %v3992_v49 = vpop.f32.mrb[238].mxu1  ;;  %v4185_v41 = vpop.f32.mrb[14].mxu0 }
 0x935   :  { %v3993_v55 = vadd.f32 %v3992_v49, %v8380_v46  ;;  %v4186_v57 = vadd.f32 %v4185_v41, %v8383_v43  ;;  %v3994_v59 = vpop.f32.mrb[239].mxu1  ;;  %v4187_v60 = vpop.f32.mrb[15].mxu0 }
 0x936   :  { %v5892_v63 = vpack.c.bf16 %v3991_v36, %v3989_v34  ;;  %v5893_v3 = vpack.c.bf16 %v4184_v10, %v4182_v53  ;;  %v3995_v16 = vadd.f32 %v3994_v59, %v8386_v28  ;;  %v4188_v31 = vadd.f32 %v4187_v60, %v8389_v8 }
 0x938   :  { %5377 = vst [vmem:[#allocation29 + $0x268] sm:$0xff] %v5892_v63  ;;  %5378 = vst [vmem:[#allocation29 + $0x270] sm:$0xff] %v5893_v3  ;;  %v5896_v30 = vpack.c.bf16 %v3995_v16, %v3993_v55  ;;  %v5897_v45 = vpack.c.bf16 %v4188_v31, %v4186_v57 }
 0x93a   :  { %5381 = vst [vmem:[#allocation29 + $0x284] sm:$0xff] %v5896_v30  ;;  %5382 = vst [vmem:[#allocation29 + $0x28c] sm:$0xff] %v5897_v45  ;;  %v3998_v35 = vpop.f32.mrb[240].mxu1  ;;  %v4191_v6 = vpop.f32.mrb[16].mxu0 }
 0x93b   :  { %v3999_v48 = vadd.f32 %v3998_v35, %v8380_v46  ;;  %v4192_v13 = vadd.f32 %v4191_v6, %v8383_v43  ;;  %v4000_v44 = vpop.f32.mrb[241].mxu1  ;;  %v4193_v7 = vpop.f32.mrb[17].mxu0 }
 0x93c   :  { %v4001_v56 = vadd.f32 %v4000_v44, %v8386_v28  ;;  %v4194_v17 = vadd.f32 %v4193_v7, %v8389_v8  ;;  %v4002_v19 = vpop.f32.mrb[242].mxu1  ;;  %v4195_v18 = vpop.f32.mrb[18].mxu0 }
 0x93d   :  { %v4003_v62 = vadd.f32 %v4002_v19, %v8380_v46  ;;  %v4196_v20 = vadd.f32 %v4195_v18, %v8383_v43  ;;  %v4004_v5 = vpop.f32.mrb[243].mxu1  ;;  %v4197_v21 = vpop.f32.mrb[19].mxu0  ;;  %v3539_v19 = vsub.s32 4, %v8369_v32  ;;  %v3547_v18 = vsub.s32 6, %v8369_v32 }
 0x93e   :  { %v5900_v25 = vpack.c.bf16 %v4001_v56, %v3999_v48  ;;  %v5901_v26 = vpack.c.bf16 %v4194_v17, %v4192_v13  ;;  %v4005_v0 = vadd.f32 %v4004_v5, %v8386_v28  ;;  %v4198_v22 = vadd.f32 %v4197_v21, %v8389_v8 }
 0x940   :  { %5385 = vst [vmem:[#allocation29 + $0x2a0] sm:$0xff] %v5900_v25  ;;  %5386 = vst [vmem:[#allocation29 + $0x2a8] sm:$0xff] %v5901_v26  ;;  %v5904_v29 = vpack.c.bf16 %v4005_v0, %v4003_v62  ;;  %v5905_v37 = vpack.c.bf16 %v4198_v22, %v4196_v20  ;;  %v3543_v25 = vsub.s32 5, %v8369_v32 }
 0x942   :  { %5389 = vst [vmem:[#allocation29 + $0x2bc] sm:$0xff] %v5904_v29  ;;  %5390 = vst [vmem:[#allocation29 + $0x2c4] sm:$0xff] %v5905_v37  ;;  %v4008_v2 = vpop.f32.mrb[244].mxu1  ;;  %v4201_v4 = vpop.f32.mrb[20].mxu0 }
 0x943   :  { %v4009_v61 = vadd.f32 %v4008_v2, %v8380_v46  ;;  %v4202_v24 = vadd.f32 %v4201_v4, %v8383_v43  ;;  %v4010_v33 = vpop.f32.mrb[245].mxu1  ;;  %v4203_v12 = vpop.f32.mrb[21].mxu0 }
 0x944   :  { %v4011_v11 = vadd.f32 %v4010_v33, %v8386_v28  ;;  %v4204_v58 = vadd.f32 %v4203_v12, %v8389_v8  ;;  %v4012_v9 = vpop.f32.mrb[246].mxu1  ;;  %v4205_v39 = vpop.f32.mrb[22].mxu0  ;;  %v8536_v33 = vrot.slane %v8374_v1, %v3547_v18 }
 0x945   :  { %v4013_v50 = vadd.f32 %v4012_v9, %v8380_v46  ;;  %v4206_v42 = vadd.f32 %v4205_v39, %v8383_v43  ;;  %v4014_v27 = vpop.f32.mrb[247].mxu1  ;;  %v4207_v47 = vpop.f32.mrb[23].mxu0 }
 0x946   :  { %v5908_v14 = vpack.c.bf16 %v4011_v11, %v4009_v61  ;;  %v5909_v52 = vpack.c.bf16 %v4204_v58, %v4202_v24  ;;  %v4015_v15 = vadd.f32 %v4014_v27, %v8386_v28  ;;  %v4208_v51 = vadd.f32 %v4207_v47, %v8389_v8 }
 0x947   :  { %v8533_v24 = vrot.slane %v8374_v1, %v3539_v19 }
 0x948   :  { %5393 = vst [vmem:[#allocation29 + $0x2d8] sm:$0xff] %v5908_v14  ;;  %5394 = vst [vmem:[#allocation29 + $0x2e0] sm:$0xff] %v5909_v52  ;;  %v5912_v23 = vpack.c.bf16 %v4015_v15, %v4013_v50  ;;  %v5913_v40 = vpack.c.bf16 %v4208_v51, %v4206_v42 }
 0x94a   :  { %5397 = vst [vmem:[#allocation29 + $0x2f4] sm:$0xff] %v5912_v23  ;;  %5398 = vst [vmem:[#allocation29 + $0x2fc] sm:$0xff] %v5913_v40  ;;  %v4018_v34 = vpop.f32.mrb[248].mxu1  ;;  %v4211_v53 = vpop.f32.mrb[24].mxu0 }
 0x94b   :  { %v4019_v38 = vadd.f32 %v4018_v34, %v8380_v46  ;;  %v4212_v54 = vadd.f32 %v4211_v53, %v8383_v43  ;;  %v4020_v36 = vpop.f32.mrb[249].mxu1  ;;  %v4213_v10 = vpop.f32.mrb[25].mxu0 }
 0x94c   :  { %v4021_v49 = vadd.f32 %v4020_v36, %v8386_v28  ;;  %v4214_v41 = vadd.f32 %v4213_v10, %v8389_v8  ;;  %v4022_v55 = vpop.f32.mrb[250].mxu1  ;;  %v4215_v57 = vpop.f32.mrb[26].mxu0 }
 0x94d   :  { %v4023_v59 = vadd.f32 %v4022_v55, %v8380_v46  ;;  %v4216_v60 = vadd.f32 %v4215_v57, %v8383_v43  ;;  %v4024_v63 = vpop.f32.mrb[251].mxu1  ;;  %v4217_v3 = vpop.f32.mrb[27].mxu0 }
 0x94e   :  { %v5916_v16 = vpack.c.bf16 %v4021_v49, %v4019_v38  ;;  %v5917_v31 = vpack.c.bf16 %v4214_v41, %v4212_v54  ;;  %v4025_v30 = vadd.f32 %v4024_v63, %v8386_v28  ;;  %v4218_v45 = vadd.f32 %v4217_v3, %v8389_v8 }
 0x950   :  { %5401 = vst [vmem:[#allocation29 + $0x310] sm:$0xff] %v5916_v16  ;;  %5402 = vst [vmem:[#allocation29 + $0x318] sm:$0xff] %v5917_v31  ;;  %v5920_v35 = vpack.c.bf16 %v4025_v30, %v4023_v59  ;;  %v5921_v6 = vpack.c.bf16 %v4218_v45, %v4216_v60 }
 0x952   :  { %5405 = vst [vmem:[#allocation29 + $0x32c] sm:$0xff] %v5920_v35  ;;  %5406 = vst [vmem:[#allocation29 + $0x334] sm:$0xff] %v5921_v6  ;;  %v4028_v48 = vpop.f32.mrb[252].mxu1  ;;  %v4221_v13 = vpop.f32.mrb[28].mxu0 }
 0x953   :  { %v4029_v44 = vadd.f32 %v4028_v48, %v8380_v46  ;;  %v4222_v7 = vadd.f32 %v4221_v13, %v8383_v43  ;;  %v4030_v56 = vpop.f32.mrb[253].mxu1  ;;  %v4223_v17 = vpop.f32.mrb[29].mxu0 }
 0x954   :  { %v4031_v62 = vadd.f32 %v4030_v56, %v8386_v28  ;;  %v4224_v20 = vadd.f32 %v4223_v17, %v8389_v8  ;;  %v4032_v5 = vpop.f32.mrb[254].mxu1  ;;  %v4225_v21 = vpop.f32.mrb[30].mxu0 }
 0x955   :  { %v4033_v26 = vadd.f32 %v4032_v5, %v8380_v46  ;;  %v4226_v0 = vadd.f32 %v4225_v21, %v8383_v43  ;;  %v4034_v22 = vpop.f32.mrb[255].mxu1  ;;  %v4227_v29 = vpop.f32.mrb[31].mxu0  ;;  %v8539_v43 = vrot.slane %v8374_v1, %v3543_v25 }
 0x956   :  { %v5924_v37 = vpack.c.bf16 %v4031_v62, %v4029_v44  ;;  %v5925_v2 = vpack.c.bf16 %v4224_v20, %v4222_v7  ;;  %v4035_v4 = vadd.f32 %v4034_v22, %v8386_v28  ;;  %v4228_v61 = vadd.f32 %v4227_v29, %v8389_v8 }
 0x958   :  { %5409 = vst [vmem:[#allocation29 + $0x348] sm:$0xff] %v5924_v37  ;;  %5410 = vst [vmem:[#allocation29 + $0x350] sm:$0xff] %v5925_v2  ;;  %v5928_v32 = vpack.c.bf16 %v4035_v4, %v4033_v26  ;;  %v5929_v46 = vpack.c.bf16 %v4228_v61, %v4226_v0 }
 0x95a   :  { %5413 = vst [vmem:[#allocation29 + $0x364] sm:$0xff] %v5928_v32  ;;  %5414 = vst [vmem:[#allocation29 + $0x36c] sm:$0xff] %v5929_v46  ;;  %v4264_v12 = vpop.f32.mrb[0].mxu1  ;;  %v6727_v11 = vpop.f32.mrb[32].mxu0 }
 0x95b   :  { %v4265_v28 = vadd.f32 %v4264_v12, %v8533_v24  ;;  %v4466_v8 = vadd.f32 %v6727_v11, %v8536_v33  ;;  %v4266_v58 = vpop.f32.mrb[1].mxu1  ;;  %v4457_v9 = vpop.f32.mrb[33].mxu0 }
 0x95c   :  { %v4267_v39 = vadd.f32 %v4266_v58, %v8539_v43  ;;  %v4458_v50 = vadd.f32 %v4457_v9, %v8536_v33  ;;  %v4268_v1 = vpop.f32.mrb[2].mxu1  ;;  %v6728_v42 = vpop.f32.mrb[34].mxu0 }
 0x95d   :  { %v5815_v27 = vpack.c.bf16 %v4466_v8, %v4466_v8  ;;  %v4269_v47 = vadd.f32 %v4268_v1, %v8533_v24  ;;  %v4469_v14 = vadd.f32 %v6728_v42, %v8536_v33  ;;  %v4270_v52 = vpop.f32.mrb[3].mxu1  ;;  %v4460_v15 = vpop.f32.mrb[35].mxu0 }
 0x95e   :  { %7327 = shalt.err (!%p7324_p0)
}
 0x95f   :  { %s8728_s5 = sld [smem:[#allocation47_spill]] }
 0x965   :  { %s7328_s18 = scalar_lea.hbm %s8728_s5, 4096 }
 0x966   :  { %p7329_p1 = scmp.ne.s32.totalorder %s8728_s5, %s7328_s18  ;;  %p7332_p2 = scmp.lt.u32.totalorder %s7328_s18, %s8728_s5 }
 0x968   :  { %p7334_p3 = pnand %p7332_p2, %p7329_p1 }
 0x96a   :  { %7337 = shalt.err (!%p7334_p3)
}
 0x96b   :  { %s7407_s28 = smov 128   ;;  %s7408_s21 = smov 8   ;;  %v5806_v51 = vpack.c.bf16 %v4267_v39, %v4265_v28  ;;  %v5807_v23 = vpack.c.bf16 %v4458_v50, %v4458_v50  ;;  %v4271_v40 = vadd.f32 %v4270_v52, %v8539_v43  ;;  %v4461_v34 = vadd.f32 %v4460_v15, %v8536_v33  ;;  %5300 = vst.msk [vmem:[#allocation29 + $0x50] sm:$0xf] %vm5291_vm5, %v5815_v27  ;;  %v4274_v36 = vpop.f32.mrb[4].mxu1  ;;  %v6731_v10 = vpop.f32.mrb[36].mxu0 }
 0x96c   :  { %5440 = dma.vmem_to_hbm [thread:$0]  %s5435_s10, 4096, %s8728_s5, [#allocation31], %s7407_s28, %s7407_s28, %s7408_s21   ;;  %v5819_v53 = vpack.c.bf16 %v4469_v14, %v4469_v14  ;;  %v4275_v49 = vadd.f32 %v4274_v36, %v8533_v24  ;;  %v4482_v41 = vadd.f32 %v6731_v10, %v8536_v33  ;;  %v4276_v55 = vpop.f32.mrb[5].mxu1  ;;  %v4473_v57 = vpop.f32.mrb[37].mxu0 }
 0x96d   :  { %5290 = vst [vmem:[#allocation29 + $0x10] sm:$0xff] %v5806_v51  ;;  %5292 = vst.msk [vmem:[#allocation29 + $0x18] sm:$0xf] %vm5291_vm5, %v5807_v23  ;;  %v5810_v38 = vpack.c.bf16 %v4271_v40, %v4269_v47  ;;  %v5811_v54 = vpack.c.bf16 %v4461_v34, %v4461_v34  ;;  %v4277_v59 = vadd.f32 %v4276_v55, %v8539_v43  ;;  %v4278_v63 = vpop.f32.mrb[6].mxu1  ;;  %v6732_v3 = vpop.f32.mrb[38].mxu0  ;;  %s7409_s17 = smov [#allocation29]  }
 0x96e   :  { %5304 = vst.msk [vmem:[#allocation29 + $0x6c] sm:$0xf] %vm5291_vm5, %v5819_v53  ;;  %v4474_v60 = vadd.f32 %v4473_v57, %v8536_v33  ;;  %v5831_v16 = vpack.c.bf16 %v4482_v41, %v4482_v41  ;;  %v4279_v31 = vadd.f32 %v4278_v63, %v8533_v24  ;;  %v4485_v30 = vadd.f32 %v6732_v3, %v8536_v33  ;;  %v4280_v45 = vpop.f32.mrb[7].mxu1  ;;  %v4476_v35 = vpop.f32.mrb[39].mxu0  ;;  %s5422_s2 = sshll.u32 %s7409_s17, 4  ;;  %s5423_s2 = int_to_ptr.vmem [resolvable:$true] %s5422_s2 }
 0x96f   :  { %5295 = vst [vmem:[#allocation29 + $0x2c] sm:$0xff] %v5810_v38  ;;  %5296 = vst.msk [vmem:[#allocation29 + $0x34] sm:$0xf] %vm5291_vm5, %v5811_v54  ;;  %v5814_v6 = vpack.c.bf16 %v4277_v59, %v4275_v49  ;;  %v4281_v13 = vadd.f32 %v4280_v45, %v8539_v43  ;;  %v4477_v44 = vadd.f32 %v4476_v35, %v8536_v33  ;;  %v4284_v19 = vpop.f32.mrb[8].mxu1  ;;  %v6735_v18 = vpop.f32.mrb[40].mxu0  ;;  %s7338_s15 = scalar_lea.vmem %s5423_s2, 14336  ;;  %p7343_p5 = scmp.lt.s32.totalorder %s5423_s2, %s5423_s2 }
 0x970   :  { %v5823_v48 = vpack.c.bf16 %v4474_v60, %v4474_v60  ;;  %5316 = vst.msk [vmem:[#allocation29 + $0xc0] sm:$0xf] %vm5291_vm5, %v5831_v16  ;;  %v5835_v7 = vpack.c.bf16 %v4485_v30, %v4485_v30  ;;  %v4285_v62 = vadd.f32 %v4284_v19, %v8533_v24  ;;  %v4498_v20 = vadd.f32 %v6735_v18, %v8536_v33  ;;  %v4286_v5 = vpop.f32.mrb[9].mxu1  ;;  %v4489_v21 = vpop.f32.mrb[41].mxu0  ;;  %p7339_p4 = scmp.ne.s32.totalorder %s5423_s2, %s7338_s15  ;;  %p7344_p6 = scmp.lt.s32.totalorder %s7338_s15, %s7338_s15 }
 0x971   :  { %5299 = vst [vmem:[#allocation29 + $0x48] sm:$0xff] %v5814_v6  ;;  %v5818_v56 = vpack.c.bf16 %v4281_v13, %v4279_v31  ;;  %v5827_v17 = vpack.c.bf16 %v4477_v44, %v4477_v44  ;;  %v4287_v25 = vadd.f32 %v4286_v5, %v8539_v43  ;;  %v4490_v26 = vadd.f32 %v4489_v21, %v8536_v33  ;;  %v4288_v0 = vpop.f32.mrb[10].mxu1  ;;  %v6736_v22 = vpop.f32.mrb[42].mxu0 }
 0x972   :  { %5308 = vst.msk [vmem:[#allocation29 + $0x88] sm:$0xf] %vm5291_vm5, %v5823_v48  ;;  %5320 = vst.msk [vmem:[#allocation29 + $0xdc] sm:$0xf] %vm5291_vm5, %v5835_v7  ;;  %v5847_v29 = vpack.c.bf16 %v4498_v20, %v4498_v20  ;;  %v4289_v37 = vadd.f32 %v4288_v0, %v8533_v24  ;;  %v4501_v2 = vadd.f32 %v6736_v22, %v8536_v33  ;;  %v4290_v4 = vpop.f32.mrb[11].mxu1  ;;  %v4492_v61 = vpop.f32.mrb[43].mxu0  ;;  %p7345_p7 = por %p7344_p6, %p7343_p5 }
 0x973   :  { %5303 = vst [vmem:[#allocation29 + $0x64] sm:$0xff] %v5818_v56  ;;  %5312 = vst.msk [vmem:[#allocation29 + $0xa4] sm:$0xf] %vm5291_vm5, %v5827_v17  ;;  %v5822_v32 = vpack.c.bf16 %v4287_v25, %v4285_v62  ;;  %v5839_v46 = vpack.c.bf16 %v4490_v26, %v4490_v26  ;;  %v4291_v12 = vadd.f32 %v4290_v4, %v8539_v43  ;;  %v4294_v9 = vpop.f32.mrb[12].mxu1  ;;  %v6739_v39 = vpop.f32.mrb[44].mxu0 }
 0x974   :  { %v4493_v11 = vadd.f32 %v4492_v61, %v8536_v33  ;;  %5332 = vst.msk [vmem:[#allocation29 + $0x130] sm:$0xf] %vm5291_vm5, %v5847_v29  ;;  %v5851_v28 = vpack.c.bf16 %v4501_v2, %v4501_v2  ;;  %v4295_v50 = vadd.f32 %v4294_v9, %v8533_v24  ;;  %v4514_v1 = vadd.f32 %v6739_v39, %v8536_v33  ;;  %v4296_v42 = vpop.f32.mrb[13].mxu1  ;;  %v4505_v27 = vpop.f32.mrb[45].mxu0  ;;  %p7346_p8 = pnand %p7345_p7, %p7339_p4 }
 0x975   :  { %5307 = vst [vmem:[#allocation29 + $0x80] sm:$0xff] %v5822_v32  ;;  %5324 = vst.msk [vmem:[#allocation29 + $0xf8] sm:$0xf] %vm5291_vm5, %v5839_v46  ;;  %v5826_v8 = vpack.c.bf16 %v4291_v12, %v4289_v37  ;;  %v4297_v47 = vadd.f32 %v4296_v42, %v8539_v43  ;;  %v4506_v14 = vadd.f32 %v4505_v27, %v8536_v33  ;;  %v4298_v52 = vpop.f32.mrb[14].mxu1  ;;  %v6740_v15 = vpop.f32.mrb[46].mxu0 }
 0x976   :  { %v5843_v58 = vpack.c.bf16 %v4493_v11, %v4493_v11  ;;  %5336 = vst.msk [vmem:[#allocation29 + $0x14c] sm:$0xf] %vm5291_vm5, %v5851_v28  ;;  %v5863_v51 = vpack.c.bf16 %v4514_v1, %v4514_v1  ;;  %v4299_v23 = vadd.f32 %v4298_v52, %v8533_v24  ;;  %v4517_v40 = vadd.f32 %v6740_v15, %v8536_v33  ;;  %v4300_v34 = vpop.f32.mrb[15].mxu1  ;;  %v4508_v53 = vpop.f32.mrb[47].mxu0 }
 0x977   :  { %5311 = vst [vmem:[#allocation29 + $0x9c] sm:$0xff] %v5826_v8  ;;  %v5830_v38 = vpack.c.bf16 %v4297_v47, %v4295_v50  ;;  %v5855_v54 = vpack.c.bf16 %v4506_v14, %v4506_v14  ;;  %v4301_v36 = vadd.f32 %v4300_v34, %v8539_v43  ;;  %v4509_v10 = vadd.f32 %v4508_v53, %v8536_v33 }
 0x978   :  { %5328 = vst.msk [vmem:[#allocation29 + $0x114] sm:$0xf] %vm5291_vm5, %v5843_v58  ;;  %5348 = vst.msk [vmem:[#allocation29 + $0x1a0] sm:$0xf] %vm5291_vm5, %v5863_v51  ;;  %v5867_v49 = vpack.c.bf16 %v4517_v40, %v4517_v40 }
 0x979   :  { %5315 = vst [vmem:[#allocation29 + $0xb8] sm:$0xff] %v5830_v38  ;;  %5340 = vst.msk [vmem:[#allocation29 + $0x168] sm:$0xf] %vm5291_vm5, %v5855_v54  ;;  %v5834_v41 = vpack.c.bf16 %v4301_v36, %v4299_v23  ;;  %v5859_v55 = vpack.c.bf16 %v4509_v10, %v4509_v10 }
 0x97a   :  { %5352 = vst.msk [vmem:[#allocation29 + $0x1bc] sm:$0xf] %vm5291_vm5, %v5867_v49  ;;  %v4304_v57 = vpop.f32.mrb[16].mxu1  ;;  %v6743_v59 = vpop.f32.mrb[48].mxu0 }
 0x97b   :  { %5319 = vst [vmem:[#allocation29 + $0xd4] sm:$0xff] %v5834_v41  ;;  %5344 = vst.msk [vmem:[#allocation29 + $0x184] sm:$0xf] %vm5291_vm5, %v5859_v55  ;;  %v4305_v60 = vadd.f32 %v4304_v57, %v8533_v24  ;;  %v4530_v63 = vadd.f32 %v6743_v59, %v8536_v33  ;;  %v4306_v3 = vpop.f32.mrb[17].mxu1  ;;  %v4521_v16 = vpop.f32.mrb[49].mxu0 }
 0x97c   :  { %v4307_v31 = vadd.f32 %v4306_v3, %v8539_v43  ;;  %v4522_v30 = vadd.f32 %v4521_v16, %v8536_v33  ;;  %v4308_v45 = vpop.f32.mrb[18].mxu1  ;;  %v6744_v35 = vpop.f32.mrb[50].mxu0 }
 0x97d   :  { %v5879_v6 = vpack.c.bf16 %v4530_v63, %v4530_v63  ;;  %v4309_v48 = vadd.f32 %v4308_v45, %v8533_v24  ;;  %v4533_v13 = vadd.f32 %v6744_v35, %v8536_v33  ;;  %v4310_v44 = vpop.f32.mrb[19].mxu1  ;;  %v4524_v7 = vpop.f32.mrb[51].mxu0 }
 0x97e   :  { %v5838_v56 = vpack.c.bf16 %v4307_v31, %v4305_v60  ;;  %v5871_v17 = vpack.c.bf16 %v4522_v30, %v4522_v30  ;;  %v4311_v19 = vadd.f32 %v4310_v44, %v8539_v43  ;;  %v4525_v18 = vadd.f32 %v4524_v7, %v8536_v33 }
 0x97f   :  { %5364 = vst.msk [vmem:[#allocation29 + $0x210] sm:$0xf] %vm5291_vm5, %v5879_v6  ;;  %v5883_v62 = vpack.c.bf16 %v4533_v13, %v4533_v13 }
 0x980   :  { %5323 = vst [vmem:[#allocation29 + $0xf0] sm:$0xff] %v5838_v56  ;;  %5356 = vst.msk [vmem:[#allocation29 + $0x1d8] sm:$0xf] %vm5291_vm5, %v5871_v17  ;;  %v5842_v20 = vpack.c.bf16 %v4311_v19, %v4309_v48  ;;  %v5875_v5 = vpack.c.bf16 %v4525_v18, %v4525_v18 }
 0x981   :  { %5368 = vst.msk [vmem:[#allocation29 + $0x22c] sm:$0xf] %vm5291_vm5, %v5883_v62 }
 0x982   :  { %5327 = vst [vmem:[#allocation29 + $0x10c] sm:$0xff] %v5842_v20  ;;  %5360 = vst.msk [vmem:[#allocation29 + $0x1f4] sm:$0xf] %vm5291_vm5, %v5875_v5  ;;  %v4314_v21 = vpop.f32.mrb[20].mxu1  ;;  %v6747_v25 = vpop.f32.mrb[52].mxu0 }
 0x983   :  { %v4315_v26 = vadd.f32 %v4314_v21, %v8533_v24  ;;  %v4546_v0 = vadd.f32 %v6747_v25, %v8536_v33  ;;  %v4316_v22 = vpop.f32.mrb[21].mxu1  ;;  %v4537_v29 = vpop.f32.mrb[53].mxu0 }
 0x984   :  { %v4317_v37 = vadd.f32 %v4316_v22, %v8539_v43  ;;  %v4538_v2 = vadd.f32 %v4537_v29, %v8536_v33  ;;  %v4318_v4 = vpop.f32.mrb[22].mxu1  ;;  %v6748_v61 = vpop.f32.mrb[54].mxu0 }
 0x985   :  { %v5895_v32 = vpack.c.bf16 %v4546_v0, %v4546_v0  ;;  %v4319_v46 = vadd.f32 %v4318_v4, %v8533_v24  ;;  %v4549_v12 = vadd.f32 %v6748_v61, %v8536_v33  ;;  %v4320_v11 = vpop.f32.mrb[23].mxu1  ;;  %v4540_v28 = vpop.f32.mrb[55].mxu0 }
 0x986   :  { %v5846_v8 = vpack.c.bf16 %v4317_v37, %v4315_v26  ;;  %v5887_v58 = vpack.c.bf16 %v4538_v2, %v4538_v2  ;;  %v4321_v9 = vadd.f32 %v4320_v11, %v8539_v43  ;;  %v4541_v39 = vadd.f32 %v4540_v28, %v8536_v33 }
 0x987   :  { %5380 = vst.msk [vmem:[#allocation29 + $0x280] sm:$0xf] %vm5291_vm5, %v5895_v32  ;;  %v5899_v50 = vpack.c.bf16 %v4549_v12, %v4549_v12 }
 0x988   :  { %5331 = vst [vmem:[#allocation29 + $0x128] sm:$0xff] %v5846_v8  ;;  %5372 = vst.msk [vmem:[#allocation29 + $0x248] sm:$0xf] %vm5291_vm5, %v5887_v58  ;;  %v5850_v1 = vpack.c.bf16 %v4321_v9, %v4319_v46  ;;  %v5891_v42 = vpack.c.bf16 %v4541_v39, %v4541_v39 }
 0x989   :  { %5384 = vst.msk [vmem:[#allocation29 + $0x29c] sm:$0xf] %vm5291_vm5, %v5899_v50 }
 0x98a   :  { %5335 = vst [vmem:[#allocation29 + $0x144] sm:$0xff] %v5850_v1  ;;  %5376 = vst.msk [vmem:[#allocation29 + $0x264] sm:$0xf] %vm5291_vm5, %v5891_v42  ;;  %v4324_v27 = vpop.f32.mrb[24].mxu1  ;;  %v6751_v47 = vpop.f32.mrb[56].mxu0 }
 0x98b   :  { %v4325_v14 = vadd.f32 %v4324_v27, %v8533_v24  ;;  %v4562_v52 = vadd.f32 %v6751_v47, %v8536_v33  ;;  %v4326_v15 = vpop.f32.mrb[25].mxu1  ;;  %v4553_v51 = vpop.f32.mrb[57].mxu0 }
 0x98c   :  { %v4327_v23 = vadd.f32 %v4326_v15, %v8539_v43  ;;  %v4554_v40 = vadd.f32 %v4553_v51, %v8536_v33  ;;  %v4328_v34 = vpop.f32.mrb[26].mxu1  ;;  %v6752_v53 = vpop.f32.mrb[58].mxu0 }
 0x98d   :  { %v5911_v38 = vpack.c.bf16 %v4562_v52, %v4562_v52  ;;  %v4329_v54 = vadd.f32 %v4328_v34, %v8533_v24  ;;  %v4565_v36 = vadd.f32 %v6752_v53, %v8536_v33  ;;  %v4330_v10 = vpop.f32.mrb[27].mxu1  ;;  %v4556_v49 = vpop.f32.mrb[59].mxu0 }
 0x98e   :  { %v5854_v41 = vpack.c.bf16 %v4327_v23, %v4325_v14  ;;  %v5903_v55 = vpack.c.bf16 %v4554_v40, %v4554_v40  ;;  %v4331_v57 = vadd.f32 %v4330_v10, %v8539_v43  ;;  %v4557_v59 = vadd.f32 %v4556_v49, %v8536_v33 }
 0x98f   :  { %5396 = vst.msk [vmem:[#allocation29 + $0x2f0] sm:$0xf] %vm5291_vm5, %v5911_v38  ;;  %v5915_v60 = vpack.c.bf16 %v4565_v36, %v4565_v36 }
 0x990   :  { %5339 = vst [vmem:[#allocation29 + $0x160] sm:$0xff] %v5854_v41  ;;  %5388 = vst.msk [vmem:[#allocation29 + $0x2b8] sm:$0xf] %vm5291_vm5, %v5903_v55  ;;  %v5858_v63 = vpack.c.bf16 %v4331_v57, %v4329_v54  ;;  %v5907_v3 = vpack.c.bf16 %v4557_v59, %v4557_v59 }
 0x991   :  { %5400 = vst.msk [vmem:[#allocation29 + $0x30c] sm:$0xf] %vm5291_vm5, %v5915_v60 }
 0x992   :  { %5343 = vst [vmem:[#allocation29 + $0x17c] sm:$0xff] %v5858_v63  ;;  %5392 = vst.msk [vmem:[#allocation29 + $0x2d4] sm:$0xf] %vm5291_vm5, %v5907_v3  ;;  %v4334_v16 = vpop.f32.mrb[28].mxu1  ;;  %v6755_v31 = vpop.f32.mrb[60].mxu0 }
 0x993   :  { %v4335_v30 = vadd.f32 %v4334_v16, %v8533_v24  ;;  %v4578_v45 = vadd.f32 %v6755_v31, %v8536_v33  ;;  %v4336_v35 = vpop.f32.mrb[29].mxu1  ;;  %v4569_v6 = vpop.f32.mrb[61].mxu0 }
 0x994   :  { %v4337_v48 = vadd.f32 %v4336_v35, %v8539_v43  ;;  %v4570_v13 = vadd.f32 %v4569_v6, %v8536_v33  ;;  %v4338_v44 = vpop.f32.mrb[30].mxu1  ;;  %v6756_v7 = vpop.f32.mrb[62].mxu0 }
 0x995   :  { %v5927_v56 = vpack.c.bf16 %v4578_v45, %v4578_v45  ;;  %v4339_v17 = vadd.f32 %v4338_v44, %v8533_v24  ;;  %v4581_v19 = vadd.f32 %v6756_v7, %v8536_v33  ;;  %v4340_v18 = vpop.f32.mrb[31].mxu1  ;;  %v4572_v62 = vpop.f32.mrb[63].mxu0 }
 0x996   :  { %v5862_v20 = vpack.c.bf16 %v4337_v48, %v4335_v30  ;;  %v5919_v5 = vpack.c.bf16 %v4570_v13, %v4570_v13  ;;  %v4341_v21 = vadd.f32 %v4340_v18, %v8539_v43  ;;  %v4573_v25 = vadd.f32 %v4572_v62, %v8536_v33 }
 0x997   :  { %5412 = vst.msk [vmem:[#allocation29 + $0x360] sm:$0xf] %vm5291_vm5, %v5927_v56  ;;  %v5931_v26 = vpack.c.bf16 %v4581_v19, %v4581_v19 }
 0x998   :  { %5347 = vst [vmem:[#allocation29 + $0x198] sm:$0xff] %v5862_v20  ;;  %5404 = vst.msk [vmem:[#allocation29 + $0x328] sm:$0xf] %vm5291_vm5, %v5919_v5  ;;  %v5866_v0 = vpack.c.bf16 %v4341_v21, %v4339_v17  ;;  %v5923_v22 = vpack.c.bf16 %v4573_v25, %v4573_v25 }
 0x999   :  { %5416 = vst.msk [vmem:[#allocation29 + $0x37c] sm:$0xf] %vm5291_vm5, %v5931_v26 }
 0x99a   :  { %5351 = vst [vmem:[#allocation29 + $0x1b4] sm:$0xff] %v5866_v0  ;;  %5408 = vst.msk [vmem:[#allocation29 + $0x344] sm:$0xf] %vm5291_vm5, %v5923_v22  ;;  %v4344_v29 = vpop.f32.mrb[32].mxu1 }
 0x99b   :  { %v4345_v37 = vadd.f32 %v4344_v29, %v8533_v24  ;;  %v4346_v2 = vpop.f32.mrb[33].mxu1 }
 0x99c   :  { %v4347_v4 = vadd.f32 %v4346_v2, %v8539_v43  ;;  %v4348_v33 = vpop.f32.mrb[34].mxu1 }
 0x99d   :  { %v4349_v61 = vadd.f32 %v4348_v33, %v8533_v24  ;;  %v4350_v32 = vpop.f32.mrb[35].mxu1 }
 0x99e   :  { %v5870_v46 = vpack.c.bf16 %v4347_v4, %v4345_v37  ;;  %v4351_v12 = vadd.f32 %v4350_v32, %v8539_v43 }
 0x9a0   :  { %5355 = vst [vmem:[#allocation29 + $0x1d0] sm:$0xff] %v5870_v46  ;;  %v5874_v11 = vpack.c.bf16 %v4351_v12, %v4349_v61 }
 0x9a2   :  { %5359 = vst [vmem:[#allocation29 + $0x1ec] sm:$0xff] %v5874_v11  ;;  %v4354_v28 = vpop.f32.mrb[36].mxu1 }
 0x9a3   :  { %v4355_v8 = vadd.f32 %v4354_v28, %v8533_v24  ;;  %v4356_v58 = vpop.f32.mrb[37].mxu1 }
 0x9a4   :  { %v4357_v9 = vadd.f32 %v4356_v58, %v8539_v43  ;;  %v4358_v39 = vpop.f32.mrb[38].mxu1 }
 0x9a5   :  { %v4359_v50 = vadd.f32 %v4358_v39, %v8533_v24  ;;  %v4360_v1 = vpop.f32.mrb[39].mxu1 }
 0x9a6   :  { %v5878_v42 = vpack.c.bf16 %v4357_v9, %v4355_v8  ;;  %v4361_v27 = vadd.f32 %v4360_v1, %v8539_v43 }
 0x9a8   :  { %5363 = vst [vmem:[#allocation29 + $0x208] sm:$0xff] %v5878_v42  ;;  %v5882_v47 = vpack.c.bf16 %v4361_v27, %v4359_v50 }
 0x9aa   :  { %5367 = vst [vmem:[#allocation29 + $0x224] sm:$0xff] %v5882_v47  ;;  %v4364_v14 = vpop.f32.mrb[40].mxu1 }
 0x9ab   :  { %v4365_v52 = vadd.f32 %v4364_v14, %v8533_v24  ;;  %v4366_v15 = vpop.f32.mrb[41].mxu1 }
 0x9ac   :  { %v4367_v51 = vadd.f32 %v4366_v15, %v8539_v43  ;;  %v4368_v23 = vpop.f32.mrb[42].mxu1 }
 0x9ad   :  { %v4369_v40 = vadd.f32 %v4368_v23, %v8533_v24  ;;  %v4370_v34 = vpop.f32.mrb[43].mxu1 }
 0x9ae   :  { %v5886_v53 = vpack.c.bf16 %v4367_v51, %v4365_v52  ;;  %v4371_v38 = vadd.f32 %v4370_v34, %v8539_v43 }
 0x9b0   :  { %5371 = vst [vmem:[#allocation29 + $0x240] sm:$0xff] %v5886_v53  ;;  %v5890_v54 = vpack.c.bf16 %v4371_v38, %v4369_v40 }
 0x9b2   :  { %5375 = vst [vmem:[#allocation29 + $0x25c] sm:$0xff] %v5890_v54  ;;  %v4374_v36 = vpop.f32.mrb[44].mxu1 }
 0x9b3   :  { %v4375_v10 = vadd.f32 %v4374_v36, %v8533_v24  ;;  %v4376_v49 = vpop.f32.mrb[45].mxu1 }
 0x9b4   :  { %v4377_v41 = vadd.f32 %v4376_v49, %v8539_v43  ;;  %v4378_v55 = vpop.f32.mrb[46].mxu1 }
 0x9b5   :  { %v4379_v57 = vadd.f32 %v4378_v55, %v8533_v24  ;;  %v4380_v59 = vpop.f32.mrb[47].mxu1 }
 0x9b6   :  { %v5894_v60 = vpack.c.bf16 %v4377_v41, %v4375_v10  ;;  %v4381_v63 = vadd.f32 %v4380_v59, %v8539_v43 }
 0x9b8   :  { %5379 = vst [vmem:[#allocation29 + $0x278] sm:$0xff] %v5894_v60  ;;  %v5898_v3 = vpack.c.bf16 %v4381_v63, %v4379_v57 }
 0x9ba   :  { %5383 = vst [vmem:[#allocation29 + $0x294] sm:$0xff] %v5898_v3  ;;  %v4384_v16 = vpop.f32.mrb[48].mxu1 }
 0x9bb   :  { %v4385_v31 = vadd.f32 %v4384_v16, %v8533_v24  ;;  %v4386_v30 = vpop.f32.mrb[49].mxu1 }
 0x9bc   :  { %v4387_v45 = vadd.f32 %v4386_v30, %v8539_v43  ;;  %v4388_v35 = vpop.f32.mrb[50].mxu1 }
 0x9bd   :  { %v4389_v6 = vadd.f32 %v4388_v35, %v8533_v24  ;;  %v4390_v48 = vpop.f32.mrb[51].mxu1 }
 0x9be   :  { %v5902_v13 = vpack.c.bf16 %v4387_v45, %v4385_v31  ;;  %v4391_v44 = vadd.f32 %v4390_v48, %v8539_v43 }
 0x9c0   :  { %5387 = vst [vmem:[#allocation29 + $0x2b0] sm:$0xff] %v5902_v13  ;;  %v5906_v7 = vpack.c.bf16 %v4391_v44, %v4389_v6 }
 0x9c2   :  { %5391 = vst [vmem:[#allocation29 + $0x2cc] sm:$0xff] %v5906_v7  ;;  %v4394_v56 = vpop.f32.mrb[52].mxu1 }
 0x9c3   :  { %v4395_v17 = vadd.f32 %v4394_v56, %v8533_v24  ;;  %v4396_v19 = vpop.f32.mrb[53].mxu1 }
 0x9c4   :  { %v4397_v18 = vadd.f32 %v4396_v19, %v8539_v43  ;;  %v4398_v62 = vpop.f32.mrb[54].mxu1 }
 0x9c5   :  { %v4399_v20 = vadd.f32 %v4398_v62, %v8533_v24  ;;  %v4400_v5 = vpop.f32.mrb[55].mxu1 }
 0x9c6   :  { %v5910_v21 = vpack.c.bf16 %v4397_v18, %v4395_v17  ;;  %v4401_v25 = vadd.f32 %v4400_v5, %v8539_v43 }
 0x9c8   :  { %5395 = vst [vmem:[#allocation29 + $0x2e8] sm:$0xff] %v5910_v21  ;;  %v5914_v26 = vpack.c.bf16 %v4401_v25, %v4399_v20 }
 0x9ca   :  { %5399 = vst [vmem:[#allocation29 + $0x304] sm:$0xff] %v5914_v26  ;;  %v4404_v0 = vpop.f32.mrb[56].mxu1 }
 0x9cb   :  { %v4405_v22 = vadd.f32 %v4404_v0, %v8533_v24  ;;  %v4406_v29 = vpop.f32.mrb[57].mxu1 }
 0x9cc   :  { %v4407_v37 = vadd.f32 %v4406_v29, %v8539_v43  ;;  %v4408_v2 = vpop.f32.mrb[58].mxu1 }
 0x9cd   :  { %v4409_v4 = vadd.f32 %v4408_v2, %v8533_v24  ;;  %v4410_v33 = vpop.f32.mrb[59].mxu1 }
 0x9ce   :  { %v5918_v61 = vpack.c.bf16 %v4407_v37, %v4405_v22  ;;  %v4411_v32 = vadd.f32 %v4410_v33, %v8539_v43 }
 0x9d0   :  { %5403 = vst [vmem:[#allocation29 + $0x320] sm:$0xff] %v5918_v61  ;;  %v5922_v46 = vpack.c.bf16 %v4411_v32, %v4409_v4 }
 0x9d2   :  { %5407 = vst [vmem:[#allocation29 + $0x33c] sm:$0xff] %v5922_v46  ;;  %v4414_v12 = vpop.f32.mrb[60].mxu1 }
 0x9d3   :  { %v4415_v11 = vadd.f32 %v4414_v12, %v8533_v24  ;;  %v4416_v28 = vpop.f32.mrb[61].mxu1 }
 0x9d4   :  { %v4417_v8 = vadd.f32 %v4416_v28, %v8539_v43  ;;  %v4418_v58 = vpop.f32.mrb[62].mxu1 }
 0x9d5   :  { %v4419_v9 = vadd.f32 %v4418_v58, %v8533_v24  ;;  %v4420_v39 = vpop.f32.mrb[63].mxu1 }
 0x9d6   :  { %v5926_v50 = vpack.c.bf16 %v4417_v8, %v4415_v11  ;;  %v4421_v1 = vadd.f32 %v4420_v39, %v8539_v43 }
 0x9d8   :  { %5411 = vst [vmem:[#allocation29 + $0x358] sm:$0xff] %v5926_v50  ;;  %v5930_v42 = vpack.c.bf16 %v4421_v1, %v4419_v9 }
 0x9da   :  { %5415 = vst [vmem:[#allocation29 + $0x374] sm:$0xff] %v5930_v42 }
 0x9db   :  { %7349 = shalt.err (!%p7346_p8)
}
 0x9dc   :  { %s8729_s29 = sld [smem:[#allocation46_spill]] }
 0x9e2   :  { %s7350_s22 = scalar_lea.hbm %s8729_s29, 14336 }
 0x9e3   :  { %p7351_p9 = scmp.ne.s32.totalorder %s8729_s29, %s7350_s22  ;;  %p7354_p10 = scmp.lt.u32.totalorder %s7350_s22, %s8729_s29 }
 0x9e5   :  { %p7356_p11 = pnand %p7354_p10, %p7351_p9 }
 0x9e7   :  { %7359 = shalt.err (!%p7356_p11)
}
 0x9e8   :  { %5428 = dma.vmem_to_hbm [thread:$0]  %s5423_s2, 14336, %s8729_s29, [#allocation4], %s7392_s13, %s7392_s13, %s7393_s23  }
 0x9e9   :  { %7378 = dma.done.wait [#allocation4], 14336  }
 0x9ea   :  { %7379 = vsyncadd [#allocation4], 4294952960 }
 0x9eb   :  { %7380 = dma.done.wait [#allocation31], 4096  }
 0x9ec   :  { %7381 = vsyncadd [#allocation31], 4294963200 }
 0x9ed   :  { %5447 = vsyncpa [#allocation3], 1 }
 0x9ee   :  { %5448 = vsyncpa [#allocation6], 1 }
 0x9ef   :  { %5449 = vsyncpa [#allocation9], 1 }
 0x9f0   :  { %5450 = vsyncpa [#allocation12], 1 }
 0x9f1   :  { %5451 = vsyncpa [#allocation15], 1 }
 0x9f2   :  { %5452 = vsyncpa [#allocation18], 1 }
 0x9f3   :  { %5453 = vsyncpa [#allocation21], 1 }
 0x9f4   :  { %5454 = vsyncpa [#allocation24], 1 }
 0x9f5   :  { %5455 = vsyncpa [#allocation27], 1 }
 0x9f6   :  { %5456 = vsyncpa [#allocation4], 1 }
 0x9f7   :  { %5457 = vsyncpa [#allocation31], 1 }

</bundles_post_ra>
